<compile_context>
chip_gen: v6e
topology: v6e:2x2x1
jax: 0.10.0
libtpu: 0.0.40
codegen_flags: <defaults>
</compile_context>

<pallas_src>
from functools import partial

import jax
import jax.numpy as jnp
from jax import lax
from jax.experimental import pallas as pl
from jax.experimental.pallas import tpu as pltpu


def _round_up(x, m):
    return (x + m - 1) // m * m


# ------------------------------ fused kernel ----------------------------------
def _make_fused_kernel(num_layers, Tc, Bp, Hp, mm_dtype, unroll):
    """All LSTM layers + Softplus + Linear head for one time chunk."""

    def kernel(*refs):
        x_ref = refs[0]                                   # (Tc*Bp, Din0) f32
        layer_refs = refs[1:1 + 3 * num_layers]           # (wih, whh, b) / layer
        wlin_ref = refs[1 + 3 * num_layers]                # (Hp, DoutP) mm_dtype
        blin_ref = refs[2 + 3 * num_layers]                # (1, DoutP) f32
        out_ref = refs[3 + 3 * num_layers]                 # (Tc*Bp, DoutP) f32
        h_state = refs[4 + 3 * num_layers]                 # (L, Bp, Hp) f32
        c_state = refs[5 + 3 * num_layers]                 # (L, Bp, Hp) f32
        act_ref = refs[6 + 3 * num_layers]                 # (Tc*Bp, Hp) f32
        xproj_ref = refs[7 + 3 * num_layers]               # (Tc*Bp, 4Hp) f32

        # Zero-initialize the recurrent state at the first time chunk only;
        # it persists in VMEM scratch across grid steps.
        @pl.when(pl.program_id(0) == 0)
        def _():
            h_state[...] = jnp.zeros_like(h_state)
            c_state[...] = jnp.zeros_like(c_state)

        for l in range(num_layers):
            wih_ref = layer_refs[3 * l + 0]
            whh_ref = layer_refs[3 * l + 1]
            b_ref = layer_refs[3 * l + 2]
            in_ref = x_ref if l == 0 else act_ref

            # Phase 1: ONE big MXU matmul for the whole chunk
            # (Tc*Bp, Din) @ (Din, 4Hp), bias folded in once.
            xproj_ref[...] = (
                jnp.dot(in_ref[...].astype(mm_dtype), wih_ref[...],
                        preferred_element_type=jnp.float32)
                + b_ref[...]
            )

            # Phase 2: latency-bound time recurrence.  One small f32 dot per
            # step; h/c are loop carries; outputs land lane-dense in the
            # activation slab (row offset is a multiple of Bp, Bp % 8 == 0).
            whh = whh_ref[...]

            def step(t, carry, whh=whh):
                h, c = carry
                row = pl.multiple_of(t * Bp, Bp)
                gates = xproj_ref[pl.ds(row, Bp), :] + jnp.dot(
                    h, whh, preferred_element_type=jnp.float32)
                # Hp is a multiple of 128 -> gate slices cover whole lane groups.
                i = jax.nn.sigmoid(gates[:, 0 * Hp:1 * Hp])
                f = jax.nn.sigmoid(gates[:, 1 * Hp:2 * Hp])
                g = jnp.tanh(gates[:, 2 * Hp:3 * Hp])
                o = jax.nn.sigmoid(gates[:, 3 * Hp:4 * Hp])
                c = f * c + i * g
                h = o * jnp.tanh(c)
                act_ref[pl.ds(row, Bp), :] = h.astype(act_ref.dtype)
                return h, c

            h, c = lax.fori_loop(0, Tc, step, (h_state[l], c_state[l]),
                                 unroll=unroll)
            h_state[l] = h
            c_state[l] = c

        # Head: one slab-wide Softplus + one (Tc*Bp, Hp) @ (Hp, DoutP) matmul.
        a = act_ref[...].astype(jnp.float32)
        # PyTorch Softplus (beta=1, threshold=20).
        sp = jnp.where(a > 20.0, a, jnp.log1p(jnp.exp(jnp.minimum(a, 20.0))))
        out_ref[...] = (
            jnp.dot(sp.astype(mm_dtype), wlin_ref[...],
                    preferred_element_type=jnp.float32)
            + blin_ref[...]
        )

    return kernel


# ------------------------- weight preparation (wrapper) ------------------------
def _prep_lstm_weight(w, H, Hp, pad_in):
    """PyTorch (4H, Din) -> (Din or Hp, 4Hp): transpose + per-gate zero padding.

    Gate order (i, f, g, o) is preserved; each gate block is padded H -> Hp so
    gate slices in-kernel fall on 128-lane boundaries.  Zero padding is inert:
    padded gate pre-activations are 0, so padded h/c stay exactly 0.
    """
    Din = w.shape[1]
    w4 = jnp.pad(w.reshape(4, H, Din), ((0, 0), (0, Hp - H), (0, 0)))
    wt = jnp.transpose(w4.reshape(4 * Hp, Din))          # (Din, 4Hp)
    if pad_in:
        wt = jnp.pad(wt, ((0, Hp - Din), (0, 0)))        # pad contraction dim
    return wt


def _prep_lstm_bias(b_ih, b_hh, H, Hp):
    b = jnp.pad((b_ih + b_hh).reshape(4, H), ((0, 0), (0, Hp - H)))
    return b.reshape(1, 4 * Hp)


def _vmem_limit_bytes(resident_bytes):
    """Generation-aware VMEM limit from actual resident bytes."""
    cap = 64 * 1024 * 1024                               # safe floor (v7x/TC)
    try:
        cap = int(getattr(pltpu.get_tpu_info(), "vmem_capacity_bytes", cap))
    except Exception:
        pass
    want = max(int(resident_bytes) + (4 << 20), 32 << 20)
    return int(min(want, int(cap * 3 // 4)))


# --------------------------------- forward ------------------------------------
@partial(jax.jit, static_argnames=("matmul_dtype", "time_chunk"))
def lstm_rnn_forward(params, x, *, matmul_dtype=jnp.bfloat16, time_chunk=None):
    T, B, Din = x.shape
    layers = params["lstm"]
    L = len(layers)
    H = layers[0]["w_hh"].shape[1]
    Dout = params["linear_w"].shape[0]

    Hp = _round_up(H, 128)       # lane-pad hidden/gate width
    Bp = _round_up(B, 8)         # sublane-pad batch
    DoutP = _round_up(Dout, 128)

    # Time chunk: keep per-chunk scratch (act + xproj, both f32) ~<= 8 MiB so
    # VMEM use is O(Tc) not O(T) (mandatory for long T on v7x's 64 MiB VMEM).
    if time_chunk is None:
        bytes_per_t = Bp * (4 * Hp + Hp) * 4
        time_chunk = max(1, (8 << 20) // bytes_per_t)
    Tc = max(1, min(int(time_chunk), T))
    n_chunks = (T + Tc - 1) // Tc
    Tp = n_chunks * Tc

    # Pad time/batch and flatten to a lane-dense 2-D slab (no in-kernel reshape).
    x_p = jnp.pad(x, ((0, Tp - T), (0, Bp - B), (0, 0)))
    x2d = x_p.reshape(Tp * Bp, Din)

    args = [x2d]
    in_specs = [pl.BlockSpec((Tc * Bp, Din), lambda i: (i, 0))]
    for l, layer in enumerate(layers):
        wih = _prep_lstm_weight(layer["w_ih"], H, Hp,
                                pad_in=(l > 0)).astype(matmul_dtype)
        whh = _prep_lstm_weight(layer["w_hh"], H, Hp, pad_in=True)   # f32
        b = _prep_lstm_bias(layer["b_ih"], layer["b_hh"], H, Hp)
        args += [wih, whh, b]
        in_specs += [pl.BlockSpec(wih.shape, lambda i: (0, 0)),
                     pl.BlockSpec(whh.shape, lambda i: (0, 0)),
                     pl.BlockSpec(b.shape, lambda i: (0, 0))]
    wlin = jnp.pad(params["linear_w"].T,
                   ((0, Hp - H), (0, DoutP - Dout))).astype(matmul_dtype)
    blin = jnp.pad(params["linear_b"], (0, DoutP - Dout)).reshape(1, DoutP)
    args += [wlin, blin]
    in_specs += [pl.BlockSpec(wlin.shape, lambda i: (0, 0)),
                 pl.BlockSpec(blin.shape, lambda i: (0, 0))]

    # Cap unroll: full unroll only when the recurrence is small.
    unroll = True if Tc * L <= 64 else 8

    scratch = [
        pltpu.VMEM((L, Bp, Hp), jnp.float32),        # h state (persists)
        pltpu.VMEM((L, Bp, Hp), jnp.float32),        # c state (persists)
        pltpu.VMEM((Tc * Bp, Hp), jnp.float32),      # inter-layer activations
        pltpu.VMEM((Tc * Bp, 4 * Hp), jnp.float32),  # hoisted input projection
    ]

    resident = (
        2 * (Tc * Bp * Din) * x2d.dtype.itemsize         # x block (dbl-buf)
        + 2 * (Tc * Bp * DoutP) * 4                      # out block (dbl-buf)
        + 2 * sum(int(a.size) * a.dtype.itemsize for a in args[1:])  # weights
        + 2 * (L * Bp * Hp) * 4                          # h/c state
        + (Tc * Bp * Hp) * 4                             # act
        + (Tc * Bp * 4 * Hp) * 4                         # xproj
    )

    out2d = pl.pallas_call(
        _make_fused_kernel(L, Tc, Bp, Hp, matmul_dtype, unroll),
        out_shape=jax.ShapeDtypeStruct((Tp * Bp, DoutP), jnp.float32),
        grid=(n_chunks,),
        in_specs=in_specs,
        out_specs=pl.BlockSpec((Tc * Bp, DoutP), lambda i: (i, 0)),
        scratch_shapes=scratch,
        compiler_params=pltpu.CompilerParams(
            dimension_semantics=("arbitrary",),          # state carries across chunks
            vmem_limit_bytes=_vmem_limit_bytes(resident)),
    )(*args)

    out = out2d.reshape(Tp, Bp, DoutP)
    return out[:T, :B, :Dout]


# -------------------------------- init params ----------------------------------
def init_params(key, input_size, hidden_size, output_size, num_layers):
    params = {"lstm": []}
    k_lstm = 1.0 / jnp.sqrt(hidden_size)
    keys = jax.random.split(key, 4 * num_layers + 2)
    for l in range(num_layers):
        din = input_size if l == 0 else hidden_size
        k0, k1, k2, k3 = keys[4 * l:4 * l + 4]
        params["lstm"].append(dict(
            w_ih=jax.random.uniform(k0, (4 * hidden_size, din), jnp.float32,
                                    -k_lstm, k_lstm),
            w_hh=jax.random.uniform(k1, (4 * hidden_size, hidden_size),
                                    jnp.float32, -k_lstm, k_lstm),
            b_ih=jax.random.uniform(k2, (4 * hidden_size,), jnp.float32,
                                    -k_lstm, k_lstm),
            b_hh=jax.random.uniform(k3, (4 * hidden_size,), jnp.float32,
                                    -k_lstm, k_lstm),
        ))
    k_lin = 1.0 / jnp.sqrt(hidden_size)
    params["linear_w"] = jax.random.uniform(keys[-2], (output_size, hidden_size),
                                            jnp.float32, -k_lin, k_lin)
    params["linear_b"] = jax.random.uniform(keys[-1], (output_size,),
                                            jnp.float32, -k_lin, k_lin)
    return params


# ------------------------------ pure-JAX reference ------------------------------
def lstm_rnn_reference(params, x):
    out = x
    for layer in params["lstm"]:
        T, B, _ = out.shape
        H = layer["w_hh"].shape[1]
        h = jnp.zeros((B, H), jnp.float32)
        c = jnp.zeros((B, H), jnp.float32)
        ys = []
        for t in range(T):
            gates = (out[t] @ layer["w_ih"].T + layer["b_ih"]
                     + h @ layer["w_hh"].T + layer["b_hh"])
            i, f, g, o = jnp.split(gates, 4, axis=-1)
            i, f, o = jax.nn.sigmoid(i), jax.nn.sigmoid(f), jax.nn.sigmoid(o)
            g = jnp.tanh(g)
            c = f * c + i * g
            h = o * jnp.tanh(c)
            ys.append(h)
        out = jnp.stack(ys)
    sp = jnp.where(out > 20.0, out, jnp.log1p(jnp.exp(jnp.minimum(out, 20.0))))
    return sp @ params["linear_w"].T + params["linear_b"]


if __name__ == "__main__":
    # Small shapes consistent with the module's forward: seq-major LSTM input.
    seq_len, batch = 8, 2
    input_size, hidden_size, output_size, num_layers = 4, 32, 4, 2

    key = jax.random.PRNGKey(0)
    k_param, k_x = jax.random.split(key)
    params = init_params(k_param, input_size, hidden_size, output_size,
                         num_layers)
    x = jax.random.normal(k_x, (seq_len, batch, input_size), jnp.float32)

    ref = lstm_rnn_reference(params, x)

    # f32 matmuls, single time chunk: tight tolerance.
    out_f32 = jax.block_until_ready(
        lstm_rnn_forward(params, x, matmul_dtype=jnp.float32))
    assert out_f32.shape == (seq_len, batch, output_size)
    assert jnp.allclose(out_f32, ref, atol=1e-4, rtol=1e-4), "f32 mismatch"

    # f32 matmuls, chunked time grid (2 chunks): exercises state carry-over.
    out_chunked = jax.block_until_ready(
        lstm_rnn_forward(params, x, matmul_dtype=jnp.float32, time_chunk=4))
    assert jnp.allclose(out_chunked, ref, atol=1e-4, rtol=1e-4), "chunk mismatch"

    # bf16 matmul operands (default, for bf16-native v6e/v7x MXUs): looser tol.
    out_bf16 = jax.block_until_ready(lstm_rnn_forward(params, x))
    assert jnp.allclose(out_bf16, ref, atol=3e-2, rtol=3e-2), "bf16 mismatch"

    print("KERNEL_OK")
</pallas_src>

<mosaic_0001>
module attributes {stable_mosaic.version = 11 : i64} {
  func.func @kernel(%arg0: i32, %arg1: memref<64x4xf32, #tpu.memory_space<vmem>>, %arg2: memref<4x512xf32, #tpu.memory_space<vmem>>, %arg3: memref<128x512xf32, #tpu.memory_space<vmem>>, %arg4: memref<1x512xf32, #tpu.memory_space<vmem>>, %arg5: memref<128x512xf32, #tpu.memory_space<vmem>>, %arg6: memref<128x512xf32, #tpu.memory_space<vmem>>, %arg7: memref<1x512xf32, #tpu.memory_space<vmem>>, %arg8: memref<128x128xf32, #tpu.memory_space<vmem>>, %arg9: memref<1x128xf32, #tpu.memory_space<vmem>>, %arg10: memref<64x128xf32, #tpu.memory_space<vmem>>, %arg11: memref<2x8x128xf32, #tpu.memory_space<vmem>>, %arg12: memref<2x8x128xf32, #tpu.memory_space<vmem>>, %arg13: memref<64x128xf32, #tpu.memory_space<vmem>>, %arg14: memref<64x512xf32, #tpu.memory_space<vmem>>) attributes {dimension_semantics = [#tpu.dimension_semantics<arbitrary>], iteration_bounds = array<i64: 1>, scalar_prefetch = 0 : i64, scratch_operands = 4 : i64, tpu.core_type = #tpu.core_type<tc>, window_params = [{transform_indices = @transform_0, window_bounds = array<i64: 64, 4>}, {pipeline_mode = #tpu.pipeline_mode<synchronous>, transform_indices = @transform_1, window_bounds = array<i64: 4, 512>}, {pipeline_mode = #tpu.pipeline_mode<synchronous>, transform_indices = @transform_2, window_bounds = array<i64: 128, 512>}, {pipeline_mode = #tpu.pipeline_mode<synchronous>, transform_indices = @transform_3, window_bounds = array<i64: 1, 512>}, {pipeline_mode = #tpu.pipeline_mode<synchronous>, transform_indices = @transform_4, window_bounds = array<i64: 128, 512>}, {pipeline_mode = #tpu.pipeline_mode<synchronous>, transform_indices = @transform_5, window_bounds = array<i64: 128, 512>}, {pipeline_mode = #tpu.pipeline_mode<synchronous>, transform_indices = @transform_6, window_bounds = array<i64: 1, 512>}, {pipeline_mode = #tpu.pipeline_mode<synchronous>, transform_indices = @transform_7, window_bounds = array<i64: 128, 128>}, {pipeline_mode = #tpu.pipeline_mode<synchronous>, transform_indices = @transform_8, window_bounds = array<i64: 1, 128>}, {transform_indices = @transform_9, window_bounds = array<i64: 64, 128>}]} {
    %c0_i32 = arith.constant 0 : i32
    %0 = arith.cmpi eq, %arg0, %c0_i32 : i32
    %1 = arith.extui %0 : i1 to i32
    %c0_i32_0 = arith.constant 0 : i32
    %2 = arith.cmpi ne, %1, %c0_i32_0 : i32
    scf.if %2 {
      %cst_177 = arith.constant 0.000000e+00 : f32
      %581 = vector.broadcast %cst_177 : f32 to vector<2x8x128xf32>
      %c0_178 = arith.constant 0 : index
      %c0_179 = arith.constant 0 : index
      %c0_180 = arith.constant 0 : index
      %582 = vector.load %arg11[%c0_178, %c0_179, %c0_180] : memref<2x8x128xf32, #tpu.memory_space<vmem>>, vector<2x8x128xf32>
      tpu.vector_store %arg11[%c0_178, %c0_179, %c0_180], %581 {strides = array<i32>} : memref<2x8x128xf32, #tpu.memory_space<vmem>>, vector<2x8x128xf32>,
      %cst_181 = arith.constant 0.000000e+00 : f32
      %583 = vector.broadcast %cst_181 : f32 to vector<2x8x128xf32>
      %c0_182 = arith.constant 0 : index
      %c0_183 = arith.constant 0 : index
      %c0_184 = arith.constant 0 : index
      %584 = vector.load %arg12[%c0_182, %c0_183, %c0_184] : memref<2x8x128xf32, #tpu.memory_space<vmem>>, vector<2x8x128xf32>
      tpu.vector_store %arg12[%c0_182, %c0_183, %c0_184], %583 {strides = array<i32>} : memref<2x8x128xf32, #tpu.memory_space<vmem>>, vector<2x8x128xf32>,
    } else {
    }
    %c0 = arith.constant 0 : index
    %c0_1 = arith.constant 0 : index
    %3 = vector.load %arg1[%c0, %c0_1] : memref<64x4xf32, #tpu.memory_space<vmem>>, vector<64x4xf32>
    %c0_2 = arith.constant 0 : index
    %c0_3 = arith.constant 0 : index
    %4 = vector.load %arg2[%c0_2, %c0_3] : memref<4x512xf32, #tpu.memory_space<vmem>>, vector<4x512xf32>
    %cst = arith.constant dense<0.000000e+00> : vector<64x512xf32>
    %5 = tpu.matmul %3, %4, %cst {dimension_numbers = #tpu.dot_dimension_numbers<[1], [0], [0], [1], [0, 0, 1, 1], [], []>} : vector<64x4xf32>, vector<4x512xf32>, vector<64x512xf32> -> vector<64x512xf32>
    %c0_4 = arith.constant 0 : index
    %c0_5 = arith.constant 0 : index
    %6 = vector.load %arg4[%c0_4, %c0_5] : memref<1x512xf32, #tpu.memory_space<vmem>>, vector<1x512xf32>
    %7 = vector.broadcast %6 : vector<1x512xf32> to vector<64x512xf32>
    %8 = arith.addf %5, %7 : vector<64x512xf32>
    %c0_6 = arith.constant 0 : index
    %c0_7 = arith.constant 0 : index
    %9 = vector.load %arg14[%c0_6, %c0_7] : memref<64x512xf32, #tpu.memory_space<vmem>>, vector<64x512xf32>
    tpu.vector_store %arg14[%c0_6, %c0_7], %8 {strides = array<i32>} : memref<64x512xf32, #tpu.memory_space<vmem>>, vector<64x512xf32>,
    %c0_8 = arith.constant 0 : index
    %c0_9 = arith.constant 0 : index
    %10 = vector.load %arg3[%c0_8, %c0_9] : memref<128x512xf32, #tpu.memory_space<vmem>>, vector<128x512xf32>
    %c0_10 = arith.constant 0 : index
    %c0_11 = arith.constant 0 : index
    %c0_12 = arith.constant 0 : index
    %11 = vector.load %arg11[%c0_10, %c0_11, %c0_12] : memref<2x8x128xf32, #tpu.memory_space<vmem>>, vector<1x8x128xf32>
    %12 = vector.shape_cast %11 : vector<1x8x128xf32> to vector<8x128xf32>
    %c0_13 = arith.constant 0 : index
    %c0_14 = arith.constant 0 : index
    %c0_15 = arith.constant 0 : index
    %13 = vector.load %arg12[%c0_13, %c0_14, %c0_15] : memref<2x8x128xf32, #tpu.memory_space<vmem>>, vector<1x8x128xf32>
    %14 = vector.shape_cast %13 : vector<1x8x128xf32> to vector<8x128xf32>
    %c0_i32_16 = arith.constant 0 : i32
    %c8_i32 = arith.constant 8 : i32
    %15 = arith.muli %c0_i32_16, %c8_i32 : i32
    %16 = tpu.assume_multiple %15, 8 : i32
    %17 = arith.index_cast %16 : i32 to index
    %c0_17 = arith.constant 0 : index
    %18 = vector.load %arg14[%17, %c0_17] : memref<64x512xf32, #tpu.memory_space<vmem>>, vector<8x512xf32>
    %cst_18 = arith.constant dense<0.000000e+00> : vector<8x512xf32>
    %19 = tpu.matmul %12, %10, %cst_18 {dimension_numbers = #tpu.dot_dimension_numbers<[1], [0], [0], [1], [0, 0, 1, 1], [], []>} : vector<8x128xf32>, vector<128x512xf32>, vector<8x512xf32> -> vector<8x512xf32>
    %20 = arith.addf %18, %19 : vector<8x512xf32>
    %21 = vector.extract_strided_slice %20 {offsets = [0, 0], sizes = [8, 128], strides = [1, 1]} : vector<8x512xf32> to vector<8x128xf32>
    %22 = arith.negf %21 : vector<8x128xf32>
    %23 = math.exp %22 : vector<8x128xf32>
    %cst_19 = arith.constant 1.000000e+00 : f32
    %24 = vector.broadcast %cst_19 : f32 to vector<8x128xf32>
    %25 = arith.addf %24, %23 : vector<8x128xf32>
    %26 = arith.divf %24, %25 : vector<8x128xf32>
    %27 = vector.extract_strided_slice %20 {offsets = [0, 128], sizes = [8, 128], strides = [1, 1]} : vector<8x512xf32> to vector<8x128xf32>
    %28 = arith.negf %27 : vector<8x128xf32>
    %29 = math.exp %28 : vector<8x128xf32>
    %cst_20 = arith.constant 1.000000e+00 : f32
    %30 = vector.broadcast %cst_20 : f32 to vector<8x128xf32>
    %31 = arith.addf %30, %29 : vector<8x128xf32>
    %32 = arith.divf %30, %31 : vector<8x128xf32>
    %33 = vector.extract_strided_slice %20 {offsets = [0, 256], sizes = [8, 128], strides = [1, 1]} : vector<8x512xf32> to vector<8x128xf32>
    %34 = math.tanh %33 : vector<8x128xf32>
    %35 = vector.extract_strided_slice %20 {offsets = [0, 384], sizes = [8, 128], strides = [1, 1]} : vector<8x512xf32> to vector<8x128xf32>
    %36 = arith.negf %35 : vector<8x128xf32>
    %37 = math.exp %36 : vector<8x128xf32>
    %cst_21 = arith.constant 1.000000e+00 : f32
    %38 = vector.broadcast %cst_21 : f32 to vector<8x128xf32>
    %39 = arith.addf %38, %37 : vector<8x128xf32>
    %40 = arith.divf %38, %39 : vector<8x128xf32>
    %41 = arith.mulf %32, %14 : vector<8x128xf32>
    %42 = arith.mulf %26, %34 : vector<8x128xf32>
    %43 = arith.addf %41, %42 : vector<8x128xf32>
    %44 = math.tanh %43 : vector<8x128xf32>
    %45 = arith.mulf %40, %44 : vector<8x128xf32>
    %46 = arith.index_cast %16 : i32 to index
    %c0_22 = arith.constant 0 : index
    %47 = vector.load %arg13[%46, %c0_22] : memref<64x128xf32, #tpu.memory_space<vmem>>, vector<8x128xf32>
    tpu.vector_store %arg13[%46, %c0_22], %45 {strides = array<i32>} : memref<64x128xf32, #tpu.memory_space<vmem>>, vector<8x128xf32>,
    %c1_i32 = arith.constant 1 : i32
    %c8_i32_23 = arith.constant 8 : i32
    %48 = arith.muli %c1_i32, %c8_i32_23 : i32
    %49 = tpu.assume_multiple %48, 8 : i32
    %50 = arith.index_cast %49 : i32 to index
    %c0_24 = arith.constant 0 : index
    %51 = vector.load %arg14[%50, %c0_24] : memref<64x512xf32, #tpu.memory_space<vmem>>, vector<8x512xf32>
    %cst_25 = arith.constant dense<0.000000e+00> : vector<8x512xf32>
    %52 = tpu.matmul %45, %10, %cst_25 {dimension_numbers = #tpu.dot_dimension_numbers<[1], [0], [0], [1], [0, 0, 1, 1], [], []>} : vector<8x128xf32>, vector<128x512xf32>, vector<8x512xf32> -> vector<8x512xf32>
    %53 = arith.addf %51, %52 : vector<8x512xf32>
    %54 = vector.extract_strided_slice %53 {offsets = [0, 0], sizes = [8, 128], strides = [1, 1]} : vector<8x512xf32> to vector<8x128xf32>
    %55 = arith.negf %54 : vector<8x128xf32>
    %56 = math.exp %55 : vector<8x128xf32>
    %cst_26 = arith.constant 1.000000e+00 : f32
    %57 = vector.broadcast %cst_26 : f32 to vector<8x128xf32>
    %58 = arith.addf %57, %56 : vector<8x128xf32>
    %59 = arith.divf %57, %58 : vector<8x128xf32>
    %60 = vector.extract_strided_slice %53 {offsets = [0, 128], sizes = [8, 128], strides = [1, 1]} : vector<8x512xf32> to vector<8x128xf32>
    %61 = arith.negf %60 : vector<8x128xf32>
    %62 = math.exp %61 : vector<8x128xf32>
    %cst_27 = arith.constant 1.000000e+00 : f32
    %63 = vector.broadcast %cst_27 : f32 to vector<8x128xf32>
    %64 = arith.addf %63, %62 : vector<8x128xf32>
    %65 = arith.divf %63, %64 : vector<8x128xf32>
    %66 = vector.extract_strided_slice %53 {offsets = [0, 256], sizes = [8, 128], strides = [1, 1]} : vector<8x512xf32> to vector<8x128xf32>
    %67 = math.tanh %66 : vector<8x128xf32>
    %68 = vector.extract_strided_slice %53 {offsets = [0, 384], sizes = [8, 128], strides = [1, 1]} : vector<8x512xf32> to vector<8x128xf32>
    %69 = arith.negf %68 : vector<8x128xf32>
    %70 = math.exp %69 : vector<8x128xf32>
    %cst_28 = arith.constant 1.000000e+00 : f32
    %71 = vector.broadcast %cst_28 : f32 to vector<8x128xf32>
    %72 = arith.addf %71, %70 : vector<8x128xf32>
    %73 = arith.divf %71, %72 : vector<8x128xf32>
    %74 = arith.mulf %65, %43 : vector<8x128xf32>
    %75 = arith.mulf %59, %67 : vector<8x128xf32>
    %76 = arith.addf %74, %75 : vector<8x128xf32>
    %77 = math.tanh %76 : vector<8x128xf32>
    %78 = arith.mulf %73, %77 : vector<8x128xf32>
    %79 = arith.index_cast %49 : i32 to index
    %c0_29 = arith.constant 0 : index
    %80 = vector.load %arg13[%79, %c0_29] : memref<64x128xf32, #tpu.memory_space<vmem>>, vector<8x128xf32>
    tpu.vector_store %arg13[%79, %c0_29], %78 {strides = array<i32>} : memref<64x128xf32, #tpu.memory_space<vmem>>, vector<8x128xf32>,
    %c2_i32 = arith.constant 2 : i32
    %c8_i32_30 = arith.constant 8 : i32
    %81 = arith.muli %c2_i32, %c8_i32_30 : i32
    %82 = tpu.assume_multiple %81, 8 : i32
    %83 = arith.index_cast %82 : i32 to index
    %c0_31 = arith.constant 0 : index
    %84 = vector.load %arg14[%83, %c0_31] : memref<64x512xf32, #tpu.memory_space<vmem>>, vector<8x512xf32>
    %cst_32 = arith.constant dense<0.000000e+00> : vector<8x512xf32>
    %85 = tpu.matmul %78, %10, %cst_32 {dimension_numbers = #tpu.dot_dimension_numbers<[1], [0], [0], [1], [0, 0, 1, 1], [], []>} : vector<8x128xf32>, vector<128x512xf32>, vector<8x512xf32> -> vector<8x512xf32>
    %86 = arith.addf %84, %85 : vector<8x512xf32>
    %87 = vector.extract_strided_slice %86 {offsets = [0, 0], sizes = [8, 128], strides = [1, 1]} : vector<8x512xf32> to vector<8x128xf32>
    %88 = arith.negf %87 : vector<8x128xf32>
    %89 = math.exp %88 : vector<8x128xf32>
    %cst_33 = arith.constant 1.000000e+00 : f32
    %90 = vector.broadcast %cst_33 : f32 to vector<8x128xf32>
    %91 = arith.addf %90, %89 : vector<8x128xf32>
    %92 = arith.divf %90, %91 : vector<8x128xf32>
    %93 = vector.extract_strided_slice %86 {offsets = [0, 128], sizes = [8, 128], strides = [1, 1]} : vector<8x512xf32> to vector<8x128xf32>
    %94 = arith.negf %93 : vector<8x128xf32>
    %95 = math.exp %94 : vector<8x128xf32>
    %cst_34 = arith.constant 1.000000e+00 : f32
    %96 = vector.broadcast %cst_34 : f32 to vector<8x128xf32>
    %97 = arith.addf %96, %95 : vector<8x128xf32>
    %98 = arith.divf %96, %97 : vector<8x128xf32>
    %99 = vector.extract_strided_slice %86 {offsets = [0, 256], sizes = [8, 128], strides = [1, 1]} : vector<8x512xf32> to vector<8x128xf32>
    %100 = math.tanh %99 : vector<8x128xf32>
    %101 = vector.extract_strided_slice %86 {offsets = [0, 384], sizes = [8, 128], strides = [1, 1]} : vector<8x512xf32> to vector<8x128xf32>
    %102 = arith.negf %101 : vector<8x128xf32>
    %103 = math.exp %102 : vector<8x128xf32>
    %cst_35 = arith.constant 1.000000e+00 : f32
    %104 = vector.broadcast %cst_35 : f32 to vector<8x128xf32>
    %105 = arith.addf %104, %103 : vector<8x128xf32>
    %106 = arith.divf %104, %105 : vector<8x128xf32>
    %107 = arith.mulf %98, %76 : vector<8x128xf32>
    %108 = arith.mulf %92, %100 : vector<8x128xf32>
    %109 = arith.addf %107, %108 : vector<8x128xf32>
    %110 = math.tanh %109 : vector<8x128xf32>
    %111 = arith.mulf %106, %110 : vector<8x128xf32>
    %112 = arith.index_cast %82 : i32 to index
    %c0_36 = arith.constant 0 : index
    %113 = vector.load %arg13[%112, %c0_36] : memref<64x128xf32, #tpu.memory_space<vmem>>, vector<8x128xf32>
    tpu.vector_store %arg13[%112, %c0_36], %111 {strides = array<i32>} : memref<64x128xf32, #tpu.memory_space<vmem>>, vector<8x128xf32>,
    %c3_i32 = arith.constant 3 : i32
    %c8_i32_37 = arith.constant 8 : i32
    %114 = arith.muli %c3_i32, %c8_i32_37 : i32
    %115 = tpu.assume_multiple %114, 8 : i32
    %116 = arith.index_cast %115 : i32 to index
    %c0_38 = arith.constant 0 : index
    %117 = vector.load %arg14[%116, %c0_38] : memref<64x512xf32, #tpu.memory_space<vmem>>, vector<8x512xf32>
    %cst_39 = arith.constant dense<0.000000e+00> : vector<8x512xf32>
    %118 = tpu.matmul %111, %10, %cst_39 {dimension_numbers = #tpu.dot_dimension_numbers<[1], [0], [0], [1], [0, 0, 1, 1], [], []>} : vector<8x128xf32>, vector<128x512xf32>, vector<8x512xf32> -> vector<8x512xf32>
    %119 = arith.addf %117, %118 : vector<8x512xf32>
    %120 = vector.extract_strided_slice %119 {offsets = [0, 0], sizes = [8, 128], strides = [1, 1]} : vector<8x512xf32> to vector<8x128xf32>
    %121 = arith.negf %120 : vector<8x128xf32>
    %122 = math.exp %121 : vector<8x128xf32>
    %cst_40 = arith.constant 1.000000e+00 : f32
    %123 = vector.broadcast %cst_40 : f32 to vector<8x128xf32>
    %124 = arith.addf %123, %122 : vector<8x128xf32>
    %125 = arith.divf %123, %124 : vector<8x128xf32>
    %126 = vector.extract_strided_slice %119 {offsets = [0, 128], sizes = [8, 128], strides = [1, 1]} : vector<8x512xf32> to vector<8x128xf32>
    %127 = arith.negf %126 : vector<8x128xf32>
    %128 = math.exp %127 : vector<8x128xf32>
    %cst_41 = arith.constant 1.000000e+00 : f32
    %129 = vector.broadcast %cst_41 : f32 to vector<8x128xf32>
    %130 = arith.addf %129, %128 : vector<8x128xf32>
    %131 = arith.divf %129, %130 : vector<8x128xf32>
    %132 = vector.extract_strided_slice %119 {offsets = [0, 256], sizes = [8, 128], strides = [1, 1]} : vector<8x512xf32> to vector<8x128xf32>
    %133 = math.tanh %132 : vector<8x128xf32>
    %134 = vector.extract_strided_slice %119 {offsets = [0, 384], sizes = [8, 128], strides = [1, 1]} : vector<8x512xf32> to vector<8x128xf32>
    %135 = arith.negf %134 : vector<8x128xf32>
    %136 = math.exp %135 : vector<8x128xf32>
    %cst_42 = arith.constant 1.000000e+00 : f32
    %137 = vector.broadcast %cst_42 : f32 to vector<8x128xf32>
    %138 = arith.addf %137, %136 : vector<8x128xf32>
    %139 = arith.divf %137, %138 : vector<8x128xf32>
    %140 = arith.mulf %131, %109 : vector<8x128xf32>
    %141 = arith.mulf %125, %133 : vector<8x128xf32>
    %142 = arith.addf %140, %141 : vector<8x128xf32>
    %143 = math.tanh %142 : vector<8x128xf32>
    %144 = arith.mulf %139, %143 : vector<8x128xf32>
    %145 = arith.index_cast %115 : i32 to index
    %c0_43 = arith.constant 0 : index
    %146 = vector.load %arg13[%145, %c0_43] : memref<64x128xf32, #tpu.memory_space<vmem>>, vector<8x128xf32>
    tpu.vector_store %arg13[%145, %c0_43], %144 {strides = array<i32>} : memref<64x128xf32, #tpu.memory_space<vmem>>, vector<8x128xf32>,
    %c4_i32 = arith.constant 4 : i32
    %c8_i32_44 = arith.constant 8 : i32
    %147 = arith.muli %c4_i32, %c8_i32_44 : i32
    %148 = tpu.assume_multiple %147, 8 : i32
    %149 = arith.index_cast %148 : i32 to index
    %c0_45 = arith.constant 0 : index
    %150 = vector.load %arg14[%149, %c0_45] : memref<64x512xf32, #tpu.memory_space<vmem>>, vector<8x512xf32>
    %cst_46 = arith.constant dense<0.000000e+00> : vector<8x512xf32>
    %151 = tpu.matmul %144, %10, %cst_46 {dimension_numbers = #tpu.dot_dimension_numbers<[1], [0], [0], [1], [0, 0, 1, 1], [], []>} : vector<8x128xf32>, vector<128x512xf32>, vector<8x512xf32> -> vector<8x512xf32>
    %152 = arith.addf %150, %151 : vector<8x512xf32>
    %153 = vector.extract_strided_slice %152 {offsets = [0, 0], sizes = [8, 128], strides = [1, 1]} : vector<8x512xf32> to vector<8x128xf32>
    %154 = arith.negf %153 : vector<8x128xf32>
    %155 = math.exp %154 : vector<8x128xf32>
    %cst_47 = arith.constant 1.000000e+00 : f32
    %156 = vector.broadcast %cst_47 : f32 to vector<8x128xf32>
    %157 = arith.addf %156, %155 : vector<8x128xf32>
    %158 = arith.divf %156, %157 : vector<8x128xf32>
    %159 = vector.extract_strided_slice %152 {offsets = [0, 128], sizes = [8, 128], strides = [1, 1]} : vector<8x512xf32> to vector<8x128xf32>
    %160 = arith.negf %159 : vector<8x128xf32>
    %161 = math.exp %160 : vector<8x128xf32>
    %cst_48 = arith.constant 1.000000e+00 : f32
    %162 = vector.broadcast %cst_48 : f32 to vector<8x128xf32>
    %163 = arith.addf %162, %161 : vector<8x128xf32>
    %164 = arith.divf %162, %163 : vector<8x128xf32>
    %165 = vector.extract_strided_slice %152 {offsets = [0, 256], sizes = [8, 128], strides = [1, 1]} : vector<8x512xf32> to vector<8x128xf32>
    %166 = math.tanh %165 : vector<8x128xf32>
    %167 = vector.extract_strided_slice %152 {offsets = [0, 384], sizes = [8, 128], strides = [1, 1]} : vector<8x512xf32> to vector<8x128xf32>
    %168 = arith.negf %167 : vector<8x128xf32>
    %169 = math.exp %168 : vector<8x128xf32>
    %cst_49 = arith.constant 1.000000e+00 : f32
    %170 = vector.broadcast %cst_49 : f32 to vector<8x128xf32>
    %171 = arith.addf %170, %169 : vector<8x128xf32>
    %172 = arith.divf %170, %171 : vector<8x128xf32>
    %173 = arith.mulf %164, %142 : vector<8x128xf32>
    %174 = arith.mulf %158, %166 : vector<8x128xf32>
    %175 = arith.addf %173, %174 : vector<8x128xf32>
    %176 = math.tanh %175 : vector<8x128xf32>
    %177 = arith.mulf %172, %176 : vector<8x128xf32>
    %178 = arith.index_cast %148 : i32 to index
    %c0_50 = arith.constant 0 : index
    %179 = vector.load %arg13[%178, %c0_50] : memref<64x128xf32, #tpu.memory_space<vmem>>, vector<8x128xf32>
    tpu.vector_store %arg13[%178, %c0_50], %177 {strides = array<i32>} : memref<64x128xf32, #tpu.memory_space<vmem>>, vector<8x128xf32>,
    %c5_i32 = arith.constant 5 : i32
    %c8_i32_51 = arith.constant 8 : i32
    %180 = arith.muli %c5_i32, %c8_i32_51 : i32
    %181 = tpu.assume_multiple %180, 8 : i32
    %182 = arith.index_cast %181 : i32 to index
    %c0_52 = arith.constant 0 : index
    %183 = vector.load %arg14[%182, %c0_52] : memref<64x512xf32, #tpu.memory_space<vmem>>, vector<8x512xf32>
    %cst_53 = arith.constant dense<0.000000e+00> : vector<8x512xf32>
    %184 = tpu.matmul %177, %10, %cst_53 {dimension_numbers = #tpu.dot_dimension_numbers<[1], [0], [0], [1], [0, 0, 1, 1], [], []>} : vector<8x128xf32>, vector<128x512xf32>, vector<8x512xf32> -> vector<8x512xf32>
    %185 = arith.addf %183, %184 : vector<8x512xf32>
    %186 = vector.extract_strided_slice %185 {offsets = [0, 0], sizes = [8, 128], strides = [1, 1]} : vector<8x512xf32> to vector<8x128xf32>
    %187 = arith.negf %186 : vector<8x128xf32>
    %188 = math.exp %187 : vector<8x128xf32>
    %cst_54 = arith.constant 1.000000e+00 : f32
    %189 = vector.broadcast %cst_54 : f32 to vector<8x128xf32>
    %190 = arith.addf %189, %188 : vector<8x128xf32>
    %191 = arith.divf %189, %190 : vector<8x128xf32>
    %192 = vector.extract_strided_slice %185 {offsets = [0, 128], sizes = [8, 128], strides = [1, 1]} : vector<8x512xf32> to vector<8x128xf32>
    %193 = arith.negf %192 : vector<8x128xf32>
    %194 = math.exp %193 : vector<8x128xf32>
    %cst_55 = arith.constant 1.000000e+00 : f32
    %195 = vector.broadcast %cst_55 : f32 to vector<8x128xf32>
    %196 = arith.addf %195, %194 : vector<8x128xf32>
    %197 = arith.divf %195, %196 : vector<8x128xf32>
    %198 = vector.extract_strided_slice %185 {offsets = [0, 256], sizes = [8, 128], strides = [1, 1]} : vector<8x512xf32> to vector<8x128xf32>
    %199 = math.tanh %198 : vector<8x128xf32>
    %200 = vector.extract_strided_slice %185 {offsets = [0, 384], sizes = [8, 128], strides = [1, 1]} : vector<8x512xf32> to vector<8x128xf32>
    %201 = arith.negf %200 : vector<8x128xf32>
    %202 = math.exp %201 : vector<8x128xf32>
    %cst_56 = arith.constant 1.000000e+00 : f32
    %203 = vector.broadcast %cst_56 : f32 to vector<8x128xf32>
    %204 = arith.addf %203, %202 : vector<8x128xf32>
    %205 = arith.divf %203, %204 : vector<8x128xf32>
    %206 = arith.mulf %197, %175 : vector<8x128xf32>
    %207 = arith.mulf %191, %199 : vector<8x128xf32>
    %208 = arith.addf %206, %207 : vector<8x128xf32>
    %209 = math.tanh %208 : vector<8x128xf32>
    %210 = arith.mulf %205, %209 : vector<8x128xf32>
    %211 = arith.index_cast %181 : i32 to index
    %c0_57 = arith.constant 0 : index
    %212 = vector.load %arg13[%211, %c0_57] : memref<64x128xf32, #tpu.memory_space<vmem>>, vector<8x128xf32>
    tpu.vector_store %arg13[%211, %c0_57], %210 {strides = array<i32>} : memref<64x128xf32, #tpu.memory_space<vmem>>, vector<8x128xf32>,
    %c6_i32 = arith.constant 6 : i32
    %c8_i32_58 = arith.constant 8 : i32
    %213 = arith.muli %c6_i32, %c8_i32_58 : i32
    %214 = tpu.assume_multiple %213, 8 : i32
    %215 = arith.index_cast %214 : i32 to index
    %c0_59 = arith.constant 0 : index
    %216 = vector.load %arg14[%215, %c0_59] : memref<64x512xf32, #tpu.memory_space<vmem>>, vector<8x512xf32>
    %cst_60 = arith.constant dense<0.000000e+00> : vector<8x512xf32>
    %217 = tpu.matmul %210, %10, %cst_60 {dimension_numbers = #tpu.dot_dimension_numbers<[1], [0], [0], [1], [0, 0, 1, 1], [], []>} : vector<8x128xf32>, vector<128x512xf32>, vector<8x512xf32> -> vector<8x512xf32>
    %218 = arith.addf %216, %217 : vector<8x512xf32>
    %219 = vector.extract_strided_slice %218 {offsets = [0, 0], sizes = [8, 128], strides = [1, 1]} : vector<8x512xf32> to vector<8x128xf32>
    %220 = arith.negf %219 : vector<8x128xf32>
    %221 = math.exp %220 : vector<8x128xf32>
    %cst_61 = arith.constant 1.000000e+00 : f32
    %222 = vector.broadcast %cst_61 : f32 to vector<8x128xf32>
    %223 = arith.addf %222, %221 : vector<8x128xf32>
    %224 = arith.divf %222, %223 : vector<8x128xf32>
    %225 = vector.extract_strided_slice %218 {offsets = [0, 128], sizes = [8, 128], strides = [1, 1]} : vector<8x512xf32> to vector<8x128xf32>
    %226 = arith.negf %225 : vector<8x128xf32>
    %227 = math.exp %226 : vector<8x128xf32>
    %cst_62 = arith.constant 1.000000e+00 : f32
    %228 = vector.broadcast %cst_62 : f32 to vector<8x128xf32>
    %229 = arith.addf %228, %227 : vector<8x128xf32>
    %230 = arith.divf %228, %229 : vector<8x128xf32>
    %231 = vector.extract_strided_slice %218 {offsets = [0, 256], sizes = [8, 128], strides = [1, 1]} : vector<8x512xf32> to vector<8x128xf32>
    %232 = math.tanh %231 : vector<8x128xf32>
    %233 = vector.extract_strided_slice %218 {offsets = [0, 384], sizes = [8, 128], strides = [1, 1]} : vector<8x512xf32> to vector<8x128xf32>
    %234 = arith.negf %233 : vector<8x128xf32>
    %235 = math.exp %234 : vector<8x128xf32>
    %cst_63 = arith.constant 1.000000e+00 : f32
    %236 = vector.broadcast %cst_63 : f32 to vector<8x128xf32>
    %237 = arith.addf %236, %235 : vector<8x128xf32>
    %238 = arith.divf %236, %237 : vector<8x128xf32>
    %239 = arith.mulf %230, %208 : vector<8x128xf32>
    %240 = arith.mulf %224, %232 : vector<8x128xf32>
    %241 = arith.addf %239, %240 : vector<8x128xf32>
    %242 = math.tanh %241 : vector<8x128xf32>
    %243 = arith.mulf %238, %242 : vector<8x128xf32>
    %244 = arith.index_cast %214 : i32 to index
    %c0_64 = arith.constant 0 : index
    %245 = vector.load %arg13[%244, %c0_64] : memref<64x128xf32, #tpu.memory_space<vmem>>, vector<8x128xf32>
    tpu.vector_store %arg13[%244, %c0_64], %243 {strides = array<i32>} : memref<64x128xf32, #tpu.memory_space<vmem>>, vector<8x128xf32>,
    %c7_i32 = arith.constant 7 : i32
    %c8_i32_65 = arith.constant 8 : i32
    %246 = arith.muli %c7_i32, %c8_i32_65 : i32
    %247 = tpu.assume_multiple %246, 8 : i32
    %248 = arith.index_cast %247 : i32 to index
    %c0_66 = arith.constant 0 : index
    %249 = vector.load %arg14[%248, %c0_66] : memref<64x512xf32, #tpu.memory_space<vmem>>, vector<8x512xf32>
    %cst_67 = arith.constant dense<0.000000e+00> : vector<8x512xf32>
    %250 = tpu.matmul %243, %10, %cst_67 {dimension_numbers = #tpu.dot_dimension_numbers<[1], [0], [0], [1], [0, 0, 1, 1], [], []>} : vector<8x128xf32>, vector<128x512xf32>, vector<8x512xf32> -> vector<8x512xf32>
    %251 = arith.addf %249, %250 : vector<8x512xf32>
    %252 = vector.extract_strided_slice %251 {offsets = [0, 0], sizes = [8, 128], strides = [1, 1]} : vector<8x512xf32> to vector<8x128xf32>
    %253 = arith.negf %252 : vector<8x128xf32>
    %254 = math.exp %253 : vector<8x128xf32>
    %cst_68 = arith.constant 1.000000e+00 : f32
    %255 = vector.broadcast %cst_68 : f32 to vector<8x128xf32>
    %256 = arith.addf %255, %254 : vector<8x128xf32>
    %257 = arith.divf %255, %256 : vector<8x128xf32>
    %258 = vector.extract_strided_slice %251 {offsets = [0, 128], sizes = [8, 128], strides = [1, 1]} : vector<8x512xf32> to vector<8x128xf32>
    %259 = arith.negf %258 : vector<8x128xf32>
    %260 = math.exp %259 : vector<8x128xf32>
    %cst_69 = arith.constant 1.000000e+00 : f32
    %261 = vector.broadcast %cst_69 : f32 to vector<8x128xf32>
    %262 = arith.addf %261, %260 : vector<8x128xf32>
    %263 = arith.divf %261, %262 : vector<8x128xf32>
    %264 = vector.extract_strided_slice %251 {offsets = [0, 256], sizes = [8, 128], strides = [1, 1]} : vector<8x512xf32> to vector<8x128xf32>
    %265 = math.tanh %264 : vector<8x128xf32>
    %266 = vector.extract_strided_slice %251 {offsets = [0, 384], sizes = [8, 128], strides = [1, 1]} : vector<8x512xf32> to vector<8x128xf32>
    %267 = arith.negf %266 : vector<8x128xf32>
    %268 = math.exp %267 : vector<8x128xf32>
    %cst_70 = arith.constant 1.000000e+00 : f32
    %269 = vector.broadcast %cst_70 : f32 to vector<8x128xf32>
    %270 = arith.addf %269, %268 : vector<8x128xf32>
    %271 = arith.divf %269, %270 : vector<8x128xf32>
    %272 = arith.mulf %263, %241 : vector<8x128xf32>
    %273 = arith.mulf %257, %265 : vector<8x128xf32>
    %274 = arith.addf %272, %273 : vector<8x128xf32>
    %275 = math.tanh %274 : vector<8x128xf32>
    %276 = arith.mulf %271, %275 : vector<8x128xf32>
    %277 = arith.index_cast %247 : i32 to index
    %c0_71 = arith.constant 0 : index
    %278 = vector.load %arg13[%277, %c0_71] : memref<64x128xf32, #tpu.memory_space<vmem>>, vector<8x128xf32>
    tpu.vector_store %arg13[%277, %c0_71], %276 {strides = array<i32>} : memref<64x128xf32, #tpu.memory_space<vmem>>, vector<8x128xf32>,
    %c8_i32_72 = arith.constant 8 : i32
    %c0_73 = arith.constant 0 : index
    %c0_74 = arith.constant 0 : index
    %c0_75 = arith.constant 0 : index
    %279 = vector.load %arg11[%c0_73, %c0_74, %c0_75] : memref<2x8x128xf32, #tpu.memory_space<vmem>>, vector<1x8x128xf32>
    %280 = vector.shape_cast %279 : vector<1x8x128xf32> to vector<8x128xf32>
    %281 = vector.shape_cast %276 : vector<8x128xf32> to vector<1x8x128xf32>
    tpu.vector_store %arg11[%c0_73, %c0_74, %c0_75], %281 {strides = array<i32>} : memref<2x8x128xf32, #tpu.memory_space<vmem>>, vector<1x8x128xf32>,
    %c0_76 = arith.constant 0 : index
    %c0_77 = arith.constant 0 : index
    %c0_78 = arith.constant 0 : index
    %282 = vector.load %arg12[%c0_76, %c0_77, %c0_78] : memref<2x8x128xf32, #tpu.memory_space<vmem>>, vector<1x8x128xf32>
    %283 = vector.shape_cast %282 : vector<1x8x128xf32> to vector<8x128xf32>
    %284 = vector.shape_cast %274 : vector<8x128xf32> to vector<1x8x128xf32>
    tpu.vector_store %arg12[%c0_76, %c0_77, %c0_78], %284 {strides = array<i32>} : memref<2x8x128xf32, #tpu.memory_space<vmem>>, vector<1x8x128xf32>,
    %c0_79 = arith.constant 0 : index
    %c0_80 = arith.constant 0 : index
    %285 = vector.load %arg13[%c0_79, %c0_80] : memref<64x128xf32, #tpu.memory_space<vmem>>, vector<64x128xf32>
    %c0_81 = arith.constant 0 : index
    %c0_82 = arith.constant 0 : index
    %286 = vector.load %arg5[%c0_81, %c0_82] : memref<128x512xf32, #tpu.memory_space<vmem>>, vector<128x512xf32>
    %cst_83 = arith.constant dense<0.000000e+00> : vector<64x512xf32>
    %287 = tpu.matmul %285, %286, %cst_83 {dimension_numbers = #tpu.dot_dimension_numbers<[1], [0], [0], [1], [0, 0, 1, 1], [], []>} : vector<64x128xf32>, vector<128x512xf32>, vector<64x512xf32> -> vector<64x512xf32>
    %c0_84 = arith.constant 0 : index
    %c0_85 = arith.constant 0 : index
    %288 = vector.load %arg7[%c0_84, %c0_85] : memref<1x512xf32, #tpu.memory_space<vmem>>, vector<1x512xf32>
    %289 = vector.broadcast %288 : vector<1x512xf32> to vector<64x512xf32>
    %290 = arith.addf %287, %289 : vector<64x512xf32>
    %c0_86 = arith.constant 0 : index
    %c0_87 = arith.constant 0 : index
    %291 = vector.load %arg14[%c0_86, %c0_87] : memref<64x512xf32, #tpu.memory_space<vmem>>, vector<64x512xf32>
    tpu.vector_store %arg14[%c0_86, %c0_87], %290 {strides = array<i32>} : memref<64x512xf32, #tpu.memory_space<vmem>>, vector<64x512xf32>,
    %c0_88 = arith.constant 0 : index
    %c0_89 = arith.constant 0 : index
    %292 = vector.load %arg6[%c0_88, %c0_89] : memref<128x512xf32, #tpu.memory_space<vmem>>, vector<128x512xf32>
    %c1 = arith.constant 1 : index
    %c0_90 = arith.constant 0 : index
    %c0_91 = arith.constant 0 : index
    %293 = vector.load %arg11[%c1, %c0_90, %c0_91] : memref<2x8x128xf32, #tpu.memory_space<vmem>>, vector<1x8x128xf32>
    %294 = vector.shape_cast %293 : vector<1x8x128xf32> to vector<8x128xf32>
    %c1_92 = arith.constant 1 : index
    %c0_93 = arith.constant 0 : index
    %c0_94 = arith.constant 0 : index
    %295 = vector.load %arg12[%c1_92, %c0_93, %c0_94] : memref<2x8x128xf32, #tpu.memory_space<vmem>>, vector<1x8x128xf32>
    %296 = vector.shape_cast %295 : vector<1x8x128xf32> to vector<8x128xf32>
    %c0_i32_95 = arith.constant 0 : i32
    %c8_i32_96 = arith.constant 8 : i32
    %297 = arith.muli %c0_i32_95, %c8_i32_96 : i32
    %298 = tpu.assume_multiple %297, 8 : i32
    %299 = arith.index_cast %298 : i32 to index
    %c0_97 = arith.constant 0 : index
    %300 = vector.load %arg14[%299, %c0_97] : memref<64x512xf32, #tpu.memory_space<vmem>>, vector<8x512xf32>
    %cst_98 = arith.constant dense<0.000000e+00> : vector<8x512xf32>
    %301 = tpu.matmul %294, %292, %cst_98 {dimension_numbers = #tpu.dot_dimension_numbers<[1], [0], [0], [1], [0, 0, 1, 1], [], []>} : vector<8x128xf32>, vector<128x512xf32>, vector<8x512xf32> -> vector<8x512xf32>
    %302 = arith.addf %300, %301 : vector<8x512xf32>
    %303 = vector.extract_strided_slice %302 {offsets = [0, 0], sizes = [8, 128], strides = [1, 1]} : vector<8x512xf32> to vector<8x128xf32>
    %304 = arith.negf %303 : vector<8x128xf32>
    %305 = math.exp %304 : vector<8x128xf32>
    %cst_99 = arith.constant 1.000000e+00 : f32
    %306 = vector.broadcast %cst_99 : f32 to vector<8x128xf32>
    %307 = arith.addf %306, %305 : vector<8x128xf32>
    %308 = arith.divf %306, %307 : vector<8x128xf32>
    %309 = vector.extract_strided_slice %302 {offsets = [0, 128], sizes = [8, 128], strides = [1, 1]} : vector<8x512xf32> to vector<8x128xf32>
    %310 = arith.negf %309 : vector<8x128xf32>
    %311 = math.exp %310 : vector<8x128xf32>
    %cst_100 = arith.constant 1.000000e+00 : f32
    %312 = vector.broadcast %cst_100 : f32 to vector<8x128xf32>
    %313 = arith.addf %312, %311 : vector<8x128xf32>
    %314 = arith.divf %312, %313 : vector<8x128xf32>
    %315 = vector.extract_strided_slice %302 {offsets = [0, 256], sizes = [8, 128], strides = [1, 1]} : vector<8x512xf32> to vector<8x128xf32>
    %316 = math.tanh %315 : vector<8x128xf32>
    %317 = vector.extract_strided_slice %302 {offsets = [0, 384], sizes = [8, 128], strides = [1, 1]} : vector<8x512xf32> to vector<8x128xf32>
    %318 = arith.negf %317 : vector<8x128xf32>
    %319 = math.exp %318 : vector<8x128xf32>
    %cst_101 = arith.constant 1.000000e+00 : f32
    %320 = vector.broadcast %cst_101 : f32 to vector<8x128xf32>
    %321 = arith.addf %320, %319 : vector<8x128xf32>
    %322 = arith.divf %320, %321 : vector<8x128xf32>
    %323 = arith.mulf %314, %296 : vector<8x128xf32>
    %324 = arith.mulf %308, %316 : vector<8x128xf32>
    %325 = arith.addf %323, %324 : vector<8x128xf32>
    %326 = math.tanh %325 : vector<8x128xf32>
    %327 = arith.mulf %322, %326 : vector<8x128xf32>
    %328 = arith.index_cast %298 : i32 to index
    %c0_102 = arith.constant 0 : index
    %329 = vector.load %arg13[%328, %c0_102] : memref<64x128xf32, #tpu.memory_space<vmem>>, vector<8x128xf32>
    tpu.vector_store %arg13[%328, %c0_102], %327 {strides = array<i32>} : memref<64x128xf32, #tpu.memory_space<vmem>>, vector<8x128xf32>,
    %c1_i32_103 = arith.constant 1 : i32
    %c8_i32_104 = arith.constant 8 : i32
    %330 = arith.muli %c1_i32_103, %c8_i32_104 : i32
    %331 = tpu.assume_multiple %330, 8 : i32
    %332 = arith.index_cast %331 : i32 to index
    %c0_105 = arith.constant 0 : index
    %333 = vector.load %arg14[%332, %c0_105] : memref<64x512xf32, #tpu.memory_space<vmem>>, vector<8x512xf32>
    %cst_106 = arith.constant dense<0.000000e+00> : vector<8x512xf32>
    %334 = tpu.matmul %327, %292, %cst_106 {dimension_numbers = #tpu.dot_dimension_numbers<[1], [0], [0], [1], [0, 0, 1, 1], [], []>} : vector<8x128xf32>, vector<128x512xf32>, vector<8x512xf32> -> vector<8x512xf32>
    %335 = arith.addf %333, %334 : vector<8x512xf32>
    %336 = vector.extract_strided_slice %335 {offsets = [0, 0], sizes = [8, 128], strides = [1, 1]} : vector<8x512xf32> to vector<8x128xf32>
    %337 = arith.negf %336 : vector<8x128xf32>
    %338 = math.exp %337 : vector<8x128xf32>
    %cst_107 = arith.constant 1.000000e+00 : f32
    %339 = vector.broadcast %cst_107 : f32 to vector<8x128xf32>
    %340 = arith.addf %339, %338 : vector<8x128xf32>
    %341 = arith.divf %339, %340 : vector<8x128xf32>
    %342 = vector.extract_strided_slice %335 {offsets = [0, 128], sizes = [8, 128], strides = [1, 1]} : vector<8x512xf32> to vector<8x128xf32>
    %343 = arith.negf %342 : vector<8x128xf32>
    %344 = math.exp %343 : vector<8x128xf32>
    %cst_108 = arith.constant 1.000000e+00 : f32
    %345 = vector.broadcast %cst_108 : f32 to vector<8x128xf32>
    %346 = arith.addf %345, %344 : vector<8x128xf32>
    %347 = arith.divf %345, %346 : vector<8x128xf32>
    %348 = vector.extract_strided_slice %335 {offsets = [0, 256], sizes = [8, 128], strides = [1, 1]} : vector<8x512xf32> to vector<8x128xf32>
    %349 = math.tanh %348 : vector<8x128xf32>
    %350 = vector.extract_strided_slice %335 {offsets = [0, 384], sizes = [8, 128], strides = [1, 1]} : vector<8x512xf32> to vector<8x128xf32>
    %351 = arith.negf %350 : vector<8x128xf32>
    %352 = math.exp %351 : vector<8x128xf32>
    %cst_109 = arith.constant 1.000000e+00 : f32
    %353 = vector.broadcast %cst_109 : f32 to vector<8x128xf32>
    %354 = arith.addf %353, %352 : vector<8x128xf32>
    %355 = arith.divf %353, %354 : vector<8x128xf32>
    %356 = arith.mulf %347, %325 : vector<8x128xf32>
    %357 = arith.mulf %341, %349 : vector<8x128xf32>
    %358 = arith.addf %356, %357 : vector<8x128xf32>
    %359 = math.tanh %358 : vector<8x128xf32>
    %360 = arith.mulf %355, %359 : vector<8x128xf32>
    %361 = arith.index_cast %331 : i32 to index
    %c0_110 = arith.constant 0 : index
    %362 = vector.load %arg13[%361, %c0_110] : memref<64x128xf32, #tpu.memory_space<vmem>>, vector<8x128xf32>
    tpu.vector_store %arg13[%361, %c0_110], %360 {strides = array<i32>} : memref<64x128xf32, #tpu.memory_space<vmem>>, vector<8x128xf32>,
    %c2_i32_111 = arith.constant 2 : i32
    %c8_i32_112 = arith.constant 8 : i32
    %363 = arith.muli %c2_i32_111, %c8_i32_112 : i32
    %364 = tpu.assume_multiple %363, 8 : i32
    %365 = arith.index_cast %364 : i32 to index
    %c0_113 = arith.constant 0 : index
    %366 = vector.load %arg14[%365, %c0_113] : memref<64x512xf32, #tpu.memory_space<vmem>>, vector<8x512xf32>
    %cst_114 = arith.constant dense<0.000000e+00> : vector<8x512xf32>
    %367 = tpu.matmul %360, %292, %cst_114 {dimension_numbers = #tpu.dot_dimension_numbers<[1], [0], [0], [1], [0, 0, 1, 1], [], []>} : vector<8x128xf32>, vector<128x512xf32>, vector<8x512xf32> -> vector<8x512xf32>
    %368 = arith.addf %366, %367 : vector<8x512xf32>
    %369 = vector.extract_strided_slice %368 {offsets = [0, 0], sizes = [8, 128], strides = [1, 1]} : vector<8x512xf32> to vector<8x128xf32>
    %370 = arith.negf %369 : vector<8x128xf32>
    %371 = math.exp %370 : vector<8x128xf32>
    %cst_115 = arith.constant 1.000000e+00 : f32
    %372 = vector.broadcast %cst_115 : f32 to vector<8x128xf32>
    %373 = arith.addf %372, %371 : vector<8x128xf32>
    %374 = arith.divf %372, %373 : vector<8x128xf32>
    %375 = vector.extract_strided_slice %368 {offsets = [0, 128], sizes = [8, 128], strides = [1, 1]} : vector<8x512xf32> to vector<8x128xf32>
    %376 = arith.negf %375 : vector<8x128xf32>
    %377 = math.exp %376 : vector<8x128xf32>
    %cst_116 = arith.constant 1.000000e+00 : f32
    %378 = vector.broadcast %cst_116 : f32 to vector<8x128xf32>
    %379 = arith.addf %378, %377 : vector<8x128xf32>
    %380 = arith.divf %378, %379 : vector<8x128xf32>
    %381 = vector.extract_strided_slice %368 {offsets = [0, 256], sizes = [8, 128], strides = [1, 1]} : vector<8x512xf32> to vector<8x128xf32>
    %382 = math.tanh %381 : vector<8x128xf32>
    %383 = vector.extract_strided_slice %368 {offsets = [0, 384], sizes = [8, 128], strides = [1, 1]} : vector<8x512xf32> to vector<8x128xf32>
    %384 = arith.negf %383 : vector<8x128xf32>
    %385 = math.exp %384 : vector<8x128xf32>
    %cst_117 = arith.constant 1.000000e+00 : f32
    %386 = vector.broadcast %cst_117 : f32 to vector<8x128xf32>
    %387 = arith.addf %386, %385 : vector<8x128xf32>
    %388 = arith.divf %386, %387 : vector<8x128xf32>
    %389 = arith.mulf %380, %358 : vector<8x128xf32>
    %390 = arith.mulf %374, %382 : vector<8x128xf32>
    %391 = arith.addf %389, %390 : vector<8x128xf32>
    %392 = math.tanh %391 : vector<8x128xf32>
    %393 = arith.mulf %388, %392 : vector<8x128xf32>
    %394 = arith.index_cast %364 : i32 to index
    %c0_118 = arith.constant 0 : index
    %395 = vector.load %arg13[%394, %c0_118] : memref<64x128xf32, #tpu.memory_space<vmem>>, vector<8x128xf32>
    tpu.vector_store %arg13[%394, %c0_118], %393 {strides = array<i32>} : memref<64x128xf32, #tpu.memory_space<vmem>>, vector<8x128xf32>,
    %c3_i32_119 = arith.constant 3 : i32
    %c8_i32_120 = arith.constant 8 : i32
    %396 = arith.muli %c3_i32_119, %c8_i32_120 : i32
    %397 = tpu.assume_multiple %396, 8 : i32
    %398 = arith.index_cast %397 : i32 to index
    %c0_121 = arith.constant 0 : index
    %399 = vector.load %arg14[%398, %c0_121] : memref<64x512xf32, #tpu.memory_space<vmem>>, vector<8x512xf32>
    %cst_122 = arith.constant dense<0.000000e+00> : vector<8x512xf32>
    %400 = tpu.matmul %393, %292, %cst_122 {dimension_numbers = #tpu.dot_dimension_numbers<[1], [0], [0], [1], [0, 0, 1, 1], [], []>} : vector<8x128xf32>, vector<128x512xf32>, vector<8x512xf32> -> vector<8x512xf32>
    %401 = arith.addf %399, %400 : vector<8x512xf32>
    %402 = vector.extract_strided_slice %401 {offsets = [0, 0], sizes = [8, 128], strides = [1, 1]} : vector<8x512xf32> to vector<8x128xf32>
    %403 = arith.negf %402 : vector<8x128xf32>
    %404 = math.exp %403 : vector<8x128xf32>
    %cst_123 = arith.constant 1.000000e+00 : f32
    %405 = vector.broadcast %cst_123 : f32 to vector<8x128xf32>
    %406 = arith.addf %405, %404 : vector<8x128xf32>
    %407 = arith.divf %405, %406 : vector<8x128xf32>
    %408 = vector.extract_strided_slice %401 {offsets = [0, 128], sizes = [8, 128], strides = [1, 1]} : vector<8x512xf32> to vector<8x128xf32>
    %409 = arith.negf %408 : vector<8x128xf32>
    %410 = math.exp %409 : vector<8x128xf32>
    %cst_124 = arith.constant 1.000000e+00 : f32
    %411 = vector.broadcast %cst_124 : f32 to vector<8x128xf32>
    %412 = arith.addf %411, %410 : vector<8x128xf32>
    %413 = arith.divf %411, %412 : vector<8x128xf32>
    %414 = vector.extract_strided_slice %401 {offsets = [0, 256], sizes = [8, 128], strides = [1, 1]} : vector<8x512xf32> to vector<8x128xf32>
    %415 = math.tanh %414 : vector<8x128xf32>
    %416 = vector.extract_strided_slice %401 {offsets = [0, 384], sizes = [8, 128], strides = [1, 1]} : vector<8x512xf32> to vector<8x128xf32>
    %417 = arith.negf %416 : vector<8x128xf32>
    %418 = math.exp %417 : vector<8x128xf32>
    %cst_125 = arith.constant 1.000000e+00 : f32
    %419 = vector.broadcast %cst_125 : f32 to vector<8x128xf32>
    %420 = arith.addf %419, %418 : vector<8x128xf32>
    %421 = arith.divf %419, %420 : vector<8x128xf32>
    %422 = arith.mulf %413, %391 : vector<8x128xf32>
    %423 = arith.mulf %407, %415 : vector<8x128xf32>
    %424 = arith.addf %422, %423 : vector<8x128xf32>
    %425 = math.tanh %424 : vector<8x128xf32>
    %426 = arith.mulf %421, %425 : vector<8x128xf32>
    %427 = arith.index_cast %397 : i32 to index
    %c0_126 = arith.constant 0 : index
    %428 = vector.load %arg13[%427, %c0_126] : memref<64x128xf32, #tpu.memory_space<vmem>>, vector<8x128xf32>
    tpu.vector_store %arg13[%427, %c0_126], %426 {strides = array<i32>} : memref<64x128xf32, #tpu.memory_space<vmem>>, vector<8x128xf32>,
    %c4_i32_127 = arith.constant 4 : i32
    %c8_i32_128 = arith.constant 8 : i32
    %429 = arith.muli %c4_i32_127, %c8_i32_128 : i32
    %430 = tpu.assume_multiple %429, 8 : i32
    %431 = arith.index_cast %430 : i32 to index
    %c0_129 = arith.constant 0 : index
    %432 = vector.load %arg14[%431, %c0_129] : memref<64x512xf32, #tpu.memory_space<vmem>>, vector<8x512xf32>
    %cst_130 = arith.constant dense<0.000000e+00> : vector<8x512xf32>
    %433 = tpu.matmul %426, %292, %cst_130 {dimension_numbers = #tpu.dot_dimension_numbers<[1], [0], [0], [1], [0, 0, 1, 1], [], []>} : vector<8x128xf32>, vector<128x512xf32>, vector<8x512xf32> -> vector<8x512xf32>
    %434 = arith.addf %432, %433 : vector<8x512xf32>
    %435 = vector.extract_strided_slice %434 {offsets = [0, 0], sizes = [8, 128], strides = [1, 1]} : vector<8x512xf32> to vector<8x128xf32>
    %436 = arith.negf %435 : vector<8x128xf32>
    %437 = math.exp %436 : vector<8x128xf32>
    %cst_131 = arith.constant 1.000000e+00 : f32
    %438 = vector.broadcast %cst_131 : f32 to vector<8x128xf32>
    %439 = arith.addf %438, %437 : vector<8x128xf32>
    %440 = arith.divf %438, %439 : vector<8x128xf32>
    %441 = vector.extract_strided_slice %434 {offsets = [0, 128], sizes = [8, 128], strides = [1, 1]} : vector<8x512xf32> to vector<8x128xf32>
    %442 = arith.negf %441 : vector<8x128xf32>
    %443 = math.exp %442 : vector<8x128xf32>
    %cst_132 = arith.constant 1.000000e+00 : f32
    %444 = vector.broadcast %cst_132 : f32 to vector<8x128xf32>
    %445 = arith.addf %444, %443 : vector<8x128xf32>
    %446 = arith.divf %444, %445 : vector<8x128xf32>
    %447 = vector.extract_strided_slice %434 {offsets = [0, 256], sizes = [8, 128], strides = [1, 1]} : vector<8x512xf32> to vector<8x128xf32>
    %448 = math.tanh %447 : vector<8x128xf32>
    %449 = vector.extract_strided_slice %434 {offsets = [0, 384], sizes = [8, 128], strides = [1, 1]} : vector<8x512xf32> to vector<8x128xf32>
    %450 = arith.negf %449 : vector<8x128xf32>
    %451 = math.exp %450 : vector<8x128xf32>
    %cst_133 = arith.constant 1.000000e+00 : f32
    %452 = vector.broadcast %cst_133 : f32 to vector<8x128xf32>
    %453 = arith.addf %452, %451 : vector<8x128xf32>
    %454 = arith.divf %452, %453 : vector<8x128xf32>
    %455 = arith.mulf %446, %424 : vector<8x128xf32>
    %456 = arith.mulf %440, %448 : vector<8x128xf32>
    %457 = arith.addf %455, %456 : vector<8x128xf32>
    %458 = math.tanh %457 : vector<8x128xf32>
    %459 = arith.mulf %454, %458 : vector<8x128xf32>
    %460 = arith.index_cast %430 : i32 to index
    %c0_134 = arith.constant 0 : index
    %461 = vector.load %arg13[%460, %c0_134] : memref<64x128xf32, #tpu.memory_space<vmem>>, vector<8x128xf32>
    tpu.vector_store %arg13[%460, %c0_134], %459 {strides = array<i32>} : memref<64x128xf32, #tpu.memory_space<vmem>>, vector<8x128xf32>,
    %c5_i32_135 = arith.constant 5 : i32
    %c8_i32_136 = arith.constant 8 : i32
    %462 = arith.muli %c5_i32_135, %c8_i32_136 : i32
    %463 = tpu.assume_multiple %462, 8 : i32
    %464 = arith.index_cast %463 : i32 to index
    %c0_137 = arith.constant 0 : index
    %465 = vector.load %arg14[%464, %c0_137] : memref<64x512xf32, #tpu.memory_space<vmem>>, vector<8x512xf32>
    %cst_138 = arith.constant dense<0.000000e+00> : vector<8x512xf32>
    %466 = tpu.matmul %459, %292, %cst_138 {dimension_numbers = #tpu.dot_dimension_numbers<[1], [0], [0], [1], [0, 0, 1, 1], [], []>} : vector<8x128xf32>, vector<128x512xf32>, vector<8x512xf32> -> vector<8x512xf32>
    %467 = arith.addf %465, %466 : vector<8x512xf32>
    %468 = vector.extract_strided_slice %467 {offsets = [0, 0], sizes = [8, 128], strides = [1, 1]} : vector<8x512xf32> to vector<8x128xf32>
    %469 = arith.negf %468 : vector<8x128xf32>
    %470 = math.exp %469 : vector<8x128xf32>
    %cst_139 = arith.constant 1.000000e+00 : f32
    %471 = vector.broadcast %cst_139 : f32 to vector<8x128xf32>
    %472 = arith.addf %471, %470 : vector<8x128xf32>
    %473 = arith.divf %471, %472 : vector<8x128xf32>
    %474 = vector.extract_strided_slice %467 {offsets = [0, 128], sizes = [8, 128], strides = [1, 1]} : vector<8x512xf32> to vector<8x128xf32>
    %475 = arith.negf %474 : vector<8x128xf32>
    %476 = math.exp %475 : vector<8x128xf32>
    %cst_140 = arith.constant 1.000000e+00 : f32
    %477 = vector.broadcast %cst_140 : f32 to vector<8x128xf32>
    %478 = arith.addf %477, %476 : vector<8x128xf32>
    %479 = arith.divf %477, %478 : vector<8x128xf32>
    %480 = vector.extract_strided_slice %467 {offsets = [0, 256], sizes = [8, 128], strides = [1, 1]} : vector<8x512xf32> to vector<8x128xf32>
    %481 = math.tanh %480 : vector<8x128xf32>
    %482 = vector.extract_strided_slice %467 {offsets = [0, 384], sizes = [8, 128], strides = [1, 1]} : vector<8x512xf32> to vector<8x128xf32>
    %483 = arith.negf %482 : vector<8x128xf32>
    %484 = math.exp %483 : vector<8x128xf32>
    %cst_141 = arith.constant 1.000000e+00 : f32
    %485 = vector.broadcast %cst_141 : f32 to vector<8x128xf32>
    %486 = arith.addf %485, %484 : vector<8x128xf32>
    %487 = arith.divf %485, %486 : vector<8x128xf32>
    %488 = arith.mulf %479, %457 : vector<8x128xf32>
    %489 = arith.mulf %473, %481 : vector<8x128xf32>
    %490 = arith.addf %488, %489 : vector<8x128xf32>
    %491 = math.tanh %490 : vector<8x128xf32>
    %492 = arith.mulf %487, %491 : vector<8x128xf32>
    %493 = arith.index_cast %463 : i32 to index
    %c0_142 = arith.constant 0 : index
    %494 = vector.load %arg13[%493, %c0_142] : memref<64x128xf32, #tpu.memory_space<vmem>>, vector<8x128xf32>
    tpu.vector_store %arg13[%493, %c0_142], %492 {strides = array<i32>} : memref<64x128xf32, #tpu.memory_space<vmem>>, vector<8x128xf32>,
    %c6_i32_143 = arith.constant 6 : i32
    %c8_i32_144 = arith.constant 8 : i32
    %495 = arith.muli %c6_i32_143, %c8_i32_144 : i32
    %496 = tpu.assume_multiple %495, 8 : i32
    %497 = arith.index_cast %496 : i32 to index
    %c0_145 = arith.constant 0 : index
    %498 = vector.load %arg14[%497, %c0_145] : memref<64x512xf32, #tpu.memory_space<vmem>>, vector<8x512xf32>
    %cst_146 = arith.constant dense<0.000000e+00> : vector<8x512xf32>
    %499 = tpu.matmul %492, %292, %cst_146 {dimension_numbers = #tpu.dot_dimension_numbers<[1], [0], [0], [1], [0, 0, 1, 1], [], []>} : vector<8x128xf32>, vector<128x512xf32>, vector<8x512xf32> -> vector<8x512xf32>
    %500 = arith.addf %498, %499 : vector<8x512xf32>
    %501 = vector.extract_strided_slice %500 {offsets = [0, 0], sizes = [8, 128], strides = [1, 1]} : vector<8x512xf32> to vector<8x128xf32>
    %502 = arith.negf %501 : vector<8x128xf32>
    %503 = math.exp %502 : vector<8x128xf32>
    %cst_147 = arith.constant 1.000000e+00 : f32
    %504 = vector.broadcast %cst_147 : f32 to vector<8x128xf32>
    %505 = arith.addf %504, %503 : vector<8x128xf32>
    %506 = arith.divf %504, %505 : vector<8x128xf32>
    %507 = vector.extract_strided_slice %500 {offsets = [0, 128], sizes = [8, 128], strides = [1, 1]} : vector<8x512xf32> to vector<8x128xf32>
    %508 = arith.negf %507 : vector<8x128xf32>
    %509 = math.exp %508 : vector<8x128xf32>
    %cst_148 = arith.constant 1.000000e+00 : f32
    %510 = vector.broadcast %cst_148 : f32 to vector<8x128xf32>
    %511 = arith.addf %510, %509 : vector<8x128xf32>
    %512 = arith.divf %510, %511 : vector<8x128xf32>
    %513 = vector.extract_strided_slice %500 {offsets = [0, 256], sizes = [8, 128], strides = [1, 1]} : vector<8x512xf32> to vector<8x128xf32>
    %514 = math.tanh %513 : vector<8x128xf32>
    %515 = vector.extract_strided_slice %500 {offsets = [0, 384], sizes = [8, 128], strides = [1, 1]} : vector<8x512xf32> to vector<8x128xf32>
    %516 = arith.negf %515 : vector<8x128xf32>
    %517 = math.exp %516 : vector<8x128xf32>
    %cst_149 = arith.constant 1.000000e+00 : f32
    %518 = vector.broadcast %cst_149 : f32 to vector<8x128xf32>
    %519 = arith.addf %518, %517 : vector<8x128xf32>
    %520 = arith.divf %518, %519 : vector<8x128xf32>
    %521 = arith.mulf %512, %490 : vector<8x128xf32>
    %522 = arith.mulf %506, %514 : vector<8x128xf32>
    %523 = arith.addf %521, %522 : vector<8x128xf32>
    %524 = math.tanh %523 : vector<8x128xf32>
    %525 = arith.mulf %520, %524 : vector<8x128xf32>
    %526 = arith.index_cast %496 : i32 to index
    %c0_150 = arith.constant 0 : index
    %527 = vector.load %arg13[%526, %c0_150] : memref<64x128xf32, #tpu.memory_space<vmem>>, vector<8x128xf32>
    tpu.vector_store %arg13[%526, %c0_150], %525 {strides = array<i32>} : memref<64x128xf32, #tpu.memory_space<vmem>>, vector<8x128xf32>,
    %c7_i32_151 = arith.constant 7 : i32
    %c8_i32_152 = arith.constant 8 : i32
    %528 = arith.muli %c7_i32_151, %c8_i32_152 : i32
    %529 = tpu.assume_multiple %528, 8 : i32
    %530 = arith.index_cast %529 : i32 to index
    %c0_153 = arith.constant 0 : index
    %531 = vector.load %arg14[%530, %c0_153] : memref<64x512xf32, #tpu.memory_space<vmem>>, vector<8x512xf32>
    %cst_154 = arith.constant dense<0.000000e+00> : vector<8x512xf32>
    %532 = tpu.matmul %525, %292, %cst_154 {dimension_numbers = #tpu.dot_dimension_numbers<[1], [0], [0], [1], [0, 0, 1, 1], [], []>} : vector<8x128xf32>, vector<128x512xf32>, vector<8x512xf32> -> vector<8x512xf32>
    %533 = arith.addf %531, %532 : vector<8x512xf32>
    %534 = vector.extract_strided_slice %533 {offsets = [0, 0], sizes = [8, 128], strides = [1, 1]} : vector<8x512xf32> to vector<8x128xf32>
    %535 = arith.negf %534 : vector<8x128xf32>
    %536 = math.exp %535 : vector<8x128xf32>
    %cst_155 = arith.constant 1.000000e+00 : f32
    %537 = vector.broadcast %cst_155 : f32 to vector<8x128xf32>
    %538 = arith.addf %537, %536 : vector<8x128xf32>
    %539 = arith.divf %537, %538 : vector<8x128xf32>
    %540 = vector.extract_strided_slice %533 {offsets = [0, 128], sizes = [8, 128], strides = [1, 1]} : vector<8x512xf32> to vector<8x128xf32>
    %541 = arith.negf %540 : vector<8x128xf32>
    %542 = math.exp %541 : vector<8x128xf32>
    %cst_156 = arith.constant 1.000000e+00 : f32
    %543 = vector.broadcast %cst_156 : f32 to vector<8x128xf32>
    %544 = arith.addf %543, %542 : vector<8x128xf32>
    %545 = arith.divf %543, %544 : vector<8x128xf32>
    %546 = vector.extract_strided_slice %533 {offsets = [0, 256], sizes = [8, 128], strides = [1, 1]} : vector<8x512xf32> to vector<8x128xf32>
    %547 = math.tanh %546 : vector<8x128xf32>
    %548 = vector.extract_strided_slice %533 {offsets = [0, 384], sizes = [8, 128], strides = [1, 1]} : vector<8x512xf32> to vector<8x128xf32>
    %549 = arith.negf %548 : vector<8x128xf32>
    %550 = math.exp %549 : vector<8x128xf32>
    %cst_157 = arith.constant 1.000000e+00 : f32
    %551 = vector.broadcast %cst_157 : f32 to vector<8x128xf32>
    %552 = arith.addf %551, %550 : vector<8x128xf32>
    %553 = arith.divf %551, %552 : vector<8x128xf32>
    %554 = arith.mulf %545, %523 : vector<8x128xf32>
    %555 = arith.mulf %539, %547 : vector<8x128xf32>
    %556 = arith.addf %554, %555 : vector<8x128xf32>
    %557 = math.tanh %556 : vector<8x128xf32>
    %558 = arith.mulf %553, %557 : vector<8x128xf32>
    %559 = arith.index_cast %529 : i32 to index
    %c0_158 = arith.constant 0 : index
    %560 = vector.load %arg13[%559, %c0_158] : memref<64x128xf32, #tpu.memory_space<vmem>>, vector<8x128xf32>
    tpu.vector_store %arg13[%559, %c0_158], %558 {strides = array<i32>} : memref<64x128xf32, #tpu.memory_space<vmem>>, vector<8x128xf32>,
    %c8_i32_159 = arith.constant 8 : i32
    %c1_160 = arith.constant 1 : index
    %c0_161 = arith.constant 0 : index
    %c0_162 = arith.constant 0 : index
    %561 = vector.load %arg11[%c1_160, %c0_161, %c0_162] : memref<2x8x128xf32, #tpu.memory_space<vmem>>, vector<1x8x128xf32>
    %562 = vector.shape_cast %561 : vector<1x8x128xf32> to vector<8x128xf32>
    %563 = vector.shape_cast %558 : vector<8x128xf32> to vector<1x8x128xf32>
    tpu.vector_store %arg11[%c1_160, %c0_161, %c0_162], %563 {strides = array<i32>} : memref<2x8x128xf32, #tpu.memory_space<vmem>>, vector<1x8x128xf32>,
    %c1_163 = arith.constant 1 : index
    %c0_164 = arith.constant 0 : index
    %c0_165 = arith.constant 0 : index
    %564 = vector.load %arg12[%c1_163, %c0_164, %c0_165] : memref<2x8x128xf32, #tpu.memory_space<vmem>>, vector<1x8x128xf32>
    %565 = vector.shape_cast %564 : vector<1x8x128xf32> to vector<8x128xf32>
    %566 = vector.shape_cast %556 : vector<8x128xf32> to vector<1x8x128xf32>
    tpu.vector_store %arg12[%c1_163, %c0_164, %c0_165], %566 {strides = array<i32>} : memref<2x8x128xf32, #tpu.memory_space<vmem>>, vector<1x8x128xf32>,
    %c0_166 = arith.constant 0 : index
    %c0_167 = arith.constant 0 : index
    %567 = vector.load %arg13[%c0_166, %c0_167] : memref<64x128xf32, #tpu.memory_space<vmem>>, vector<64x128xf32>
    %cst_168 = arith.constant 2.000000e+01 : f32
    %568 = vector.broadcast %cst_168 : f32 to vector<64x128xf32>
    %569 = arith.cmpf ogt, %567, %568 : vector<64x128xf32>
    %cst_169 = arith.constant 2.000000e+01 : f32
    %570 = vector.broadcast %cst_169 : f32 to vector<64x128xf32>
    %571 = arith.minimumf %567, %570 : vector<64x128xf32>
    %572 = math.exp %571 : vector<64x128xf32>
    %573 = math.log1p %572 : vector<64x128xf32>
    %574 = arith.select %569, %567, %573 : vector<64x128xi1>, vector<64x128xf32>
    %c0_170 = arith.constant 0 : index
    %c0_171 = arith.constant 0 : index
    %575 = vector.load %arg8[%c0_170, %c0_171] : memref<128x128xf32, #tpu.memory_space<vmem>>, vector<128x128xf32>
    %cst_172 = arith.constant dense<0.000000e+00> : vector<64x128xf32>
    %576 = tpu.matmul %574, %575, %cst_172 {dimension_numbers = #tpu.dot_dimension_numbers<[1], [0], [0], [1], [0, 0, 1, 1], [], []>} : vector<64x128xf32>, vector<128x128xf32>, vector<64x128xf32> -> vector<64x128xf32>
    %c0_173 = arith.constant 0 : index
    %c0_174 = arith.constant 0 : index
    %577 = vector.load %arg9[%c0_173, %c0_174] : memref<1x128xf32, #tpu.memory_space<vmem>>, vector<1x128xf32>
    %578 = vector.broadcast %577 : vector<1x128xf32> to vector<64x128xf32>
    %579 = arith.addf %576, %578 : vector<64x128xf32>
    %c0_175 = arith.constant 0 : index
    %c0_176 = arith.constant 0 : index
    %580 = vector.load %arg10[%c0_175, %c0_176] : memref<64x128xf32, #tpu.memory_space<vmem>>, vector<64x128xf32>
    tpu.vector_store %arg10[%c0_175, %c0_176], %579 {strides = array<i32>} : memref<64x128xf32, #tpu.memory_space<vmem>>, vector<64x128xf32>,
    return
  }
  func.func @transform_0(%arg0: i32) -> (i32, i32) {
    %c0_i32 = arith.constant 0 : i32
    %c0_i32_0 = arith.constant 0 : i32
    return %arg0, %c0_i32 : i32, i32
  }
  func.func @transform_1(%arg0: i32) -> (i32, i32) {
    %c0_i32 = arith.constant 0 : i32
    %c0_i32_0 = arith.constant 0 : i32
    %c0_i32_1 = arith.constant 0 : i32
    return %c0_i32, %c0_i32_0 : i32, i32
  }
  func.func @transform_2(%arg0: i32) -> (i32, i32) {
    %c0_i32 = arith.constant 0 : i32
    %c0_i32_0 = arith.constant 0 : i32
    %c0_i32_1 = arith.constant 0 : i32
    return %c0_i32, %c0_i32_0 : i32, i32
  }
  func.func @transform_3(%arg0: i32) -> (i32, i32) {
    %c0_i32 = arith.constant 0 : i32
    %c0_i32_0 = arith.constant 0 : i32
    %c0_i32_1 = arith.constant 0 : i32
    return %c0_i32, %c0_i32_0 : i32, i32
  }
  func.func @transform_4(%arg0: i32) -> (i32, i32) {
    %c0_i32 = arith.constant 0 : i32
    %c0_i32_0 = arith.constant 0 : i32
    %c0_i32_1 = arith.constant 0 : i32
    return %c0_i32, %c0_i32_0 : i32, i32
  }
  func.func @transform_5(%arg0: i32) -> (i32, i32) {
    %c0_i32 = arith.constant 0 : i32
    %c0_i32_0 = arith.constant 0 : i32
    %c0_i32_1 = arith.constant 0 : i32
    return %c0_i32, %c0_i32_0 : i32, i32
  }
  func.func @transform_6(%arg0: i32) -> (i32, i32) {
    %c0_i32 = arith.constant 0 : i32
    %c0_i32_0 = arith.constant 0 : i32
    %c0_i32_1 = arith.constant 0 : i32
    return %c0_i32, %c0_i32_0 : i32, i32
  }
  func.func @transform_7(%arg0: i32) -> (i32, i32) {
    %c0_i32 = arith.constant 0 : i32
    %c0_i32_0 = arith.constant 0 : i32
    %c0_i32_1 = arith.constant 0 : i32
    return %c0_i32, %c0_i32_0 : i32, i32
  }
  func.func @transform_8(%arg0: i32) -> (i32, i32) {
    %c0_i32 = arith.constant 0 : i32
    %c0_i32_0 = arith.constant 0 : i32
    %c0_i32_1 = arith.constant 0 : i32
    return %c0_i32, %c0_i32_0 : i32, i32
  }
  func.func @transform_9(%arg0: i32) -> (i32, i32) {
    %c0_i32 = arith.constant 0 : i32
    %c0_i32_0 = arith.constant 0 : i32
    return %arg0, %c0_i32 : i32, i32
  }
}

</mosaic_0001>

<bundles_post_ra>
// kernel: lstm_rnn_forward.1
= control target key start
LH: loop header
LB: loop body
LE: loop exit
PB: predicated region body
PF: predicated region fallthrough
CT: control target
= control target key end

     0   :  { %vm101_vm0 = vcmask 1043456   ;;  %v7781_v1 = vmov 0.0   ;;  %vm76_vm1 = vcmask 31744   ;;  %s7767_s1 = inlined_call_operand.vmem [shape: f32[4,512], index: 1, kind: input, shape index: {}]   ;;  %s7768_s0 = inlined_call_operand.vmem [shape: f32[64,4], index: 0, kind: input, shape index: {}]   ;;  %s7769_s2 = inlined_call_operand.vmem [shape: f32[128,512], index: 2, kind: input, shape index: {}]   ;;  %s7770_s3 = inlined_call_operand.vmem [shape: f32[1,512], index: 3, kind: input, shape index: {}]   ;;  %s7771_s4 = inlined_call_operand.vmem [shape: f32[128,512], index: 4, kind: input, shape index: {}]   ;;  %s7772_s5 = inlined_call_operand.vmem [shape: f32[128,512], index: 5, kind: input, shape index: {}]   ;;  %s7773_s6 = inlined_call_operand.vmem [shape: f32[1,512], index: 6, kind: input, shape index: {}]   ;;  %s7774_s7 = inlined_call_operand.vmem [shape: f32[128,128], index: 7, kind: input, shape index: {}]   ;;  %s7775_s8 = inlined_call_operand.vmem [shape: f32[1,128], index: 8, kind: input, shape index: {}]   ;;  %s7776_s9 = inlined_call_operand.vmem [shape: f32[64,128], index: 9, kind: output, shape index: {}]  }
   0x1   :  { %v49_v0 = vld [vmem:[%s7767_s1 + $0x8] sm:$0xff]  ;;  %287 = vmatprep.mubr.f32.mxu1 %v7781_v1  ;;  %174 = vmatprep.mubr.f32.mxu0 %v7781_v1  ;;  %v40_v3 = vld [vmem:[%s7768_s0] sm:$0xff]  ;;  %v4632_v13 = vld [vmem:[%s7768_s0 + $0x10] sm:$0xff] }
   0x2   :  { %v75_v2 = vcombine.high %v49_v0, %v49_v0  ;;  %v4574_v4 = vld [vmem:[%s7769_s2 + $0x1e8] sm:$0xff]  ;;  %v4580_v5 = vld [vmem:[%s7769_s2 + $0x1e0] sm:$0xff]  ;;  %v4667_v20 = vld [vmem:[%s7768_s0 + $0x18] sm:$0xff] }
   0x3   :  { %7991 = vst [vmem:[#allocation6_spill] sm:$0xff] %v4574_v4  ;;  %v4586_v6 = vld [vmem:[%s7769_s2 + $0x1c8] sm:$0xff]  ;;  %v4593_v7 = vld [vmem:[%s7769_s2 + $0x1c0] sm:$0xff]  ;;  %v4769_v35 = vld [vmem:[%s7768_s0 + $0x30] sm:$0xff] }
   0x4   :  { %3966 = vmatprep.subr.msk.mxu1 %vm101_vm0, %v75_v2  ;;  %v4600_v8 = vld [vmem:[%s7768_s0 + $0x8] sm:$0xff]  ;;  %v4611_v10 = vld [vmem:[%s7769_s2 + $0x1a0] sm:$0xff]  ;;  %v4804_v40 = vld [vmem:[%s7768_s0 + $0x38] sm:$0xff] }
   0x5   :  { %3967 = vmatpush1.msk.msra.mxu1 %vm101_vm0, %v49_v0  ;;  %v4605_v9 = vld [vmem:[%s7769_s2 + $0x1a8] sm:$0xff]  ;;  %v4625_v12 = vld [vmem:[%s7769_s2 + $0x180] sm:$0xff]  ;;  %v4838_v45 = vld [vmem:[%s7769_s2 + $0x1f8] sm:$0xff] }
   0x6   :  { %3968 = vmatmul.mubr.msk.f32.vlgmr.msra.gmra.mxu1 %vm76_vm1, %v40_v3  ;;  %441 = vmatprep.subr.mxu1 %v4574_v4  ;;  %v4617_v11 = vld [vmem:[%s7769_s2 + $0x188] sm:$0xff]  ;;  %v4643_v15 = vld [vmem:[%s7769_s2 + $0x160] sm:$0xff]  ;;  %8003 = vst [vmem:[#allocation18_spill] sm:$0xff] %v4838_v45  ;;  %v4844_v46 = vld [vmem:[%s7769_s2 + $0x1f0] sm:$0xff] }
   0x7   :  { %442 = vmatpush1.msra.mxu1 %v4580_v5  ;;  %293 = vmatprep.mubr.f32.mxu1 %v7781_v1  ;;  %v4637_v14 = vld [vmem:[%s7769_s2 + $0x168] sm:$0xff]  ;;  %v48_v17 = vld [vmem:[%s7767_s1] sm:$0xff]  ;;  %v4851_v47 = vld [vmem:[%s7769_s2 + $0x1d8] sm:$0xff] }
   0x8   :  { %443 = vmatprep.subr.mxu1 %v4586_v6  ;;  %v4649_v16 = vld [vmem:[%s7769_s2 + $0x148] sm:$0xff]  ;;  %v4660_v18 = vld [vmem:[%s7769_s2 + $0x140] sm:$0xff]  ;;  %v74_v19 = vcombine.high %v48_v17, %v48_v17  ;;  %v4859_v48 = vld [vmem:[%s7769_s2 + $0x1d0] sm:$0xff] }
   0x9   :  { %444 = vmatpush1.msra.mxu1 %v4593_v7  ;;  %v4672_v21 = vld [vmem:[%s7769_s2 + $0x128] sm:$0xff]  ;;  %v4678_v22 = vld [vmem:[%s7769_s2 + $0x120] sm:$0xff]  ;;  %v4865_v49 = vld [vmem:[%s7769_s2 + $0x1b8] sm:$0xff] }
   0xa   :  { %3969 = vmatmul.mubr.msk.f32.gmra.mxu1 %vm76_vm1, %v4600_v8  ;;  %445 = vmatprep.subr.mxu1 %v4605_v9  ;;  %v4685_v23 = vld [vmem:[%s7769_s2 + $0x108] sm:$0xff]  ;;  %v4694_v24 = vld [vmem:[%s7769_s2 + $0x100] sm:$0xff]  ;;  %v4872_v50 = vld [vmem:[%s7769_s2 + $0x1b0] sm:$0xff] }
   0xb   :  { %446 = vmatpush1.msra.mxu1 %v4611_v10  ;;  %299 = vmatprep.mubr.f32.mxu1 %v7781_v1  ;;  %v4701_v25 = vld [vmem:[%s7768_s0 + $0x20] sm:$0xff]  ;;  %v4706_v26 = vld [vmem:[%s7769_s2 + $0xe8] sm:$0xff]  ;;  %v4879_v51 = vld [vmem:[%s7769_s2 + $0x198] sm:$0xff] }
   0xc   :  { %447 = vmatprep.subr.mxu1 %v4617_v11  ;;  %3956 = vmatprep.subr.msk.mxu0 %vm101_vm0, %v74_v19  ;;  %v4712_v27 = vld [vmem:[%s7769_s2 + $0xe0] sm:$0xff]  ;;  %v4719_v28 = vld [vmem:[%s7769_s2 + $0xc8] sm:$0xff]  ;;  %v4887_v52 = vld [vmem:[%s7769_s2 + $0x190] sm:$0xff] }
   0xd   :  { %448 = vmatpush1.msra.mxu1 %v4625_v12  ;;  %3957 = vmatpush1.msk.msra.mxu0 %vm101_vm0, %v48_v17  ;;  %v4728_v29 = vld [vmem:[%s7769_s2 + $0xc0] sm:$0xff]  ;;  %v4735_v30 = vld [vmem:[%s7768_s0 + $0x28] sm:$0xff]  ;;  %v4894_v53 = vld [vmem:[%s7769_s2 + $0x178] sm:$0xff] }
   0xe   :  { %3970 = vmatmul.mubr.msk.f32.gmra.mxu1 %vm76_vm1, %v4632_v13  ;;  %449 = vmatprep.subr.mxu1 %v4637_v14  ;;  %v4740_v31 = vld [vmem:[%s7769_s2 + $0xa8] sm:$0xff]  ;;  %v4746_v32 = vld [vmem:[%s7769_s2 + $0xa0] sm:$0xff]  ;;  %v4901_v54 = vld [vmem:[%s7769_s2 + $0x170] sm:$0xff] }
   0xf   :  { %450 = vmatpush1.msra.mxu1 %v4643_v15  ;;  %305 = vmatprep.mubr.f32.mxu1 %v7781_v1  ;;  %7992 = vst [vmem:[#allocation7_spill] sm:$0xff] %v4740_v31  ;;  %7993 = vst [vmem:[#allocation8_spill] sm:$0xff] %v4746_v32  ;;  %v4753_v33 = vld [vmem:[%s7769_s2 + $0x88] sm:$0xff]  ;;  %v4762_v34 = vld [vmem:[%s7769_s2 + $0x80] sm:$0xff] }
  0x10   :  { %451 = vmatprep.subr.mxu1 %v4649_v16  ;;  %3958 = vmatmul.mubr.msk.f32.vlgmr.msra.gmra.mxu0 %vm76_vm1, %v40_v3  ;;  %7994 = vst [vmem:[#allocation9_spill] sm:$0xff] %v4762_v34  ;;  %v4774_v36 = vld [vmem:[%s7769_s2 + $0x68] sm:$0xff]  ;;  %v4780_v37 = vld [vmem:[%s7769_s2 + $0x60] sm:$0xff]  ;;  %v4908_v55 = vld [vmem:[%s7769_s2 + $0x158] sm:$0xff] }
  0x11   :  { %452 = vmatpush1.msra.mxu1 %v4660_v18  ;;  %619 = vmatprep.subr.mxu0 %v4574_v4  ;;  %7995 = vst [vmem:[#allocation10_spill] sm:$0xff] %v4774_v36  ;;  %7996 = vst [vmem:[#allocation11_spill] sm:$0xff] %v4780_v37  ;;  %v4787_v38 = vld [vmem:[%s7769_s2 + $0x48] sm:$0xff]  ;;  %v4797_v39 = vld [vmem:[%s7769_s2 + $0x40] sm:$0xff] }
  0x12   :  { %3971 = vmatmul.mubr.msk.f32.gmra.mxu1 %vm76_vm1, %v4667_v20  ;;  %453 = vmatprep.subr.mxu1 %v4672_v21  ;;  %7997 = vst [vmem:[#allocation12_spill] sm:$0xff] %v4787_v38  ;;  %7998 = vst [vmem:[#allocation13_spill] sm:$0xff] %v4797_v39  ;;  %v4809_v41 = vld [vmem:[%s7769_s2 + $0x28] sm:$0xff]  ;;  %v4815_v42 = vld [vmem:[%s7769_s2 + $0x20] sm:$0xff] }
  0x13   :  { %454 = vmatpush1.msra.mxu1 %v4678_v22  ;;  %311 = vmatprep.mubr.f32.mxu1 %v7781_v1  ;;  %7999 = vst [vmem:[#allocation14_spill] sm:$0xff] %v4809_v41  ;;  %8000 = vst [vmem:[#allocation15_spill] sm:$0xff] %v4815_v42  ;;  %v4822_v43 = vld [vmem:[%s7769_s2 + $0x8] sm:$0xff]  ;;  %v4831_v44 = vld [vmem:[%s7769_s2] sm:$0xff] }
  0x14   :  { %455 = vmatprep.subr.mxu1 %v4685_v23  ;;  %620 = vmatpush1.msra.mxu0 %v4580_v5  ;;  %8001 = vst [vmem:[#allocation16_spill] sm:$0xff] %v4822_v43  ;;  %8002 = vst [vmem:[#allocation17_spill] sm:$0xff] %v4831_v44  ;;  %v4915_v56 = vld [vmem:[%s7769_s2 + $0x150] sm:$0xff]  ;;  %v4922_v57 = vld [vmem:[%s7769_s2 + $0x138] sm:$0xff] }
  0x15   :  { %456 = vmatpush1.msra.mxu1 %v4694_v24  ;;  %180 = vmatprep.mubr.f32.mxu0 %v7781_v1  ;;  %v4930_v58 = vld [vmem:[%s7769_s2 + $0x130] sm:$0xff]  ;;  %v4937_v59 = vld [vmem:[%s7769_s2 + $0x118] sm:$0xff] }
  0x16   :  { %3972 = vmatmul.mubr.msk.f32.gmra.mxu1 %vm76_vm1, %v4701_v25  ;;  %457 = vmatprep.subr.mxu1 %v4706_v26  ;;  %v4944_v60 = vld [vmem:[%s7769_s2 + $0x110] sm:$0xff]  ;;  %v4951_v61 = vld [vmem:[%s7769_s2 + $0xf8] sm:$0xff] }
  0x17   :  { %458 = vmatpush1.msra.mxu1 %v4712_v27  ;;  %317 = vmatprep.mubr.f32.mxu1 %v7781_v1  ;;  %v4958_v62 = vld [vmem:[%s7769_s2 + $0xf0] sm:$0xff]  ;;  %v4965_v63 = vld [vmem:[%s7769_s2 + $0xd8] sm:$0xff] }
  0x18   :  { %459 = vmatprep.subr.mxu1 %v4719_v28  ;;  %621 = vmatprep.subr.mxu0 %v4586_v6  ;;  %v4973_v0 = vld [vmem:[%s7769_s2 + $0xd0] sm:$0xff]  ;;  %v4980_v2 = vld [vmem:[%s7769_s2 + $0xb8] sm:$0xff] }
  0x19   :  { %460 = vmatpush1.msra.mxu1 %v4728_v29  ;;  %3959 = vmatmul.mubr.msk.f32.gmra.mxu0 %vm76_vm1, %v4600_v8  ;;  %v4987_v3 = vld [vmem:[%s7769_s2 + $0xb0] sm:$0xff]  ;;  %v4994_v8 = vld [vmem:[%s7769_s2 + $0x98] sm:$0xff] }
  0x1a   :  { %3973 = vmatmul.mubr.msk.f32.gmra.mxu1 %vm76_vm1, %v4735_v30  ;;  %461 = vmatprep.subr.mxu1 %v4740_v31  ;;  %8004 = vst [vmem:[#allocation19_spill] sm:$0xff] %v4994_v8  ;;  %v5008_v17 = vld [vmem:[%s7769_s2 + $0x78] sm:$0xff]  ;;  %v5016_v19 = vld [vmem:[%s7769_s2 + $0x70] sm:$0xff] }
  0x1b   :  { %462 = vmatpush1.msra.mxu1 %v4746_v32  ;;  %323 = vmatprep.mubr.f32.mxu1 %v7781_v1  ;;  %8006 = vst [vmem:[#allocation21_spill] sm:$0xff] %v5008_v17  ;;  %8007 = vst [vmem:[#allocation22_spill] sm:$0xff] %v5016_v19 }
  0x1c   :  { %463 = vmatprep.subr.mxu1 %v4753_v33  ;;  %622 = vmatpush1.msra.mxu0 %v4593_v7 }
  0x1d   :  { %464 = vmatpush1.msra.mxu1 %v4762_v34  ;;  %623 = vmatprep.subr.mxu0 %v4605_v9 }
  0x1e   :  { %3974 = vmatmul.mubr.msk.f32.gmra.mxu1 %vm76_vm1, %v4769_v35  ;;  %465 = vmatprep.subr.mxu1 %v4774_v36 }
  0x1f   :  { %466 = vmatpush1.msra.mxu1 %v4780_v37  ;;  %329 = vmatprep.mubr.f32.mxu1 %v7781_v1 }
  0x20   :  { %467 = vmatprep.subr.mxu1 %v4787_v38  ;;  %624 = vmatpush1.msra.mxu0 %v4611_v10 }
  0x21   :  { %468 = vmatpush1.msra.mxu1 %v4797_v39  ;;  %186 = vmatprep.mubr.f32.mxu0 %v7781_v1 }
  0x22   :  { %3975 = vmatmul.mubr.msk.f32.gmra.mxu1 %vm76_vm1, %v4804_v40  ;;  %469 = vmatprep.subr.mxu1 %v4809_v41 }
  0x23   :  { %470 = vmatpush1.msra.mxu1 %v4815_v42  ;;  %505 = vmatprep.mubr.f32.mxu1 %v7781_v1 }
  0x24   :  { %471 = vmatprep.subr.mxu1 %v4822_v43  ;;  %625 = vmatprep.subr.mxu0 %v4617_v11 }
  0x25   :  { %472 = vmatpush1.msra.mxu1 %v4831_v44  ;;  %3960 = vmatmul.mubr.msk.f32.gmra.mxu0 %vm76_vm1, %v4632_v13  ;;  %v5001_v13 = vld [vmem:[%s7769_s2 + $0x90] sm:$0xff] }
  0x26   :  { %506 = vmatmul.mubr.f32.vlgmr.msra.gmra.mxu1 %v7781_v1  ;;  %512 = vmatprep.subr.mxu1 %v4838_v45  ;;  %8005 = vst [vmem:[#allocation20_spill] sm:$0xff] %v5001_v13 }
  0x27   :  { %513 = vmatpush1.msra.mxu1 %v4844_v46  ;;  %576 = vmatprep.mubr.f32.mxu1 %v7781_v1 }
  0x28   :  { %514 = vmatprep.subr.mxu1 %v4851_v47  ;;  %626 = vmatpush1.msra.mxu0 %v4625_v12 }
  0x29   :  { %515 = vmatpush1.msra.mxu1 %v4859_v48  ;;  %627 = vmatprep.subr.mxu0 %v4637_v14 }
  0x2a   :  { %516 = vmatprep.subr.mxu1 %v4865_v49  ;;  %628 = vmatpush1.msra.mxu0 %v4643_v15 }
  0x2b   :  { %517 = vmatpush1.msra.mxu1 %v4872_v50  ;;  %192 = vmatprep.mubr.f32.mxu0 %v7781_v1 }
  0x2c   :  { %518 = vmatprep.subr.mxu1 %v4879_v51  ;;  %629 = vmatprep.subr.mxu0 %v4649_v16 }
  0x2d   :  { %519 = vmatpush1.msra.mxu1 %v4887_v52  ;;  %3961 = vmatmul.mubr.msk.f32.gmra.mxu0 %vm76_vm1, %v4667_v20  ;;  %v5023_v20 = vld [vmem:[%s7769_s2 + $0x58] sm:$0xff] }
  0x2e   :  { %520 = vmatprep.subr.mxu1 %v4894_v53  ;;  %630 = vmatpush1.msra.mxu0 %v4660_v18  ;;  %8008 = vst [vmem:[#allocation23_spill] sm:$0xff] %v5023_v20 }
  0x2f   :  { %521 = vmatpush1.msra.mxu1 %v4901_v54  ;;  %631 = vmatprep.subr.mxu0 %v4672_v21 }
  0x30   :  { %522 = vmatprep.subr.mxu1 %v4908_v55  ;;  %632 = vmatpush1.msra.mxu0 %v4678_v22 }
  0x31   :  { %523 = vmatpush1.msra.mxu1 %v4915_v56  ;;  %198 = vmatprep.mubr.f32.mxu0 %v7781_v1 }
  0x32   :  { %524 = vmatprep.subr.mxu1 %v4922_v57  ;;  %633 = vmatprep.subr.mxu0 %v4685_v23 }
  0x33   :  { %525 = vmatpush1.msra.mxu1 %v4930_v58  ;;  %3962 = vmatmul.mubr.msk.f32.gmra.mxu0 %vm76_vm1, %v4701_v25  ;;  %v5030_v25 = vld [vmem:[%s7769_s2 + $0x50] sm:$0xff] }
  0x34   :  { %526 = vmatprep.subr.mxu1 %v4937_v59  ;;  %634 = vmatpush1.msra.mxu0 %v4694_v24  ;;  %8009 = vst [vmem:[#allocation24_spill] sm:$0xff] %v5030_v25 }
  0x35   :  { %527 = vmatpush1.msra.mxu1 %v4944_v60  ;;  %635 = vmatprep.subr.mxu0 %v4706_v26 }
  0x36   :  { %528 = vmatprep.subr.mxu1 %v4951_v61  ;;  %636 = vmatpush1.msra.mxu0 %v4712_v27 }
  0x37   :  { %529 = vmatpush1.msra.mxu1 %v4958_v62  ;;  %204 = vmatprep.mubr.f32.mxu0 %v7781_v1 }
  0x38   :  { %530 = vmatprep.subr.mxu1 %v4965_v63  ;;  %637 = vmatprep.subr.mxu0 %v4719_v28 }
  0x39   :  { %531 = vmatpush1.msra.mxu1 %v4973_v0  ;;  %3963 = vmatmul.mubr.msk.f32.gmra.mxu0 %vm76_vm1, %v4735_v30  ;;  %v5037_v30 = vld [vmem:[%s7769_s2 + $0x38] sm:$0xff] }
  0x3a   :  { %532 = vmatprep.subr.mxu1 %v4980_v2  ;;  %638 = vmatpush1.msra.mxu0 %v4728_v29  ;;  %8010 = vst [vmem:[#allocation25_spill] sm:$0xff] %v5037_v30 }
  0x3b   :  { %533 = vmatpush1.msra.mxu1 %v4987_v3  ;;  %639 = vmatprep.subr.mxu0 %v4740_v31  ;;  %v5044_v31 = vld [vmem:[%s7769_s2 + $0x30] sm:$0xff] }
  0x3c   :  { %534 = vmatprep.subr.mxu1 %v4994_v8  ;;  %640 = vmatpush1.msra.mxu0 %v4746_v32  ;;  %8011 = vst [vmem:[#allocation26_spill] sm:$0xff] %v5044_v31  ;;  %v5051_v32 = vld [vmem:[%s7769_s2 + $0x18] sm:$0xff] }
  0x3d   :  { %535 = vmatpush1.msra.mxu1 %v5001_v13  ;;  %210 = vmatprep.mubr.f32.mxu0 %v7781_v1  ;;  %8012 = vst [vmem:[#allocation27_spill] sm:$0xff] %v5051_v32  ;;  %v5059_v1 = vld [vmem:[%s7769_s2 + $0x10] sm:$0xff] }
  0x3e   :  { %536 = vmatprep.subr.mxu1 %v5008_v17  ;;  %641 = vmatprep.subr.mxu0 %v4753_v33  ;;  %8013 = vst [vmem:[#allocation28_spill] sm:$0xff] %v5059_v1 }
  0x3f   :  { %537 = vmatpush1.msra.mxu1 %v5016_v19  ;;  %3964 = vmatmul.mubr.msk.f32.gmra.mxu0 %vm76_vm1, %v4769_v35  ;;  %v8014_v35 = vmov 0.0  }
  0x40   :  { %538 = vmatprep.subr.mxu1 %v5023_v20  ;;  %642 = vmatpush1.msra.mxu0 %v4762_v34 }
  0x41   :  { %539 = vmatpush1.msra.mxu1 %v5030_v25  ;;  %643 = vmatprep.subr.mxu0 %v4774_v36 }
  0x42   :  { %540 = vmatprep.subr.mxu1 %v5037_v30  ;;  %644 = vmatpush1.msra.mxu0 %v4780_v37 }
  0x43   :  { %541 = vmatpush1.msra.mxu1 %v5044_v31  ;;  %216 = vmatprep.mubr.f32.mxu0 %v8014_v35 }
  0x44   :  { %542 = vmatprep.subr.mxu1 %v5051_v32  ;;  %645 = vmatprep.subr.mxu0 %v4787_v38 }
  0x45   :  { %543 = vmatpush1.msra.mxu1 %v5059_v1  ;;  %3965 = vmatmul.mubr.msk.f32.gmra.mxu0 %vm76_vm1, %v4804_v40  ;;  %v52_v40 = vlaneseq }
  0x46   :  { %577 = vmatmul.mubr.f32.vlgmr.msra.gmra.mxu1 %v8014_v35  ;;  %690 = vmatprep.subr.mxu1 %v4838_v45 }
  0x47   :  { %691 = vmatpush1.msra.mxu1 %v4844_v46  ;;  %646 = vmatpush1.msra.mxu0 %v4797_v39 }
  0x48   :  { %692 = vmatprep.subr.mxu1 %v4851_v47  ;;  %647 = vmatprep.subr.mxu0 %v4809_v41 }
  0x49   :  { %693 = vmatpush1.msra.mxu1 %v4859_v48  ;;  %648 = vmatpush1.msra.mxu0 %v4815_v42 }
  0x4a   :  { %694 = vmatprep.subr.mxu1 %v4865_v49  ;;  %649 = vmatprep.subr.mxu0 %v4822_v43 }
  0x4b   :  { %695 = vmatpush1.msra.mxu1 %v4872_v50  ;;  %650 = vmatpush1.msra.mxu0 %v4831_v44  ;;  %v50_v44 = vld [vmem:[%s7770_s3] sm:$0xf] }
  0x4c   :  { %696 = vmatprep.subr.mxu1 %v4879_v51  ;;  %683 = vmatprep.mubr.f32.mxu0 %v8014_v35 }
  0x4d   :  { %697 = vmatpush1.msra.mxu1 %v4887_v52  ;;  %754 = vmatprep.mubr.f32.mxu1 %v8014_v35 }
  0x4e   :  { %698 = vmatprep.subr.mxu1 %v4894_v53  ;;  %798 = vmatprep.subr.mxu0 %v4574_v4  ;;  %v5113_v4 = vshrl.u32 %v52_v40, 7 }
  0x4f   :  { %699 = vmatpush1.msra.mxu1 %v4901_v54 }
  0x50   :  { %700 = vmatprep.subr.mxu1 %v4908_v55  ;;  %8015 = vst [vmem:[#allocation29_spill] sm:$0xff] %v5113_v4  ;;  %v7809_v35 = vsub.s32 2, %v5113_v4  ;;  %v7814_v42 = vsub.s32 3, %v5113_v4 }
  0x51   :  { %701 = vmatpush1.msra.mxu1 %v4915_v56 }
  0x52   :  { %702 = vmatprep.subr.mxu1 %v4922_v57  ;;  %v5130_v40 = vrot.slane %v50_v44, %v7814_v42 }
  0x53   :  { %703 = vmatpush1.msra.mxu1 %v4930_v58 }
  0x54   :  { %704 = vmatprep.subr.mxu1 %v4937_v59 }
  0x55   :  { %705 = vmatpush1.msra.mxu1 %v4944_v60 }
  0x56   :  { %706 = vmatprep.subr.mxu1 %v4951_v61 }
  0x57   :  { %707 = vmatpush1.msra.mxu1 %v4958_v62 }
  0x58   :  { %708 = vmatprep.subr.mxu1 %v4965_v63 }
  0x59   :  { %709 = vmatpush1.msra.mxu1 %v4973_v0 }
  0x5a   :  { %710 = vmatprep.subr.mxu1 %v4980_v2 }
  0x5b   :  { %711 = vmatpush1.msra.mxu1 %v4987_v3 }
  0x5c   :  { %712 = vmatprep.subr.mxu1 %v4994_v8 }
  0x5d   :  { %713 = vmatpush1.msra.mxu1 %v5001_v13 }
  0x5e   :  { %714 = vmatprep.subr.mxu1 %v5008_v17 }
  0x5f   :  { %715 = vmatpush1.msra.mxu1 %v5016_v19 }
  0x60   :  { %716 = vmatprep.subr.mxu1 %v5023_v20 }
  0x61   :  { %717 = vmatpush1.msra.mxu1 %v5030_v25 }
  0x62   :  { %718 = vmatprep.subr.mxu1 %v5037_v30 }
  0x63   :  { %719 = vmatpush1.msra.mxu1 %v5044_v31 }
  0x64   :  { %720 = vmatprep.subr.mxu1 %v5051_v32 }
  0x65   :  { %721 = vmatpush1.msra.mxu1 %v5059_v1  ;;  %v5126_v1 = vrot.slane %v50_v44, %v7809_v35 }
  0x66   :  { %869 = vmatprep.subr.mxu1 %v4838_v45 }
  0xc6   :  { %v5119_v43 = vpop.f32.mrf.mxu1 }
  0xc8   :  { %v5122_v31 = vpop.f32.mrf.mxu1 }
  0xca   :  { %v295_v45 = vpop.f32.mrf.mxu1 }
  0xcb   :  { %v5133_v32 = vadd.f32 %v295_v45, %v5126_v1 }
  0xcc   :  { %v297_v30 = vpop.f32.mrf.mxu1 }
  0xcd   :  { %8016 = vst [vmem:[#allocation30_spill] sm:$0xff] %v5133_v32  ;;  %v5136_v41 = vadd.f32 %v297_v30, %v5130_v40 }
  0xce   :  { %v301_v25 = vpop.f32.mrf.mxu1 }
  0xcf   :  { %8017 = vst [vmem:[#allocation31_spill] sm:$0xff] %v5136_v41  ;;  %v5139_v39 = vadd.f32 %v301_v25, %v5126_v1 }
  0xd0   :  { %v303_v20 = vpop.f32.mrf.mxu1 }
  0xd1   :  { %8018 = vst [vmem:[#allocation32_spill] sm:$0xff] %v5139_v39  ;;  %v5142_v35 = vadd.f32 %v303_v20, %v5130_v40 }
  0xd2   :  { %v307_v38 = vpop.f32.mrf.mxu1 }
  0xd3   :  { %8019 = vst [vmem:[#allocation33_spill] sm:$0xff] %v5142_v35  ;;  %v5145_v19 = vadd.f32 %v307_v38, %v5126_v1  ;;  %v176_v35 = vpop.f32.mrf.mxu0 }
  0xd4   :  { %v309_v42 = vpop.f32.mrf.mxu1 }
  0xd5   :  { %8020 = vst [vmem:[#allocation34_spill] sm:$0xff] %v5145_v19  ;;  %v5148_v45 = vadd.f32 %v309_v42, %v5130_v40 }
  0xd6   :  { %v313_v32 = vpop.f32.mrf.mxu1 }
  0xd7   :  { %8021 = vst [vmem:[#allocation35_spill] sm:$0xff] %v5148_v45  ;;  %v5151_v30 = vadd.f32 %v313_v32, %v5126_v1  ;;  %v7821_v32 = vsub.s32 1, %v5113_v4 }
  0xd8   :  { %v315_v41 = vpop.f32.mrf.mxu1 }
  0xd9   :  { %8022 = vst [vmem:[#allocation36_spill] sm:$0xff] %v5151_v30  ;;  %v5154_v25 = vadd.f32 %v315_v41, %v5130_v40  ;;  %v178_v30 = vpop.f32.mrf.mxu0  ;;  %v7826_v41 = vsub.s32 0, %v5113_v4 }
  0xda   :  { %v319_v39 = vpop.f32.mrf.mxu1 }
  0xdb   :  { %8023 = vst [vmem:[#allocation37_spill] sm:$0xff] %v5154_v25  ;;  %v5157_v20 = vadd.f32 %v319_v39, %v5126_v1  ;;  %v5170_v39 = vpop.f32.mrf.mxu0 }
  0xdc   :  { %v321_v37 = vpop.f32.mrf.mxu1  ;;  %8028 = vst [vmem:[#allocation42_spill] sm:$0xff] %v5170_v39 }
  0xdd   :  { %8024 = vst [vmem:[#allocation38_spill] sm:$0xff] %v5157_v20  ;;  %v5160_v38 = vadd.f32 %v321_v37, %v5130_v40  ;;  %v5177_v37 = vrot.slane %v50_v44, %v7821_v32 }
  0xde   :  { %v325_v19 = vpop.f32.mrf.mxu1 }
  0xdf   :  { %8025 = vst [vmem:[#allocation39_spill] sm:$0xff] %v5160_v38  ;;  %v5163_v42 = vadd.f32 %v325_v19, %v5126_v1  ;;  %8030 = vst [vmem:[#allocation44_spill] sm:$0xff] %v5177_v37  ;;  %v5181_v19 = vrot.slane %v50_v44, %v7826_v41  ;;  %v179_v39 = vadd.f32 %v178_v30, %v5177_v37 }
  0xe0   :  { %v327_v45 = vpop.f32.mrf.mxu1 }
  0xe1   :  { %8026 = vst [vmem:[#allocation40_spill] sm:$0xff] %v5163_v42  ;;  %v5168_v25 = vadd.f32 %v327_v45, %v5130_v40  ;;  %v5186_v45 = vpop.f32.mrf.mxu0 }
  0xe2   :  { %v331_v20 = vpop.f32.mrf.mxu1  ;;  %8032 = vst [vmem:[#allocation46_spill] sm:$0xff] %v5186_v45 }
  0xe3   :  { %8027 = vst [vmem:[#allocation41_spill] sm:$0xff] %v5168_v25  ;;  %v5173_v17 = vadd.f32 %v331_v20, %v5126_v1  ;;  %v177_v20 = vadd.f32 %v176_v35, %v5181_v19 }
  0xe4   :  { %v333_v42 = vpop.f32.mrf.mxu1 }
  0xe5   :  { %8029 = vst [vmem:[#allocation43_spill] sm:$0xff] %v5173_v17  ;;  %v5184_v38 = vadd.f32 %v333_v42, %v5130_v40  ;;  %v188_v36 = vpop.f32.mrf.mxu0 }
  0xe6   :  { %v507_v25 = vpop.f32.mrf.mxu1  ;;  %v5191_v32 = vadd.f32 %v188_v36, %v5181_v19 }
  0xe7   :  { %8031 = vst [vmem:[#allocation45_spill] sm:$0xff] %v5184_v38  ;;  %v190_v4 = vpop.f32.mrf.mxu0  ;;  %v583_v44 = vadd.f32 %v507_v25, %v177_v20 }
  0xe8   :  { %v509_v17 = vpop.f32.mrf.mxu1  ;;  %8033 = vst [vmem:[#allocation47_spill] sm:$0xff] %v5191_v32  ;;  %v5194_v41 = vadd.f32 %v190_v4, %v5177_v37  ;;  %v8063_v32 = vld [vmem:[#allocation17_spill] sm:$0xff] }
  0xe9   :  { %v584_v13 = vadd.f32 %v509_v17, %v179_v39  ;;  %v3976_v34 = vmul.f32 -1.442695, %v583_v44 }
  0xea   :  { %8034 = vst [vmem:[#allocation48_spill] sm:$0xff] %v5194_v41 }
  0xeb   :  { %v3977_v42 = vmul.f32 -1.442695, %v584_v13 }
  0xed   :  { %v194_v38 = vpop.f32.mrf.mxu0  ;;  %4096 = vpow2.f32 %v3977_v42 }
  0xee   :  { %v5197_v45 = vadd.f32 %v194_v38, %v5181_v19  ;;  %4098 = vpow2.f32 %v3976_v34 }
  0xef   :  { %v196_v30 = vpop.f32.mrf.mxu0 }
  0xf0   :  { %8035 = vst [vmem:[#allocation49_spill] sm:$0xff] %v5197_v45  ;;  %v5200_v35 = vadd.f32 %v196_v30, %v5177_v37 }
  0xf2   :  { %8036 = vst [vmem:[#allocation50_spill] sm:$0xff] %v5200_v35 }
  0xf3   :  { %v200_v36 = vpop.f32.mrf.mxu0 }
  0xf4   :  { %v5203_v17 = vadd.f32 %v200_v36, %v5181_v19 }
  0xf5   :  { %v202_v25 = vpop.f32.mrf.mxu0 }
  0xf6   :  { %8037 = vst [vmem:[#allocation51_spill] sm:$0xff] %v5203_v17  ;;  %v5206_v4 = vadd.f32 %v202_v25, %v5177_v37 }
  0xf8   :  { %8038 = vst [vmem:[#allocation52_spill] sm:$0xff] %v5206_v4 }
  0xf9   :  { %v206_v13 = vpop.f32.mrf.mxu0 }
  0xfa   :  { %v5209_v39 = vadd.f32 %v206_v13, %v5181_v19  ;;  %v4097_v44 = vpop.eup %4096  ;;  %v290_v13 = vadd.f32 %v5119_v43, %v5126_v1 }
  0xfb   :  { %v208_v38 = vpop.f32.mrf.mxu0  ;;  %v4099_v30 = vpop.eup %4098  ;;  %v596_v36 = vadd.f32 1.0, %v4097_v44 }
  0xfc   :  { %8039 = vst [vmem:[#allocation53_spill] sm:$0xff] %v5209_v39  ;;  %v5212_v20 = vadd.f32 %v208_v38, %v5177_v37  ;;  %v590_v35 = vadd.f32 1.0, %v4099_v30  ;;  %v292_v38 = vadd.f32 %v5122_v31, %v5130_v40 }
  0xfd   :  { %4100 = vrcp.f32 %v596_v36  ;;  %v8048_v36 = vld [vmem:[#allocation20_spill] sm:$0xff] }
  0xfe   :  { %8040 = vst [vmem:[#allocation54_spill] sm:$0xff] %v5212_v20  ;;  %4102 = vrcp.f32 %v590_v35 }
  0xff   :  { %v212_v42 = vpop.f32.mrf.mxu0 }
 0x100   :  { %v5215_v34 = vadd.f32 %v212_v42, %v5181_v19 }
 0x101   :  { %v214_v17 = vpop.f32.mrf.mxu0 }
 0x102   :  { %8041 = vst [vmem:[#allocation55_spill] sm:$0xff] %v5215_v34  ;;  %v5218_v25 = vadd.f32 %v214_v17, %v5177_v37 }
 0x104   :  { %8042 = vst [vmem:[#allocation56_spill] sm:$0xff] %v5218_v25 }
 0x105   :  { %v218_v45 = vpop.f32.mrf.mxu0 }
 0x106   :  { %v578_v39 = vpop.f32.mrf.mxu1  ;;  %v5225_v44 = vadd.f32 %v218_v45, %v5181_v19  ;;  %v8045_v45 = vld [vmem:[#allocation7_spill] sm:$0xff] }
 0x107   :  { %v585_v20 = vadd.f32 %v578_v39, %v290_v13  ;;  %v8050_v13 = vld [vmem:[#allocation21_spill] sm:$0xff] }
 0x108   :  { %v580_v4 = vpop.f32.mrf.mxu1  ;;  %8043 = vst [vmem:[#allocation57_spill] sm:$0xff] %v5225_v44  ;;  %v8061_v44 = vld [vmem:[#allocation16_spill] sm:$0xff] }
 0x109   :  { %4104 = vtanh.f32 %v585_v20  ;;  %v586_v42 = vadd.f32 %v580_v4, %v292_v38  ;;  %v8046_v20 = vld [vmem:[#allocation8_spill] sm:$0xff]  ;;  %v8051_v38 = vld [vmem:[#allocation11_spill] sm:$0xff] }
 0x10a   :  { %v4101_v17 = vpop.eup %4100 }
 0x10b   :  { %v3978_v30 = vmul.f32 -1.442695, %v586_v42  ;;  %v4103_v25 = vpop.eup %4102  ;;  %v606_v1 = vmul.f32 0.0, %v4101_v17  ;;  %v8052_v42 = vld [vmem:[#allocation22_spill] sm:$0xff]  ;;  %v8054_v17 = vld [vmem:[#allocation23_spill] sm:$0xff] }
 0x10d   :  { %4106 = vpow2.f32 %v3978_v30  ;;  %v8053_v30 = vld [vmem:[#allocation12_spill] sm:$0xff] }
 0x116   :  { %v4105_v34 = vpop.eup %4104 }
 0x117   :  { %v607_v43 = vmul.f32 %v4105_v34, %v4103_v25  ;;  %v8047_v34 = vld [vmem:[#allocation9_spill] sm:$0xff]  ;;  %v8049_v25 = vld [vmem:[#allocation10_spill] sm:$0xff] }
 0x119   :  { %v5227_v41 = vadd.f32 %v607_v43, %v606_v1  ;;  %v8055_v1 = vld [vmem:[#allocation13_spill] sm:$0xff]  ;;  %v8056_v43 = vld [vmem:[#allocation24_spill] sm:$0xff] }
 0x11a   :  { %v4107_v31 = vpop.eup %4106 }
 0x11b   :  { %v603_v40 = vadd.f32 1.0, %v4107_v31  ;;  %4108 = vtanh.f32 %v5227_v41  ;;  %v8057_v31 = vld [vmem:[#allocation14_spill] sm:$0xff] }
 0x11d   :  { %4110 = vrcp.f32 %v603_v40  ;;  %v8058_v40 = vld [vmem:[#allocation25_spill] sm:$0xff] }
 0x128   :  { %v4109_v35 = vpop.eup %4108 }
 0x12a   :  { %v4111_v39 = vpop.eup %4110 }
 0x12b   :  { %v5230_v4 = vmul.f32 %v4111_v39, %v4109_v35  ;;  %v8059_v35 = vld [vmem:[#allocation15_spill] sm:$0xff]  ;;  %v8060_v39 = vld [vmem:[#allocation26_spill] sm:$0xff] }
 0x12d   :  { %8044 = vst [vmem:[#allocation58_spill] sm:$0xff] %v5230_v4  ;;  %684 = vmatmul.mubr.f32.vlgmr.msra.gmra.mxu0 %v5230_v4  ;;  %755 = vmatmul.mubr.f32.vlgmr.msra.gmra.mxu1 %v5230_v4  ;;  %v8062_v4 = vld [vmem:[#allocation27_spill] sm:$0xff] }
 0x12e   :  { %799 = vmatpush1.msra.mxu0 %v4580_v5  ;;  %870 = vmatpush1.msra.mxu1 %v4844_v46 }
 0x12f   :  { %800 = vmatprep.subr.mxu0 %v4586_v6  ;;  %871 = vmatprep.subr.mxu1 %v4851_v47 }
 0x130   :  { %801 = vmatpush1.msra.mxu0 %v4593_v7  ;;  %872 = vmatpush1.msra.mxu1 %v4859_v48 }
 0x131   :  { %802 = vmatprep.subr.mxu0 %v4605_v9  ;;  %873 = vmatprep.subr.mxu1 %v4865_v49 }
 0x132   :  { %803 = vmatpush1.msra.mxu0 %v4611_v10  ;;  %874 = vmatpush1.msra.mxu1 %v4872_v50 }
 0x133   :  { %804 = vmatprep.subr.mxu0 %v4617_v11  ;;  %875 = vmatprep.subr.mxu1 %v4879_v51 }
 0x134   :  { %805 = vmatpush1.msra.mxu0 %v4625_v12  ;;  %876 = vmatpush1.msra.mxu1 %v4887_v52 }
 0x135   :  { %806 = vmatprep.subr.mxu0 %v4637_v14  ;;  %877 = vmatprep.subr.mxu1 %v4894_v53 }
 0x136   :  { %807 = vmatpush1.msra.mxu0 %v4643_v15  ;;  %878 = vmatpush1.msra.mxu1 %v4901_v54 }
 0x137   :  { %808 = vmatprep.subr.mxu0 %v4649_v16  ;;  %879 = vmatprep.subr.mxu1 %v4908_v55 }
 0x138   :  { %809 = vmatpush1.msra.mxu0 %v4660_v18  ;;  %880 = vmatpush1.msra.mxu1 %v4915_v56 }
 0x139   :  { %810 = vmatprep.subr.mxu0 %v4672_v21  ;;  %881 = vmatprep.subr.mxu1 %v4922_v57 }
 0x13a   :  { %811 = vmatpush1.msra.mxu0 %v4678_v22  ;;  %882 = vmatpush1.msra.mxu1 %v4930_v58 }
 0x13b   :  { %812 = vmatprep.subr.mxu0 %v4685_v23  ;;  %883 = vmatprep.subr.mxu1 %v4937_v59 }
 0x13c   :  { %813 = vmatpush1.msra.mxu0 %v4694_v24  ;;  %884 = vmatpush1.msra.mxu1 %v4944_v60 }
 0x13d   :  { %814 = vmatprep.subr.mxu0 %v4706_v26  ;;  %885 = vmatprep.subr.mxu1 %v4951_v61 }
 0x13e   :  { %815 = vmatpush1.msra.mxu0 %v4712_v27  ;;  %886 = vmatpush1.msra.mxu1 %v4958_v62 }
 0x13f   :  { %816 = vmatprep.subr.mxu0 %v4719_v28  ;;  %887 = vmatprep.subr.mxu1 %v4965_v63 }
 0x140   :  { %817 = vmatpush1.msra.mxu0 %v4728_v29  ;;  %888 = vmatpush1.msra.mxu1 %v4973_v0 }
 0x141   :  { %818 = vmatprep.subr.mxu0 %v8045_v45  ;;  %889 = vmatprep.subr.mxu1 %v4980_v2 }
 0x142   :  { %819 = vmatpush1.msra.mxu0 %v8046_v20  ;;  %890 = vmatpush1.msra.mxu1 %v4987_v3 }
 0x143   :  { %820 = vmatprep.subr.mxu0 %v4753_v33  ;;  %891 = vmatprep.subr.mxu1 %v4994_v8 }
 0x144   :  { %821 = vmatpush1.msra.mxu0 %v8047_v34  ;;  %892 = vmatpush1.msra.mxu1 %v8048_v36  ;;  %v8072_v36 = vld [vmem:[#allocation30_spill] sm:$0xff] }
 0x145   :  { %822 = vmatprep.subr.mxu0 %v8049_v25  ;;  %893 = vmatprep.subr.mxu1 %v8050_v13  ;;  %v8071_v25 = vld [vmem:[#allocation31_spill] sm:$0xff] }
 0x146   :  { %823 = vmatpush1.msra.mxu0 %v8051_v38  ;;  %894 = vmatpush1.msra.mxu1 %v8052_v42 }
 0x147   :  { %824 = vmatprep.subr.mxu0 %v8053_v30  ;;  %895 = vmatprep.subr.mxu1 %v8054_v17  ;;  %v8064_v30 = vmov 0.0   ;;  %v8065_v17 = vld [vmem:[#allocation28_spill] sm:$0xff] }
 0x148   :  { %825 = vmatpush1.msra.mxu0 %v8055_v1  ;;  %896 = vmatpush1.msra.mxu1 %v8056_v43  ;;  %v8066_v43 = vld [vmem:[#allocation6_spill] sm:$0xff] }
 0x149   :  { %826 = vmatprep.subr.mxu0 %v8057_v31  ;;  %897 = vmatprep.subr.mxu1 %v8058_v40  ;;  %v8067_v31 = vld [vmem:[#allocation18_spill] sm:$0xff]  ;;  %v5300_v40 = vpop.f32.mrf.mxu0 }
 0x14a   :  { %827 = vmatpush1.msra.mxu0 %v8059_v35  ;;  %898 = vmatpush1.msra.mxu1 %v8060_v39  ;;  %8068 = vst [vmem:[#allocation7_spill] sm:$0xff] %v5300_v40  ;;  %v8069_v39 = vld [vmem:[#allocation42_spill] sm:$0xff] }
 0x14b   :  { %828 = vmatprep.subr.mxu0 %v8061_v44  ;;  %899 = vmatprep.subr.mxu1 %v8062_v4  ;;  %v183_v35 = vadd.f32 %v8069_v39, %v5181_v19  ;;  %v8070_v4 = vld [vmem:[#allocation46_spill] sm:$0xff] }
 0x14c   :  { %829 = vmatpush1.msra.mxu0 %v8063_v32  ;;  %862 = vmatprep.mubr.f32.mxu0 %v8064_v30  ;;  %v185_v1 = vadd.f32 %v8070_v4, %v5177_v37  ;;  %v5816_v37 = vld [vmem:[%s7769_s2 + $0x58] sm:$0xff] }
 0x14d   :  { %900 = vmatpush1.msra.mxu1 %v8065_v17  ;;  %933 = vmatprep.mubr.f32.mxu1 %v8064_v30 }
 0x14e   :  { %977 = vmatprep.subr.mxu0 %v8066_v43  ;;  %1048 = vmatprep.subr.mxu1 %v8067_v31 }
 0x1ed   :  { %v685_v44 = vpop.f32.mrf.mxu0  ;;  %v756_v17 = vpop.f32.mrf.mxu1 }
 0x1ee   :  { %v761_v32 = vadd.f32 %v685_v44, %v183_v35  ;;  %v763_v40 = vadd.f32 %v756_v17, %v8072_v36 }
 0x1ef   :  { %v687_v42 = vpop.f32.mrf.mxu0  ;;  %v758_v43 = vpop.f32.mrf.mxu1 }
 0x1f0   :  { %v3979_v38 = vmul.f32 -1.442695, %v761_v32  ;;  %v762_v13 = vadd.f32 %v687_v42, %v185_v1  ;;  %v764_v31 = vadd.f32 %v758_v43, %v8071_v25  ;;  %v8097_v43 = vld [vmem:[#allocation48_spill] sm:$0xff] }
 0x1f2   :  { %4112 = vpow2.f32 %v3979_v38  ;;  %v3980_v30 = vmul.f32 -1.442695, %v762_v13  ;;  %v3981_v34 = vmul.f32 -1.442695, %v764_v31 }
 0x1f4   :  { %4114 = vpow2.f32 %v3980_v30 }
 0x1f5   :  { %4116 = vtanh.f32 %v763_v40 }
 0x1f6   :  { %4118 = vpow2.f32 %v3981_v34  ;;  %v8096_v34 = vld [vmem:[#allocation47_spill] sm:$0xff] }
 0x1ff   :  { %v4113_v8 = vpop.eup %4112 }
 0x200   :  { %v768_v19 = vadd.f32 1.0, %v4113_v8 }
 0x201   :  { %v4115_v39 = vpop.eup %4114 }
 0x202   :  { %4120 = vrcp.f32 %v768_v19  ;;  %v774_v44 = vadd.f32 1.0, %v4115_v39  ;;  %v4117_v32 = vpop.eup %4116 }
 0x203   :  { %v4119_v4 = vpop.eup %4118 }
 0x204   :  { %4122 = vrcp.f32 %v774_v44  ;;  %v781_v30 = vadd.f32 1.0, %v4119_v4  ;;  %v8098_v4 = vld [vmem:[#allocation33_spill] sm:$0xff] }
 0x206   :  { %4124 = vrcp.f32 %v781_v30 }
 0x20f   :  { %v4121_v38 = vpop.eup %4120 }
 0x210   :  { %v785_v42 = vmul.f32 %v4121_v38, %v4117_v32 }
 0x211   :  { %v4123_v13 = vpop.eup %4122 }
 0x212   :  { %v784_v1 = vmul.f32 %v4123_v13, %v5227_v41  ;;  %v5383_v41 = vld [vmem:[%s7769_s2 + $0x1e8] sm:$0xff] }
 0x213   :  { %v4125_v8 = vpop.eup %4124  ;;  %8094 = vst [vmem:[#allocation6_spill] sm:$0xff] %v5383_v41 }
 0x214   :  { %v5309_v25 = vadd.f32 %v785_v42, %v784_v1  ;;  %v8099_v42 = vld [vmem:[#allocation32_spill] sm:$0xff] }
 0x216   :  { %4126 = vtanh.f32 %v5309_v25 }
 0x223   :  { %v4127_v36 = vpop.eup %4126 }
 0x224   :  { %v5312_v17 = vmul.f32 %v4127_v36, %v4125_v8 }
 0x226   :  { %8073 = vst [vmem:[#allocation8_spill] sm:$0xff] %v5312_v17  ;;  %863 = vmatmul.mubr.f32.vlgmr.msra.gmra.mxu0 %v5312_v17  ;;  %934 = vmatmul.mubr.f32.vlgmr.msra.gmra.mxu1 %v5312_v17  ;;  %v5837_v17 = vld [vmem:[%s7769_s2 + $0x30] sm:$0xff] }
 0x227   :  { %978 = vmatpush1.msra.mxu0 %v4580_v5  ;;  %1049 = vmatpush1.msra.mxu1 %v4844_v46  ;;  %v8074_v5 = vld [vmem:[#allocation19_spill] sm:$0xff] }
 0x228   :  { %979 = vmatprep.subr.mxu0 %v4586_v6  ;;  %1050 = vmatprep.subr.mxu1 %v4851_v47  ;;  %v8075_v6 = vld [vmem:[#allocation9_spill] sm:$0xff] }
 0x229   :  { %980 = vmatpush1.msra.mxu0 %v4593_v7  ;;  %1051 = vmatpush1.msra.mxu1 %v4859_v48  ;;  %v8076_v7 = vld [vmem:[#allocation20_spill] sm:$0xff] }
 0x22a   :  { %981 = vmatprep.subr.mxu0 %v4605_v9  ;;  %1052 = vmatprep.subr.mxu1 %v4865_v49  ;;  %v8077_v9 = vld [vmem:[#allocation10_spill] sm:$0xff] }
 0x22b   :  { %982 = vmatpush1.msra.mxu0 %v4611_v10  ;;  %1053 = vmatpush1.msra.mxu1 %v4872_v50  ;;  %v8078_v10 = vld [vmem:[#allocation21_spill] sm:$0xff] }
 0x22c   :  { %983 = vmatprep.subr.mxu0 %v4617_v11  ;;  %1054 = vmatprep.subr.mxu1 %v4879_v51  ;;  %v8079_v11 = vld [vmem:[#allocation11_spill] sm:$0xff] }
 0x22d   :  { %984 = vmatpush1.msra.mxu0 %v4625_v12  ;;  %1055 = vmatpush1.msra.mxu1 %v4887_v52  ;;  %v8080_v12 = vld [vmem:[#allocation22_spill] sm:$0xff] }
 0x22e   :  { %985 = vmatprep.subr.mxu0 %v4637_v14  ;;  %1056 = vmatprep.subr.mxu1 %v4894_v53  ;;  %v8081_v14 = vld [vmem:[#allocation12_spill] sm:$0xff] }
 0x22f   :  { %986 = vmatpush1.msra.mxu0 %v4643_v15  ;;  %1057 = vmatpush1.msra.mxu1 %v4901_v54  ;;  %v8082_v15 = vld [vmem:[#allocation23_spill] sm:$0xff] }
 0x230   :  { %987 = vmatprep.subr.mxu0 %v4649_v16  ;;  %1058 = vmatprep.subr.mxu1 %v4908_v55  ;;  %v8083_v16 = vld [vmem:[#allocation13_spill] sm:$0xff] }
 0x231   :  { %988 = vmatpush1.msra.mxu0 %v4660_v18  ;;  %1059 = vmatpush1.msra.mxu1 %v4915_v56  ;;  %v8084_v18 = vld [vmem:[#allocation24_spill] sm:$0xff] }
 0x232   :  { %989 = vmatprep.subr.mxu0 %v4672_v21  ;;  %1060 = vmatprep.subr.mxu1 %v4922_v57  ;;  %v8085_v21 = vld [vmem:[#allocation14_spill] sm:$0xff]  ;;  %8118 = vst [vmem:[#allocation24_spill] sm:$0xff] %v5816_v37 }
 0x233   :  { %990 = vmatpush1.msra.mxu0 %v4678_v22  ;;  %1061 = vmatpush1.msra.mxu1 %v4930_v58  ;;  %v8086_v22 = vld [vmem:[#allocation25_spill] sm:$0xff] }
 0x234   :  { %991 = vmatprep.subr.mxu0 %v4685_v23  ;;  %1062 = vmatprep.subr.mxu1 %v4937_v59  ;;  %v8087_v23 = vld [vmem:[#allocation15_spill] sm:$0xff] }
 0x235   :  { %992 = vmatpush1.msra.mxu0 %v4694_v24  ;;  %1063 = vmatpush1.msra.mxu1 %v4944_v60  ;;  %v8088_v24 = vld [vmem:[#allocation26_spill] sm:$0xff]  ;;  %8121 = vst [vmem:[#allocation15_spill] sm:$0xff] %v5837_v17 }
 0x236   :  { %993 = vmatprep.subr.mxu0 %v4706_v26  ;;  %1064 = vmatprep.subr.mxu1 %v4951_v61  ;;  %v8089_v26 = vld [vmem:[#allocation16_spill] sm:$0xff] }
 0x237   :  { %994 = vmatpush1.msra.mxu0 %v4712_v27  ;;  %1065 = vmatpush1.msra.mxu1 %v4958_v62  ;;  %v8090_v27 = vld [vmem:[#allocation27_spill] sm:$0xff] }
 0x238   :  { %995 = vmatprep.subr.mxu0 %v4719_v28  ;;  %1066 = vmatprep.subr.mxu1 %v4965_v63  ;;  %v8091_v28 = vld [vmem:[#allocation17_spill] sm:$0xff] }
 0x239   :  { %996 = vmatpush1.msra.mxu0 %v4728_v29  ;;  %1067 = vmatpush1.msra.mxu1 %v4973_v0  ;;  %v8092_v29 = vmov 0.0  }
 0x23a   :  { %997 = vmatprep.subr.mxu0 %v8045_v45  ;;  %1068 = vmatprep.subr.mxu1 %v4980_v2  ;;  %v8095_v45 = vld [vmem:[#allocation18_spill] sm:$0xff] }
 0x23b   :  { %998 = vmatpush1.msra.mxu0 %v8046_v20  ;;  %1069 = vmatpush1.msra.mxu1 %v4987_v3 }
 0x23c   :  { %999 = vmatprep.subr.mxu0 %v4753_v33  ;;  %1070 = vmatprep.subr.mxu1 %v8074_v5  ;;  %v8093_v33 = vld [vmem:[#allocation28_spill] sm:$0xff] }
 0x23d   :  { %1000 = vmatpush1.msra.mxu0 %v8075_v6  ;;  %1071 = vmatpush1.msra.mxu1 %v8076_v7 }
 0x23e   :  { %1001 = vmatprep.subr.mxu0 %v8077_v9  ;;  %1072 = vmatprep.subr.mxu1 %v8078_v10 }
 0x23f   :  { %1002 = vmatpush1.msra.mxu0 %v8079_v11  ;;  %1073 = vmatpush1.msra.mxu1 %v8080_v12 }
 0x240   :  { %1003 = vmatprep.subr.mxu0 %v8081_v14  ;;  %1074 = vmatprep.subr.mxu1 %v8082_v15 }
 0x241   :  { %1004 = vmatpush1.msra.mxu0 %v8083_v16  ;;  %1075 = vmatpush1.msra.mxu1 %v8084_v18 }
 0x242   :  { %1005 = vmatprep.subr.mxu0 %v8085_v21  ;;  %1076 = vmatprep.subr.mxu1 %v8086_v22 }
 0x243   :  { %1006 = vmatpush1.msra.mxu0 %v8087_v23  ;;  %1077 = vmatpush1.msra.mxu1 %v8088_v24 }
 0x244   :  { %1007 = vmatprep.subr.mxu0 %v8089_v26  ;;  %1078 = vmatprep.subr.mxu1 %v8090_v27 }
 0x245   :  { %1008 = vmatpush1.msra.mxu0 %v8091_v28  ;;  %1041 = vmatprep.mubr.f32.mxu0 %v8092_v29 }
 0x246   :  { %1079 = vmatpush1.msra.mxu1 %v8093_v33  ;;  %1112 = vmatprep.mubr.f32.mxu1 %v8092_v29 }
 0x247   :  { %1156 = vmatprep.subr.mxu0 %v5383_v41  ;;  %1227 = vmatprep.subr.mxu1 %v8095_v45 }
 0x2e6   :  { %v864_v20 = vpop.f32.mrf.mxu0  ;;  %v935_v39 = vpop.f32.mrf.mxu1 }
 0x2e7   :  { %v940_v31 = vadd.f32 %v864_v20, %v8096_v34  ;;  %v942_v13 = vadd.f32 %v935_v39, %v8099_v42  ;;  %v8112_v42 = vld [vmem:[#allocation35_spill] sm:$0xff] }
 0x2e8   :  { %v866_v40 = vpop.f32.mrf.mxu0  ;;  %v937_v32 = vpop.f32.mrf.mxu1 }
 0x2e9   :  { %v3982_v35 = vmul.f32 -1.442695, %v940_v31  ;;  %v941_v19 = vadd.f32 %v866_v40, %v8097_v43  ;;  %v943_v38 = vadd.f32 %v937_v32, %v8098_v4  ;;  %v5402_v31 = vld [vmem:[%s7769_s2 + $0x1e0] sm:$0xff] }
 0x2ea   :  { %v5416_v40 = vld [vmem:[%s7769_s2 + $0x1c0] sm:$0xff] }
 0x2eb   :  { %4128 = vpow2.f32 %v3982_v35  ;;  %v3983_v44 = vmul.f32 -1.442695, %v941_v19  ;;  %v3984_v30 = vmul.f32 -1.442695, %v943_v38  ;;  %v8110_v35 = vld [vmem:[#allocation49_spill] sm:$0xff] }
 0x2ed   :  { %4130 = vpow2.f32 %v3983_v44  ;;  %v8111_v44 = vld [vmem:[#allocation50_spill] sm:$0xff] }
 0x2ee   :  { %4132 = vtanh.f32 %v942_v13 }
 0x2ef   :  { %4134 = vpow2.f32 %v3984_v30  ;;  %v8113_v30 = vld [vmem:[#allocation34_spill] sm:$0xff] }
 0x2f8   :  { %v4129_v1 = vpop.eup %4128 }
 0x2f9   :  { %v947_v8 = vadd.f32 1.0, %v4129_v1 }
 0x2fa   :  { %v4131_v36 = vpop.eup %4130 }
 0x2fb   :  { %4136 = vrcp.f32 %v947_v8  ;;  %v953_v6 = vadd.f32 1.0, %v4131_v36  ;;  %v4133_v9 = vpop.eup %4132 }
 0x2fc   :  { %v4135_v11 = vpop.eup %4134 }
 0x2fd   :  { %4138 = vrcp.f32 %v953_v6  ;;  %v960_v23 = vadd.f32 1.0, %v4135_v11 }
 0x2ff   :  { %4140 = vrcp.f32 %v960_v23 }
 0x308   :  { %v4137_v14 = vpop.eup %4136 }
 0x309   :  { %v964_v16 = vmul.f32 %v4137_v14, %v4133_v9 }
 0x30a   :  { %v4139_v21 = vpop.eup %4138 }
 0x30b   :  { %v963_v26 = vmul.f32 %v4139_v21, %v5309_v25  ;;  %v5409_v25 = vld [vmem:[%s7769_s2 + $0x1c8] sm:$0xff] }
 0x30c   :  { %v4141_v45 = vpop.eup %4140 }
 0x30d   :  { %v5392_v28 = vadd.f32 %v964_v16, %v963_v26 }
 0x30f   :  { %4142 = vtanh.f32 %v5392_v28 }
 0x31c   :  { %v4143_v20 = vpop.eup %4142 }
 0x31d   :  { %v5395_v34 = vmul.f32 %v4143_v20, %v4141_v45 }
 0x31f   :  { %8100 = vst [vmem:[#allocation42_spill] sm:$0xff] %v5395_v34  ;;  %1042 = vmatmul.mubr.f32.vlgmr.msra.gmra.mxu0 %v5395_v34  ;;  %1113 = vmatmul.mubr.f32.vlgmr.msra.gmra.mxu1 %v5395_v34  ;;  %v5830_v34 = vld [vmem:[%s7769_s2 + $0x38] sm:$0xff] }
 0x320   :  { %1157 = vmatpush1.msra.mxu0 %v5402_v31  ;;  %1228 = vmatpush1.msra.mxu1 %v4844_v46  ;;  %v5423_v46 = vld [vmem:[%s7769_s2 + $0x1a8] sm:$0xff]  ;;  %8120 = vst [vmem:[#allocation25_spill] sm:$0xff] %v5830_v34 }
 0x321   :  { %1158 = vmatprep.subr.mxu0 %v5409_v25  ;;  %1229 = vmatprep.subr.mxu1 %v4851_v47  ;;  %v5430_v47 = vld [vmem:[%s7769_s2 + $0x1a0] sm:$0xff] }
 0x322   :  { %1159 = vmatpush1.msra.mxu0 %v5416_v40  ;;  %1230 = vmatpush1.msra.mxu1 %v4859_v48  ;;  %v5437_v48 = vld [vmem:[%s7769_s2 + $0x188] sm:$0xff] }
 0x323   :  { %1160 = vmatprep.subr.mxu0 %v5423_v46  ;;  %1231 = vmatprep.subr.mxu1 %v4865_v49  ;;  %v5444_v49 = vld [vmem:[%s7769_s2 + $0x180] sm:$0xff] }
 0x324   :  { %1161 = vmatpush1.msra.mxu0 %v5430_v47  ;;  %1232 = vmatpush1.msra.mxu1 %v4872_v50  ;;  %v5451_v50 = vld [vmem:[%s7769_s2 + $0x168] sm:$0xff] }
 0x325   :  { %1162 = vmatprep.subr.mxu0 %v5437_v48  ;;  %1233 = vmatprep.subr.mxu1 %v4879_v51  ;;  %v5458_v51 = vld [vmem:[%s7769_s2 + $0x160] sm:$0xff] }
 0x326   :  { %1163 = vmatpush1.msra.mxu0 %v5444_v49  ;;  %1234 = vmatpush1.msra.mxu1 %v4887_v52  ;;  %v5465_v52 = vld [vmem:[%s7769_s2 + $0x148] sm:$0xff] }
 0x327   :  { %1164 = vmatprep.subr.mxu0 %v5451_v50  ;;  %1235 = vmatprep.subr.mxu1 %v4894_v53  ;;  %v5472_v53 = vld [vmem:[%s7769_s2 + $0x140] sm:$0xff] }
 0x328   :  { %1165 = vmatpush1.msra.mxu0 %v5458_v51  ;;  %1236 = vmatpush1.msra.mxu1 %v4901_v54  ;;  %v5479_v54 = vld [vmem:[%s7769_s2 + $0x128] sm:$0xff] }
 0x329   :  { %1166 = vmatprep.subr.mxu0 %v5465_v52  ;;  %1237 = vmatprep.subr.mxu1 %v4908_v55  ;;  %v5486_v55 = vld [vmem:[%s7769_s2 + $0x120] sm:$0xff] }
 0x32a   :  { %1167 = vmatpush1.msra.mxu0 %v5472_v53  ;;  %1238 = vmatpush1.msra.mxu1 %v4915_v56  ;;  %v5493_v56 = vld [vmem:[%s7769_s2 + $0x108] sm:$0xff] }
 0x32b   :  { %1168 = vmatprep.subr.mxu0 %v5479_v54  ;;  %1239 = vmatprep.subr.mxu1 %v4922_v57  ;;  %v5500_v57 = vld [vmem:[%s7769_s2 + $0x100] sm:$0xff] }
 0x32c   :  { %1169 = vmatpush1.msra.mxu0 %v5486_v55  ;;  %1240 = vmatpush1.msra.mxu1 %v4930_v58  ;;  %v5507_v58 = vld [vmem:[%s7769_s2 + $0xe8] sm:$0xff] }
 0x32d   :  { %1170 = vmatprep.subr.mxu0 %v5493_v56  ;;  %1241 = vmatprep.subr.mxu1 %v4937_v59  ;;  %v5514_v59 = vld [vmem:[%s7769_s2 + $0xe0] sm:$0xff] }
 0x32e   :  { %1171 = vmatpush1.msra.mxu0 %v5500_v57  ;;  %1242 = vmatpush1.msra.mxu1 %v4944_v60  ;;  %v5521_v60 = vld [vmem:[%s7769_s2 + $0xc8] sm:$0xff] }
 0x32f   :  { %1172 = vmatprep.subr.mxu0 %v5507_v58  ;;  %1243 = vmatprep.subr.mxu1 %v4951_v61  ;;  %v5528_v61 = vld [vmem:[%s7769_s2 + $0xc0] sm:$0xff] }
 0x330   :  { %1173 = vmatpush1.msra.mxu0 %v5514_v59  ;;  %1244 = vmatpush1.msra.mxu1 %v4958_v62  ;;  %v5535_v62 = vld [vmem:[%s7769_s2 + $0xa8] sm:$0xff] }
 0x331   :  { %1174 = vmatprep.subr.mxu0 %v5521_v60  ;;  %1245 = vmatprep.subr.mxu1 %v4965_v63  ;;  %v5542_v63 = vld [vmem:[%s7769_s2 + $0xa0] sm:$0xff] }
 0x332   :  { %1175 = vmatpush1.msra.mxu0 %v5528_v61  ;;  %1246 = vmatpush1.msra.mxu1 %v4973_v0  ;;  %v5549_v0 = vld [vmem:[%s7769_s2 + $0x88] sm:$0xff] }
 0x333   :  { %1176 = vmatprep.subr.mxu0 %v5535_v62  ;;  %1247 = vmatprep.subr.mxu1 %v4980_v2  ;;  %v5556_v2 = vld [vmem:[%s7769_s2 + $0x80] sm:$0xff] }
 0x334   :  { %1177 = vmatpush1.msra.mxu0 %v5542_v63  ;;  %1248 = vmatpush1.msra.mxu1 %v4987_v3  ;;  %v5563_v3 = vld [vmem:[%s7769_s2 + $0x68] sm:$0xff] }
 0x335   :  { %1178 = vmatprep.subr.mxu0 %v5549_v0  ;;  %1249 = vmatprep.subr.mxu1 %v8074_v5  ;;  %8101 = vst [vmem:[#allocation46_spill] sm:$0xff] %v5563_v3  ;;  %v5570_v5 = vld [vmem:[%s7769_s2 + $0x60] sm:$0xff] }
 0x336   :  { %1179 = vmatpush1.msra.mxu0 %v5556_v2  ;;  %1250 = vmatpush1.msra.mxu1 %v8076_v7  ;;  %8102 = vst [vmem:[#allocation31_spill] sm:$0xff] %v5570_v5  ;;  %v5577_v7 = vld [vmem:[%s7769_s2 + $0x48] sm:$0xff] }
 0x337   :  { %1180 = vmatprep.subr.mxu0 %v5563_v3  ;;  %1251 = vmatprep.subr.mxu1 %v8078_v10  ;;  %8103 = vst [vmem:[#allocation30_spill] sm:$0xff] %v5577_v7  ;;  %v5584_v10 = vld [vmem:[%s7769_s2 + $0x40] sm:$0xff] }
 0x338   :  { %1181 = vmatpush1.msra.mxu0 %v5570_v5  ;;  %1252 = vmatpush1.msra.mxu1 %v8080_v12  ;;  %8104 = vst [vmem:[#allocation19_spill] sm:$0xff] %v5584_v10  ;;  %v5591_v12 = vld [vmem:[%s7769_s2 + $0x28] sm:$0xff] }
 0x339   :  { %1182 = vmatprep.subr.mxu0 %v5577_v7  ;;  %1253 = vmatprep.subr.mxu1 %v8082_v15  ;;  %8105 = vst [vmem:[#allocation9_spill] sm:$0xff] %v5591_v12  ;;  %v5598_v15 = vld [vmem:[%s7769_s2 + $0x20] sm:$0xff] }
 0x33a   :  { %1183 = vmatpush1.msra.mxu0 %v5584_v10  ;;  %1254 = vmatpush1.msra.mxu1 %v8084_v18  ;;  %8106 = vst [vmem:[#allocation20_spill] sm:$0xff] %v5598_v15  ;;  %v5605_v18 = vld [vmem:[%s7769_s2 + $0x8] sm:$0xff] }
 0x33b   :  { %1184 = vmatprep.subr.mxu0 %v5591_v12  ;;  %1255 = vmatprep.subr.mxu1 %v8086_v22  ;;  %8107 = vst [vmem:[#allocation10_spill] sm:$0xff] %v5605_v18  ;;  %v5612_v22 = vld [vmem:[%s7769_s2] sm:$0xff] }
 0x33c   :  { %1185 = vmatpush1.msra.mxu0 %v5598_v15  ;;  %1256 = vmatpush1.msra.mxu1 %v8088_v24  ;;  %8108 = vst [vmem:[#allocation21_spill] sm:$0xff] %v5612_v22  ;;  %v5622_v24 = vld [vmem:[%s7769_s2 + $0x1f8] sm:$0xff] }
 0x33d   :  { %1186 = vmatprep.subr.mxu0 %v5605_v18  ;;  %1257 = vmatprep.subr.mxu1 %v8090_v27  ;;  %8109 = vst [vmem:[#allocation11_spill] sm:$0xff] %v5622_v24 }
 0x33e   :  { %1187 = vmatpush1.msra.mxu0 %v5612_v22  ;;  %1220 = vmatprep.mubr.f32.mxu0 %v8092_v29 }
 0x33f   :  { %1258 = vmatpush1.msra.mxu1 %v8093_v33  ;;  %1291 = vmatprep.mubr.f32.mxu1 %v8092_v29 }
 0x340   :  { %1335 = vmatprep.subr.mxu0 %v5383_v41  ;;  %1406 = vmatprep.subr.mxu1 %v5622_v24 }
 0x3df   :  { %v1043_v27 = vpop.f32.mrf.mxu0  ;;  %v1114_v33 = vpop.f32.mrf.mxu1 }
 0x3e0   :  { %v1119_v43 = vadd.f32 %v1043_v27, %v8110_v35  ;;  %v1121_v1 = vadd.f32 %v1114_v33, %v8113_v30  ;;  %v5669_v33 = vld [vmem:[%s7769_s2 + $0x1b0] sm:$0xff]  ;;  %v5704_v30 = vld [vmem:[%s7769_s2 + $0x158] sm:$0xff] }
 0x3e1   :  { %v1045_v19 = vpop.f32.mrf.mxu0  ;;  %v1116_v38 = vpop.f32.mrf.mxu1 }
 0x3e2   :  { %v3985_v39 = vmul.f32 -1.442695, %v1119_v43  ;;  %v1120_v32 = vadd.f32 %v1045_v19, %v8111_v44  ;;  %v1122_v13 = vadd.f32 %v1116_v38, %v8112_v42  ;;  %v5655_v44 = vld [vmem:[%s7769_s2 + $0x1d0] sm:$0xff]  ;;  %v5690_v42 = vld [vmem:[%s7769_s2 + $0x178] sm:$0xff] }
 0x3e3   :  { %v5683_v38 = vld [vmem:[%s7769_s2 + $0x190] sm:$0xff] }
 0x3e4   :  { %4144 = vpow2.f32 %v3985_v39  ;;  %v3986_v4 = vmul.f32 -1.442695, %v1120_v32  ;;  %v3987_v8 = vmul.f32 -1.442695, %v1122_v13  ;;  %v5641_v39 = vld [vmem:[%s7769_s2 + $0x1f0] sm:$0xff]  ;;  %v5662_v32 = vld [vmem:[%s7769_s2 + $0x1b8] sm:$0xff] }
 0x3e5   :  { %v5697_v13 = vld [vmem:[%s7769_s2 + $0x170] sm:$0xff] }
 0x3e6   :  { %4146 = vpow2.f32 %v3986_v4  ;;  %v5676_v4 = vld [vmem:[%s7769_s2 + $0x198] sm:$0xff] }
 0x3e7   :  { %4148 = vtanh.f32 %v1121_v1  ;;  %v5711_v1 = vld [vmem:[%s7769_s2 + $0x150] sm:$0xff] }
 0x3e8   :  { %4150 = vpow2.f32 %v3987_v8  ;;  %v5718_v8 = vld [vmem:[%s7769_s2 + $0x138] sm:$0xff] }
 0x3f1   :  { %v4145_v36 = vpop.eup %4144 }
 0x3f2   :  { %v1126_v6 = vadd.f32 1.0, %v4145_v36  ;;  %v5725_v36 = vld [vmem:[%s7769_s2 + $0x130] sm:$0xff] }
 0x3f3   :  { %v4147_v9 = vpop.eup %4146 }
 0x3f4   :  { %4152 = vrcp.f32 %v1126_v6  ;;  %v1132_v11 = vadd.f32 1.0, %v4147_v9  ;;  %v4149_v14 = vpop.eup %4148  ;;  %v5732_v6 = vld [vmem:[%s7769_s2 + $0x118] sm:$0xff]  ;;  %v5739_v9 = vld [vmem:[%s7769_s2 + $0x110] sm:$0xff] }
 0x3f5   :  { %v4151_v16 = vpop.eup %4150 }
 0x3f6   :  { %4154 = vrcp.f32 %v1132_v11  ;;  %v1139_v45 = vadd.f32 1.0, %v4151_v16  ;;  %v5746_v11 = vld [vmem:[%s7769_s2 + $0xf8] sm:$0xff] }
 0x3f7   :  { %v5760_v16 = vld [vmem:[%s7769_s2 + $0xd8] sm:$0xff] }
 0x3f8   :  { %4156 = vrcp.f32 %v1139_v45  ;;  %v5788_v45 = vld [vmem:[%s7769_s2 + $0x98] sm:$0xff] }
 0x401   :  { %v4153_v21 = vpop.eup %4152 }
 0x402   :  { %v1143_v23 = vmul.f32 %v4153_v21, %v4149_v14  ;;  %v5753_v14 = vld [vmem:[%s7769_s2 + $0xf0] sm:$0xff] }
 0x403   :  { %v4155_v26 = vpop.eup %4154  ;;  %v5767_v21 = vld [vmem:[%s7769_s2 + $0xd0] sm:$0xff] }
 0x404   :  { %v1142_v20 = vmul.f32 %v4155_v26, %v5392_v28  ;;  %v5648_v28 = vld [vmem:[%s7769_s2 + $0x1d8] sm:$0xff]  ;;  %v5781_v26 = vld [vmem:[%s7769_s2 + $0xb0] sm:$0xff] }
 0x405   :  { %v4157_v35 = vpop.eup %4156 }
 0x406   :  { %v5630_v27 = vadd.f32 %v1143_v23, %v1142_v20  ;;  %v5774_v23 = vld [vmem:[%s7769_s2 + $0xb8] sm:$0xff]  ;;  %v5795_v20 = vld [vmem:[%s7769_s2 + $0x90] sm:$0xff] }
 0x407   :  { %8115 = vst [vmem:[#allocation12_spill] sm:$0xff] %v5795_v20 }
 0x408   :  { %4158 = vtanh.f32 %v5630_v27 }
 0x415   :  { %v4159_v43 = vpop.eup %4158 }
 0x416   :  { %v5633_v19 = vmul.f32 %v4159_v43, %v4157_v35  ;;  %v5802_v35 = vld [vmem:[%s7769_s2 + $0x78] sm:$0xff]  ;;  %v5809_v43 = vld [vmem:[%s7769_s2 + $0x70] sm:$0xff] }
 0x417   :  { %8116 = vst [vmem:[#allocation23_spill] sm:$0xff] %v5802_v35  ;;  %8117 = vst [vmem:[#allocation13_spill] sm:$0xff] %v5809_v43 }
 0x418   :  { %8114 = vst [vmem:[#allocation22_spill] sm:$0xff] %v5633_v19  ;;  %1221 = vmatmul.mubr.f32.vlgmr.msra.gmra.mxu0 %v5633_v19  ;;  %1292 = vmatmul.mubr.f32.vlgmr.msra.gmra.mxu1 %v5633_v19  ;;  %v5823_v19 = vld [vmem:[%s7769_s2 + $0x50] sm:$0xff] }
 0x419   :  { %1336 = vmatpush1.msra.mxu0 %v5402_v31  ;;  %1407 = vmatpush1.msra.mxu1 %v5641_v39  ;;  %8119 = vst [vmem:[#allocation14_spill] sm:$0xff] %v5823_v19 }
 0x41a   :  { %1337 = vmatprep.subr.mxu0 %v5409_v25  ;;  %1408 = vmatprep.subr.mxu1 %v5648_v28 }
 0x41b   :  { %1338 = vmatpush1.msra.mxu0 %v5416_v40  ;;  %1409 = vmatpush1.msra.mxu1 %v5655_v44 }
 0x41c   :  { %1339 = vmatprep.subr.mxu0 %v5423_v46  ;;  %1410 = vmatprep.subr.mxu1 %v5662_v32 }
 0x41d   :  { %1340 = vmatpush1.msra.mxu0 %v5430_v47  ;;  %1411 = vmatpush1.msra.mxu1 %v5669_v33 }
 0x41e   :  { %1341 = vmatprep.subr.mxu0 %v5437_v48  ;;  %1412 = vmatprep.subr.mxu1 %v5676_v4 }
 0x41f   :  { %1342 = vmatpush1.msra.mxu0 %v5444_v49  ;;  %1413 = vmatpush1.msra.mxu1 %v5683_v38 }
 0x420   :  { %1343 = vmatprep.subr.mxu0 %v5451_v50  ;;  %1414 = vmatprep.subr.mxu1 %v5690_v42 }
 0x421   :  { %1344 = vmatpush1.msra.mxu0 %v5458_v51  ;;  %1415 = vmatpush1.msra.mxu1 %v5697_v13 }
 0x422   :  { %1345 = vmatprep.subr.mxu0 %v5465_v52  ;;  %1416 = vmatprep.subr.mxu1 %v5704_v30 }
 0x423   :  { %1346 = vmatpush1.msra.mxu0 %v5472_v53  ;;  %1417 = vmatpush1.msra.mxu1 %v5711_v1 }
 0x424   :  { %1347 = vmatprep.subr.mxu0 %v5479_v54  ;;  %1418 = vmatprep.subr.mxu1 %v5718_v8 }
 0x425   :  { %1348 = vmatpush1.msra.mxu0 %v5486_v55  ;;  %1419 = vmatpush1.msra.mxu1 %v5725_v36 }
 0x426   :  { %1349 = vmatprep.subr.mxu0 %v5493_v56  ;;  %1420 = vmatprep.subr.mxu1 %v5732_v6 }
 0x427   :  { %1350 = vmatpush1.msra.mxu0 %v5500_v57  ;;  %1421 = vmatpush1.msra.mxu1 %v5739_v9 }
 0x428   :  { %1351 = vmatprep.subr.mxu0 %v5507_v58  ;;  %1422 = vmatprep.subr.mxu1 %v5746_v11 }
 0x429   :  { %1352 = vmatpush1.msra.mxu0 %v5514_v59  ;;  %1423 = vmatpush1.msra.mxu1 %v5753_v14 }
 0x42a   :  { %1353 = vmatprep.subr.mxu0 %v5521_v60  ;;  %1424 = vmatprep.subr.mxu1 %v5760_v16 }
 0x42b   :  { %1354 = vmatpush1.msra.mxu0 %v5528_v61  ;;  %1425 = vmatpush1.msra.mxu1 %v5767_v21 }
 0x42c   :  { %1355 = vmatprep.subr.mxu0 %v5535_v62  ;;  %1426 = vmatprep.subr.mxu1 %v5774_v23 }
 0x42d   :  { %1356 = vmatpush1.msra.mxu0 %v5542_v63  ;;  %1427 = vmatpush1.msra.mxu1 %v5781_v26 }
 0x42e   :  { %1357 = vmatprep.subr.mxu0 %v5549_v0  ;;  %1428 = vmatprep.subr.mxu1 %v5788_v45 }
 0x42f   :  { %1358 = vmatpush1.msra.mxu0 %v5556_v2  ;;  %1429 = vmatpush1.msra.mxu1 %v5795_v20 }
 0x430   :  { %1359 = vmatprep.subr.mxu0 %v5563_v3  ;;  %1430 = vmatprep.subr.mxu1 %v5802_v35  ;;  %v8127_v35 = vld [vmem:[#allocation36_spill] sm:$0xff] }
 0x431   :  { %1360 = vmatpush1.msra.mxu0 %v5570_v5  ;;  %1431 = vmatpush1.msra.mxu1 %v5809_v43  ;;  %v8126_v5 = vld [vmem:[#allocation37_spill] sm:$0xff] }
 0x432   :  { %1361 = vmatprep.subr.mxu0 %v5577_v7  ;;  %1432 = vmatprep.subr.mxu1 %v5816_v37 }
 0x433   :  { %1362 = vmatpush1.msra.mxu0 %v5584_v10  ;;  %1433 = vmatpush1.msra.mxu1 %v5823_v19  ;;  %v8125_v19 = vld [vmem:[#allocation52_spill] sm:$0xff] }
 0x434   :  { %1363 = vmatprep.subr.mxu0 %v5591_v12  ;;  %1434 = vmatprep.subr.mxu1 %v5830_v34  ;;  %v5844_v12 = vld [vmem:[%s7769_s2 + $0x18] sm:$0xff] }
 0x435   :  { %1364 = vmatpush1.msra.mxu0 %v5598_v15  ;;  %1435 = vmatpush1.msra.mxu1 %v5837_v17  ;;  %8122 = vst [vmem:[#allocation26_spill] sm:$0xff] %v5844_v12  ;;  %v5852_v15 = vld [vmem:[%s7769_s2 + $0x10] sm:$0xff]  ;;  %v8124_v17 = vld [vmem:[#allocation51_spill] sm:$0xff] }
 0x436   :  { %1365 = vmatprep.subr.mxu0 %v5605_v18  ;;  %1436 = vmatprep.subr.mxu1 %v5844_v12  ;;  %8123 = vst [vmem:[#allocation16_spill] sm:$0xff] %v5852_v15 }
 0x437   :  { %1366 = vmatpush1.msra.mxu0 %v5612_v22  ;;  %1399 = vmatprep.mubr.f32.mxu0 %v8092_v29 }
 0x438   :  { %1437 = vmatpush1.msra.mxu1 %v5852_v15  ;;  %1470 = vmatprep.mubr.f32.mxu1 %v8092_v29 }
 0x439   :  { %1514 = vmatprep.subr.mxu0 %v5383_v41  ;;  %1585 = vmatprep.subr.mxu1 %v5622_v24 }
 0x4d8   :  { %v1222_v18 = vpop.f32.mrf.mxu0  ;;  %v1293_v37 = vpop.f32.mrf.mxu1 }
 0x4d9   :  { %v1298_v12 = vadd.f32 %v1222_v18, %v8124_v17  ;;  %v1300_v29 = vadd.f32 %v1293_v37, %v8127_v35  ;;  %v8134_v35 = vld [vmem:[#allocation30_spill] sm:$0xff] }
 0x4da   :  { %v1224_v34 = vpop.f32.mrf.mxu0  ;;  %v1295_v43 = vpop.f32.mrf.mxu1 }
 0x4db   :  { %v3988_v22 = vmul.f32 -1.442695, %v1298_v12  ;;  %v1299_v10 = vadd.f32 %v1224_v34, %v8125_v19  ;;  %v1301_v15 = vadd.f32 %v1295_v43, %v8126_v5  ;;  %v8135_v43 = vld [vmem:[#allocation24_spill] sm:$0xff] }
 0x4dd   :  { %4160 = vpow2.f32 %v3988_v22  ;;  %v3989_v7 = vmul.f32 -1.442695, %v1299_v10  ;;  %v3990_v3 = vmul.f32 -1.442695, %v1301_v15  ;;  %v8130_v15 = vld [vmem:[#allocation46_spill] sm:$0xff] }
 0x4df   :  { %4162 = vpow2.f32 %v3989_v7 }
 0x4e0   :  { %4164 = vtanh.f32 %v1300_v29 }
 0x4e1   :  { %4166 = vpow2.f32 %v3990_v3  ;;  %v8129_v3 = vld [vmem:[#allocation12_spill] sm:$0xff] }
 0x4ea   :  { %v4161_v41 = vpop.eup %4160 }
 0x4eb   :  { %v1305_v20 = vadd.f32 1.0, %v4161_v41 }
 0x4ec   :  { %v4163_v24 = vpop.eup %4162 }
 0x4ed   :  { %4168 = vrcp.f32 %v1305_v20  ;;  %v1311_v17 = vadd.f32 1.0, %v4163_v24  ;;  %v4165_v12 = vpop.eup %4164  ;;  %v8131_v24 = vld [vmem:[#allocation23_spill] sm:$0xff]  ;;  %v8133_v20 = vld [vmem:[#allocation13_spill] sm:$0xff] }
 0x4ee   :  { %v4167_v34 = vpop.eup %4166 }
 0x4ef   :  { %4170 = vrcp.f32 %v1311_v17  ;;  %v1318_v7 = vadd.f32 1.0, %v4167_v34  ;;  %v8136_v17 = vld [vmem:[#allocation19_spill] sm:$0xff]  ;;  %v8138_v34 = vld [vmem:[#allocation9_spill] sm:$0xff] }
 0x4f1   :  { %4172 = vrcp.f32 %v1318_v7  ;;  %v8142_v7 = vld [vmem:[#allocation10_spill] sm:$0xff] }
 0x4fa   :  { %v4169_v18 = vpop.eup %4168 }
 0x4fb   :  { %v1322_v22 = vmul.f32 %v4169_v18, %v4165_v12  ;;  %v8137_v12 = vld [vmem:[#allocation14_spill] sm:$0xff]  ;;  %v8139_v18 = vld [vmem:[#allocation25_spill] sm:$0xff] }
 0x4fc   :  { %v4171_v10 = vpop.eup %4170 }
 0x4fd   :  { %v1321_v19 = vmul.f32 %v4171_v10, %v5630_v27  ;;  %v8132_v27 = vld [vmem:[#allocation31_spill] sm:$0xff] }
 0x4fe   :  { %v4173_v37 = vpop.eup %4172  ;;  %v8141_v10 = vld [vmem:[#allocation15_spill] sm:$0xff] }
 0x4ff   :  { %v5863_v5 = vadd.f32 %v1322_v22, %v1321_v19  ;;  %v8140_v22 = vld [vmem:[#allocation20_spill] sm:$0xff]  ;;  %v8143_v19 = vld [vmem:[#allocation26_spill] sm:$0xff] }
 0x501   :  { %4174 = vtanh.f32 %v5863_v5 }
 0x50e   :  { %v4175_v29 = vpop.eup %4174 }
 0x50f   :  { %v5866_v41 = vmul.f32 %v4175_v29, %v4173_v37  ;;  %v8144_v37 = vld [vmem:[#allocation21_spill] sm:$0xff]  ;;  %v8145_v29 = vmov 0.0  }
 0x511   :  { %8128 = vst [vmem:[#allocation27_spill] sm:$0xff] %v5866_v41  ;;  %1400 = vmatmul.mubr.f32.vlgmr.msra.gmra.mxu0 %v5866_v41  ;;  %1471 = vmatmul.mubr.f32.vlgmr.msra.gmra.mxu1 %v5866_v41  ;;  %v8146_v41 = vld [vmem:[#allocation16_spill] sm:$0xff] }
 0x512   :  { %1515 = vmatpush1.msra.mxu0 %v5402_v31  ;;  %1586 = vmatpush1.msra.mxu1 %v5641_v39 }
 0x513   :  { %1516 = vmatprep.subr.mxu0 %v5409_v25  ;;  %1587 = vmatprep.subr.mxu1 %v5648_v28 }
 0x514   :  { %1517 = vmatpush1.msra.mxu0 %v5416_v40  ;;  %1588 = vmatpush1.msra.mxu1 %v5655_v44 }
 0x515   :  { %1518 = vmatprep.subr.mxu0 %v5423_v46  ;;  %1589 = vmatprep.subr.mxu1 %v5662_v32 }
 0x516   :  { %1519 = vmatpush1.msra.mxu0 %v5430_v47  ;;  %1590 = vmatpush1.msra.mxu1 %v5669_v33 }
 0x517   :  { %1520 = vmatprep.subr.mxu0 %v5437_v48  ;;  %1591 = vmatprep.subr.mxu1 %v5676_v4 }
 0x518   :  { %1521 = vmatpush1.msra.mxu0 %v5444_v49  ;;  %1592 = vmatpush1.msra.mxu1 %v5683_v38 }
 0x519   :  { %1522 = vmatprep.subr.mxu0 %v5451_v50  ;;  %1593 = vmatprep.subr.mxu1 %v5690_v42 }
 0x51a   :  { %1523 = vmatpush1.msra.mxu0 %v5458_v51  ;;  %1594 = vmatpush1.msra.mxu1 %v5697_v13 }
 0x51b   :  { %1524 = vmatprep.subr.mxu0 %v5465_v52  ;;  %1595 = vmatprep.subr.mxu1 %v5704_v30 }
 0x51c   :  { %1525 = vmatpush1.msra.mxu0 %v5472_v53  ;;  %1596 = vmatpush1.msra.mxu1 %v5711_v1 }
 0x51d   :  { %1526 = vmatprep.subr.mxu0 %v5479_v54  ;;  %1597 = vmatprep.subr.mxu1 %v5718_v8 }
 0x51e   :  { %1527 = vmatpush1.msra.mxu0 %v5486_v55  ;;  %1598 = vmatpush1.msra.mxu1 %v5725_v36 }
 0x51f   :  { %1528 = vmatprep.subr.mxu0 %v5493_v56  ;;  %1599 = vmatprep.subr.mxu1 %v5732_v6 }
 0x520   :  { %1529 = vmatpush1.msra.mxu0 %v5500_v57  ;;  %1600 = vmatpush1.msra.mxu1 %v5739_v9 }
 0x521   :  { %1530 = vmatprep.subr.mxu0 %v5507_v58  ;;  %1601 = vmatprep.subr.mxu1 %v5746_v11 }
 0x522   :  { %1531 = vmatpush1.msra.mxu0 %v5514_v59  ;;  %1602 = vmatpush1.msra.mxu1 %v5753_v14 }
 0x523   :  { %1532 = vmatprep.subr.mxu0 %v5521_v60  ;;  %1603 = vmatprep.subr.mxu1 %v5760_v16 }
 0x524   :  { %1533 = vmatpush1.msra.mxu0 %v5528_v61  ;;  %1604 = vmatpush1.msra.mxu1 %v5767_v21 }
 0x525   :  { %1534 = vmatprep.subr.mxu0 %v5535_v62  ;;  %1605 = vmatprep.subr.mxu1 %v5774_v23 }
 0x526   :  { %1535 = vmatpush1.msra.mxu0 %v5542_v63  ;;  %1606 = vmatpush1.msra.mxu1 %v5781_v26 }
 0x527   :  { %1536 = vmatprep.subr.mxu0 %v5549_v0  ;;  %1607 = vmatprep.subr.mxu1 %v5788_v45 }
 0x528   :  { %1537 = vmatpush1.msra.mxu0 %v5556_v2  ;;  %1608 = vmatpush1.msra.mxu1 %v8129_v3 }
 0x529   :  { %1538 = vmatprep.subr.mxu0 %v8130_v15  ;;  %1609 = vmatprep.subr.mxu1 %v8131_v24  ;;  %v8152_v24 = vld [vmem:[#allocation38_spill] sm:$0xff] }
 0x52a   :  { %1539 = vmatpush1.msra.mxu0 %v8132_v27  ;;  %1610 = vmatpush1.msra.mxu1 %v8133_v20  ;;  %v8151_v27 = vld [vmem:[#allocation39_spill] sm:$0xff] }
 0x52b   :  { %1540 = vmatprep.subr.mxu0 %v8134_v35  ;;  %1611 = vmatprep.subr.mxu1 %v8135_v43 }
 0x52c   :  { %1541 = vmatpush1.msra.mxu0 %v8136_v17  ;;  %1612 = vmatpush1.msra.mxu1 %v8137_v12  ;;  %v8147_v12 = vld [vmem:[#allocation6_spill] sm:$0xff] }
 0x52d   :  { %1542 = vmatprep.subr.mxu0 %v8138_v34  ;;  %1613 = vmatprep.subr.mxu1 %v8139_v18  ;;  %v8148_v34 = vld [vmem:[#allocation11_spill] sm:$0xff] }
 0x52e   :  { %1543 = vmatpush1.msra.mxu0 %v8140_v22  ;;  %1614 = vmatpush1.msra.mxu1 %v8141_v10  ;;  %v8149_v22 = vld [vmem:[#allocation53_spill] sm:$0xff] }
 0x52f   :  { %1544 = vmatprep.subr.mxu0 %v8142_v7  ;;  %1615 = vmatprep.subr.mxu1 %v8143_v19  ;;  %v8150_v7 = vld [vmem:[#allocation54_spill] sm:$0xff] }
 0x530   :  { %1545 = vmatpush1.msra.mxu0 %v8144_v37  ;;  %1578 = vmatprep.mubr.f32.mxu0 %v8145_v29 }
 0x531   :  { %1616 = vmatpush1.msra.mxu1 %v8146_v41  ;;  %1649 = vmatprep.mubr.f32.mxu1 %v8145_v29 }
 0x532   :  { %1693 = vmatprep.subr.mxu0 %v8147_v12  ;;  %1764 = vmatprep.subr.mxu1 %v8148_v34 }
 0x5d1   :  { %v1401_v18 = vpop.f32.mrf.mxu0  ;;  %v1472_v19 = vpop.f32.mrf.mxu1 }
 0x5d2   :  { %v1477_v17 = vadd.f32 %v1401_v18, %v8149_v22  ;;  %v1479_v29 = vadd.f32 %v1472_v19, %v8152_v24 }
 0x5d3   :  { %v1403_v10 = vpop.f32.mrf.mxu0  ;;  %v1474_v20 = vpop.f32.mrf.mxu1 }
 0x5d4   :  { %v3991_v43 = vmul.f32 -1.442695, %v1477_v17  ;;  %v1478_v35 = vadd.f32 %v1403_v10, %v8150_v7  ;;  %v1480_v41 = vadd.f32 %v1474_v20, %v8151_v27 }
 0x5d6   :  { %4176 = vpow2.f32 %v3991_v43  ;;  %v3992_v37 = vmul.f32 -1.442695, %v1478_v35  ;;  %v3993_v15 = vmul.f32 -1.442695, %v1480_v41 }
 0x5d8   :  { %4178 = vpow2.f32 %v3992_v37 }
 0x5d9   :  { %4180 = vtanh.f32 %v1479_v29 }
 0x5da   :  { %4182 = vpow2.f32 %v3993_v15 }
 0x5e3   :  { %v4177_v12 = vpop.eup %4176 }
 0x5e4   :  { %v1484_v3 = vadd.f32 1.0, %v4177_v12  ;;  %v1935_v12 = vld [vmem:[%s7771_s4 + $0x1e0] sm:$0xff] }
 0x5e5   :  { %v4179_v34 = vpop.eup %4178 }
 0x5e6   :  { %4184 = vrcp.f32 %v1484_v3  ;;  %v1490_v18 = vadd.f32 1.0, %v4179_v34  ;;  %v4181_v17 = vpop.eup %4180  ;;  %v1937_v34 = vld [vmem:[%s7771_s4 + $0x1f0] sm:$0xff] }
 0x5e7   :  { %v4183_v22 = vpop.eup %4182 }
 0x5e8   :  { %4186 = vrcp.f32 %v1490_v18  ;;  %v1497_v7 = vadd.f32 1.0, %v4183_v22  ;;  %v1932_v18 = vld [vmem:[%s7771_s4 + $0x1c8] sm:$0xff]  ;;  %v1931_v22 = vld [vmem:[%s7771_s4 + $0x1c0] sm:$0xff] }
 0x5ea   :  { %4188 = vrcp.f32 %v1497_v7  ;;  %v1927_v7 = vld [vmem:[%s7771_s4 + $0x1a0] sm:$0xff] }
 0x5f3   :  { %v4185_v43 = vpop.eup %4184 }
 0x5f4   :  { %v1501_v10 = vmul.f32 %v4185_v43, %v4181_v17  ;;  %v1934_v17 = vld [vmem:[%s7771_s4 + $0x1d8] sm:$0xff]  ;;  %v1933_v43 = vld [vmem:[%s7771_s4 + $0x1d0] sm:$0xff] }
 0x5f5   :  { %v4187_v35 = vpop.eup %4186 }
 0x5f6   :  { %v1500_v37 = vmul.f32 %v4187_v35, %v5863_v5  ;;  %v1930_v35 = vld [vmem:[%s7771_s4 + $0x1b8] sm:$0xff] }
 0x5f7   :  { %v4189_v41 = vpop.eup %4188 }
 0x5f8   :  { %v5941_v27 = vadd.f32 %v1501_v10, %v1500_v37  ;;  %v1928_v10 = vld [vmem:[%s7771_s4 + $0x1a8] sm:$0xff]  ;;  %v1929_v37 = vld [vmem:[%s7771_s4 + $0x1b0] sm:$0xff] }
 0x5fa   :  { %4190 = vtanh.f32 %v5941_v27 }
 0x607   :  { %v4191_v24 = vpop.eup %4190 }
 0x608   :  { %v5944_v20 = vmul.f32 %v4191_v24, %v4189_v41  ;;  %v1926_v41 = vld [vmem:[%s7771_s4 + $0x198] sm:$0xff]  ;;  %v1923_v24 = vld [vmem:[%s7771_s4 + $0x180] sm:$0xff] }
 0x60a   :  { %1579 = vmatmul.mubr.f32.vlgmr.msra.gmra.mxu0 %v5944_v20  ;;  %1650 = vmatmul.mubr.f32.vlgmr.msra.gmra.mxu1 %v5944_v20 }
 0x60b   :  { %1694 = vmatpush1.msra.mxu0 %v5402_v31  ;;  %1765 = vmatpush1.msra.mxu1 %v5641_v39  ;;  %v8153_v31 = vld [vmem:[#allocation12_spill] sm:$0xff] }
 0x60c   :  { %1695 = vmatprep.subr.mxu0 %v5409_v25  ;;  %1766 = vmatprep.subr.mxu1 %v5648_v28  ;;  %v8154_v25 = vld [vmem:[#allocation46_spill] sm:$0xff] }
 0x60d   :  { %1696 = vmatpush1.msra.mxu0 %v5416_v40  ;;  %1767 = vmatpush1.msra.mxu1 %v5655_v44  ;;  %v8155_v40 = vld [vmem:[#allocation23_spill] sm:$0xff]  ;;  %v8172_v44 = vld [vmem:[#allocation56_spill] sm:$0xff] }
 0x60e   :  { %1697 = vmatprep.subr.mxu0 %v5423_v46  ;;  %1768 = vmatprep.subr.mxu1 %v5662_v32  ;;  %v8156_v46 = vld [vmem:[#allocation31_spill] sm:$0xff] }
 0x60f   :  { %1698 = vmatpush1.msra.mxu0 %v5430_v47  ;;  %1769 = vmatpush1.msra.mxu1 %v5669_v33  ;;  %v8157_v47 = vld [vmem:[#allocation13_spill] sm:$0xff] }
 0x610   :  { %1699 = vmatprep.subr.mxu0 %v5437_v48  ;;  %1770 = vmatprep.subr.mxu1 %v5676_v4  ;;  %v8158_v48 = vld [vmem:[#allocation30_spill] sm:$0xff] }
 0x611   :  { %1700 = vmatpush1.msra.mxu0 %v5444_v49  ;;  %1771 = vmatpush1.msra.mxu1 %v5683_v38  ;;  %v8159_v49 = vld [vmem:[#allocation24_spill] sm:$0xff] }
 0x612   :  { %1701 = vmatprep.subr.mxu0 %v5451_v50  ;;  %1772 = vmatprep.subr.mxu1 %v5690_v42  ;;  %v8160_v50 = vld [vmem:[#allocation19_spill] sm:$0xff]  ;;  %v8173_v42 = vld [vmem:[#allocation41_spill] sm:$0xff] }
 0x613   :  { %1702 = vmatpush1.msra.mxu0 %v5458_v51  ;;  %1773 = vmatpush1.msra.mxu1 %v5697_v13  ;;  %v8161_v51 = vld [vmem:[#allocation14_spill] sm:$0xff] }
 0x614   :  { %1703 = vmatprep.subr.mxu0 %v5465_v52  ;;  %1774 = vmatprep.subr.mxu1 %v5704_v30  ;;  %v8162_v52 = vld [vmem:[#allocation9_spill] sm:$0xff]  ;;  %v8174_v30 = vld [vmem:[#allocation40_spill] sm:$0xff] }
 0x615   :  { %1704 = vmatpush1.msra.mxu0 %v5472_v53  ;;  %1775 = vmatpush1.msra.mxu1 %v5711_v1  ;;  %v8163_v53 = vld [vmem:[#allocation25_spill] sm:$0xff] }
 0x616   :  { %1705 = vmatprep.subr.mxu0 %v5479_v54  ;;  %1776 = vmatprep.subr.mxu1 %v5718_v8  ;;  %v8164_v54 = vld [vmem:[#allocation20_spill] sm:$0xff] }
 0x617   :  { %1706 = vmatpush1.msra.mxu0 %v5486_v55  ;;  %1777 = vmatpush1.msra.mxu1 %v5725_v36  ;;  %v8165_v55 = vld [vmem:[#allocation15_spill] sm:$0xff] }
 0x618   :  { %1707 = vmatprep.subr.mxu0 %v5493_v56  ;;  %1778 = vmatprep.subr.mxu1 %v5732_v6  ;;  %v8166_v56 = vld [vmem:[#allocation10_spill] sm:$0xff] }
 0x619   :  { %1708 = vmatpush1.msra.mxu0 %v5500_v57  ;;  %1779 = vmatpush1.msra.mxu1 %v5739_v9  ;;  %v8167_v57 = vld [vmem:[#allocation26_spill] sm:$0xff] }
 0x61a   :  { %1709 = vmatprep.subr.mxu0 %v5507_v58  ;;  %1780 = vmatprep.subr.mxu1 %v5746_v11  ;;  %v8168_v58 = vld [vmem:[#allocation21_spill] sm:$0xff] }
 0x61b   :  { %1710 = vmatpush1.msra.mxu0 %v5514_v59  ;;  %1781 = vmatpush1.msra.mxu1 %v5753_v14  ;;  %v8169_v59 = vld [vmem:[#allocation16_spill] sm:$0xff] }
 0x61c   :  { %1711 = vmatprep.subr.mxu0 %v5521_v60  ;;  %1782 = vmatprep.subr.mxu1 %v5760_v16  ;;  %v8170_v60 = vmov 0.0  }
 0x61d   :  { %1712 = vmatpush1.msra.mxu0 %v5528_v61  ;;  %1783 = vmatpush1.msra.mxu1 %v5767_v21  ;;  %v1936_v61 = vld [vmem:[%s7771_s4 + $0x1e8] sm:$0xff] }
 0x61e   :  { %1713 = vmatprep.subr.mxu0 %v5535_v62  ;;  %1784 = vmatprep.subr.mxu1 %v5774_v23  ;;  %v1938_v62 = vld [vmem:[%s7771_s4 + $0x1f8] sm:$0xff] }
 0x61f   :  { %1714 = vmatpush1.msra.mxu0 %v5542_v63  ;;  %1785 = vmatpush1.msra.mxu1 %v5781_v26 }
 0x620   :  { %1715 = vmatprep.subr.mxu0 %v5549_v0  ;;  %1786 = vmatprep.subr.mxu1 %v5788_v45  ;;  %v8171_v0 = vld [vmem:[#allocation55_spill] sm:$0xff] }
 0x621   :  { %1716 = vmatpush1.msra.mxu0 %v5556_v2  ;;  %1787 = vmatpush1.msra.mxu1 %v8153_v31  ;;  %v1925_v31 = vld [vmem:[%s7771_s4 + $0x190] sm:$0xff] }
 0x622   :  { %1717 = vmatprep.subr.mxu0 %v8154_v25  ;;  %1788 = vmatprep.subr.mxu1 %v8155_v40  ;;  %v1920_v25 = vld [vmem:[%s7771_s4 + $0x168] sm:$0xff]  ;;  %v1922_v40 = vld [vmem:[%s7771_s4 + $0x178] sm:$0xff] }
 0x623   :  { %1718 = vmatpush1.msra.mxu0 %v8156_v46  ;;  %1789 = vmatpush1.msra.mxu1 %v8157_v47  ;;  %v1919_v46 = vld [vmem:[%s7771_s4 + $0x160] sm:$0xff]  ;;  %v1921_v47 = vld [vmem:[%s7771_s4 + $0x170] sm:$0xff] }
 0x624   :  { %1719 = vmatprep.subr.mxu0 %v8158_v48  ;;  %1790 = vmatprep.subr.mxu1 %v8159_v49  ;;  %v1916_v48 = vld [vmem:[%s7771_s4 + $0x148] sm:$0xff]  ;;  %v1918_v49 = vld [vmem:[%s7771_s4 + $0x158] sm:$0xff] }
 0x625   :  { %1720 = vmatpush1.msra.mxu0 %v8160_v50  ;;  %1791 = vmatpush1.msra.mxu1 %v8161_v51  ;;  %v1915_v50 = vld [vmem:[%s7771_s4 + $0x140] sm:$0xff]  ;;  %v1917_v51 = vld [vmem:[%s7771_s4 + $0x150] sm:$0xff] }
 0x626   :  { %1721 = vmatprep.subr.mxu0 %v8162_v52  ;;  %1792 = vmatprep.subr.mxu1 %v8163_v53  ;;  %v1912_v52 = vld [vmem:[%s7771_s4 + $0x128] sm:$0xff]  ;;  %v1914_v53 = vld [vmem:[%s7771_s4 + $0x138] sm:$0xff] }
 0x627   :  { %1722 = vmatpush1.msra.mxu0 %v8164_v54  ;;  %1793 = vmatpush1.msra.mxu1 %v8165_v55  ;;  %v1911_v54 = vld [vmem:[%s7771_s4 + $0x120] sm:$0xff]  ;;  %v1913_v55 = vld [vmem:[%s7771_s4 + $0x130] sm:$0xff] }
 0x628   :  { %1723 = vmatprep.subr.mxu0 %v8166_v56  ;;  %1794 = vmatprep.subr.mxu1 %v8167_v57  ;;  %v1908_v56 = vld [vmem:[%s7771_s4 + $0x108] sm:$0xff]  ;;  %v1910_v57 = vld [vmem:[%s7771_s4 + $0x118] sm:$0xff] }
 0x629   :  { %1724 = vmatpush1.msra.mxu0 %v8168_v58  ;;  %1795 = vmatpush1.msra.mxu1 %v8169_v59  ;;  %v1907_v58 = vld [vmem:[%s7771_s4 + $0x100] sm:$0xff]  ;;  %v1909_v59 = vld [vmem:[%s7771_s4 + $0x110] sm:$0xff] }
 0x62a   :  { %1757 = vmatprep.mubr.f32.mxu0 %v8170_v60  ;;  %1828 = vmatprep.mubr.f32.mxu1 %v8170_v60 }
 0x62b   :  { %1961 = vmatprep.subr.mxu0 %v1936_v61  ;;  %2074 = vmatprep.subr.mxu1 %v1938_v62  ;;  %v1904_v61 = vld [vmem:[%s7771_s4 + $0xe8] sm:$0xff]  ;;  %v1906_v62 = vld [vmem:[%s7771_s4 + $0xf8] sm:$0xff] }
 0x6ca   :  { %v1580_v63 = vpop.f32.mrf.mxu0  ;;  %v1651_v33 = vpop.f32.mrf.mxu1 }
 0x6cb   :  { %v1656_v2 = vadd.f32 %v1580_v63, %v8171_v0  ;;  %v1658_v1 = vadd.f32 %v1651_v33, %v8174_v30  ;;  %v1903_v63 = vld [vmem:[%s7771_s4 + $0xe0] sm:$0xff]  ;;  %v1905_v0 = vld [vmem:[%s7771_s4 + $0xf0] sm:$0xff]  ;;  %v1898_v33 = vld [vmem:[%s7771_s4 + $0xb8] sm:$0xff] }
 0x6cc   :  { %v1582_v39 = vpop.f32.mrf.mxu0  ;;  %v1653_v38 = vpop.f32.mrf.mxu1  ;;  %v1891_v30 = vld [vmem:[%s7771_s4 + $0x80] sm:$0xff] }
 0x6cd   :  { %v3994_v28 = vmul.f32 -1.442695, %v1656_v2  ;;  %v1657_v32 = vadd.f32 %v1582_v39, %v8172_v44  ;;  %v1659_v13 = vadd.f32 %v1653_v38, %v8173_v42  ;;  %v1900_v2 = vld [vmem:[%s7771_s4 + $0xc8] sm:$0xff]  ;;  %v1902_v39 = vld [vmem:[%s7771_s4 + $0xd8] sm:$0xff]  ;;  %v1901_v44 = vld [vmem:[%s7771_s4 + $0xd0] sm:$0xff] }
 0x6ce   :  { %v1897_v38 = vld [vmem:[%s7771_s4 + $0xb0] sm:$0xff]  ;;  %v1892_v42 = vld [vmem:[%s7771_s4 + $0x88] sm:$0xff] }
 0x6cf   :  { %4192 = vpow2.f32 %v3994_v28  ;;  %v3995_v4 = vmul.f32 -1.442695, %v1657_v32  ;;  %v3996_v8 = vmul.f32 -1.442695, %v1659_v13  ;;  %v1899_v28 = vld [vmem:[%s7771_s4 + $0xc0] sm:$0xff]  ;;  %v1896_v32 = vld [vmem:[%s7771_s4 + $0xa8] sm:$0xff] }
 0x6d0   :  { %v1894_v13 = vld [vmem:[%s7771_s4 + $0x98] sm:$0xff] }
 0x6d1   :  { %4194 = vpow2.f32 %v3995_v4  ;;  %v1895_v4 = vld [vmem:[%s7771_s4 + $0xa0] sm:$0xff] }
 0x6d2   :  { %4196 = vtanh.f32 %v1658_v1  ;;  %v1893_v1 = vld [vmem:[%s7771_s4 + $0x90] sm:$0xff] }
 0x6d3   :  { %4198 = vpow2.f32 %v3996_v8  ;;  %v1888_v8 = vld [vmem:[%s7771_s4 + $0x68] sm:$0xff] }
 0x6dc   :  { %v4193_v36 = vpop.eup %4192 }
 0x6dd   :  { %v1663_v6 = vadd.f32 1.0, %v4193_v36  ;;  %v1890_v36 = vld [vmem:[%s7771_s4 + $0x78] sm:$0xff] }
 0x6de   :  { %v4195_v9 = vpop.eup %4194 }
 0x6df   :  { %4200 = vrcp.f32 %v1663_v6  ;;  %v1669_v11 = vadd.f32 1.0, %v4195_v9  ;;  %v4197_v14 = vpop.eup %4196  ;;  %v1887_v6 = vld [vmem:[%s7771_s4 + $0x60] sm:$0xff]  ;;  %v1889_v9 = vld [vmem:[%s7771_s4 + $0x70] sm:$0xff] }
 0x6e0   :  { %v4199_v16 = vpop.eup %4198 }
 0x6e1   :  { %4202 = vrcp.f32 %v1669_v11  ;;  %v1676_v45 = vadd.f32 1.0, %v4199_v16  ;;  %v1884_v11 = vld [vmem:[%s7771_s4 + $0x48] sm:$0xff]  ;;  %v1883_v16 = vld [vmem:[%s7771_s4 + $0x40] sm:$0xff] }
 0x6e3   :  { %4204 = vrcp.f32 %v1676_v45  ;;  %v1879_v45 = vld [vmem:[%s7771_s4 + $0x20] sm:$0xff] }
 0x6ec   :  { %v4201_v21 = vpop.eup %4200 }
 0x6ed   :  { %v1680_v23 = vmul.f32 %v4201_v21, %v4197_v14  ;;  %v1886_v14 = vld [vmem:[%s7771_s4 + $0x58] sm:$0xff]  ;;  %v1885_v21 = vld [vmem:[%s7771_s4 + $0x50] sm:$0xff] }
 0x6ee   :  { %v4203_v26 = vpop.eup %4202 }
 0x6ef   :  { %v1679_v5 = vmul.f32 %v4203_v26, %v5941_v27  ;;  %v1924_v27 = vld [vmem:[%s7771_s4 + $0x188] sm:$0xff]  ;;  %v1882_v26 = vld [vmem:[%s7771_s4 + $0x38] sm:$0xff] }
 0x6f0   :  { %v4205_v15 = vpop.eup %4204 }
 0x6f1   :  { %v6023_v3 = vadd.f32 %v1680_v23, %v1679_v5  ;;  %v1880_v23 = vld [vmem:[%s7771_s4 + $0x28] sm:$0xff]  ;;  %v1881_v5 = vld [vmem:[%s7771_s4 + $0x30] sm:$0xff] }
 0x6f3   :  { %4206 = vtanh.f32 %v6023_v3 }
 0x700   :  { %v4207_v19 = vpop.eup %4206 }
 0x701   :  { %v6026_v29 = vmul.f32 %v4207_v19, %v4205_v15  ;;  %v1876_v15 = vld [vmem:[%s7771_s4 + $0x8] sm:$0xff]  ;;  %v1878_v19 = vld [vmem:[%s7771_s4 + $0x18] sm:$0xff] }
 0x703   :  { %1758 = vmatmul.mubr.f32.vlgmr.msra.gmra.mxu0 %v6026_v29  ;;  %1829 = vmatmul.mubr.f32.vlgmr.msra.gmra.mxu1 %v6026_v29 }
 0x704   :  { %1962 = vmatpush1.msra.mxu0 %v1935_v12  ;;  %2075 = vmatpush1.msra.mxu1 %v1937_v34  ;;  %v1875_v12 = vld [vmem:[%s7771_s4] sm:$0xff]  ;;  %v1877_v34 = vld [vmem:[%s7771_s4 + $0x10] sm:$0xff] }
 0x705   :  { %1963 = vmatprep.subr.mxu0 %v1932_v18  ;;  %2076 = vmatprep.subr.mxu1 %v1934_v17  ;;  %v8175_v18 = vld [vmem:[#allocation58_spill] sm:$0xff]  ;;  %v8176_v17 = vld [vmem:[#allocation8_spill] sm:$0xff] }
 0x706   :  { %1964 = vmatpush1.msra.mxu0 %v1931_v22  ;;  %2077 = vmatpush1.msra.mxu1 %v1933_v43  ;;  %v8177_v22 = vld [vmem:[#allocation42_spill] sm:$0xff] }
 0x707   :  { %1965 = vmatprep.subr.mxu0 %v1928_v10  ;;  %2078 = vmatprep.subr.mxu1 %v1930_v35  ;;  %v8178_v43 = vld [vmem:[#allocation22_spill] sm:$0xff]  ;;  %v8179_v10 = vld [vmem:[#allocation27_spill] sm:$0xff] }
 0x708   :  { %1966 = vmatpush1.msra.mxu0 %v1927_v7  ;;  %2079 = vmatpush1.msra.mxu1 %v1929_v37  ;;  %v6249_v35 = vld [vmem:[%s7772_s5 + $0x1e8] sm:$0xff]  ;;  %v6266_v7 = vld [vmem:[%s7772_s5 + $0x1f0] sm:$0xff] }
 0x709   :  { %1967 = vmatprep.subr.mxu0 %v1924_v27  ;;  %2080 = vmatprep.subr.mxu1 %v1926_v41  ;;  %8180 = vst [vmem:[#allocation17_spill] sm:$0xff] %v6249_v35  ;;  %v6272_v37 = vld [vmem:[%s7772_s5 + $0x1c8] sm:$0xff]  ;;  %v6278_v27 = vld [vmem:[%s7772_s5 + $0x1d8] sm:$0xff]  ;;  %v6284_v41 = vld [vmem:[%s7772_s5 + $0x1c0] sm:$0xff] }
 0x70a   :  { %1968 = vmatpush1.msra.mxu0 %v1923_v24  ;;  %2081 = vmatpush1.msra.mxu1 %v1925_v31  ;;  %v6290_v24 = vld [vmem:[%s7772_s5 + $0x1d0] sm:$0xff]  ;;  %v6296_v31 = vld [vmem:[%s7772_s5 + $0x1a8] sm:$0xff] }
 0x70b   :  { %1969 = vmatprep.subr.mxu0 %v1920_v25  ;;  %2082 = vmatprep.subr.mxu1 %v1922_v40  ;;  %v6302_v25 = vld [vmem:[%s7772_s5 + $0x1b8] sm:$0xff]  ;;  %v6308_v40 = vld [vmem:[%s7772_s5 + $0x1a0] sm:$0xff] }
 0x70c   :  { %1970 = vmatpush1.msra.mxu0 %v1919_v46  ;;  %2083 = vmatpush1.msra.mxu1 %v1921_v47  ;;  %v6314_v46 = vld [vmem:[%s7772_s5 + $0x1b0] sm:$0xff]  ;;  %v6320_v47 = vld [vmem:[%s7772_s5 + $0x188] sm:$0xff] }
 0x70d   :  { %1971 = vmatprep.subr.mxu0 %v1916_v48  ;;  %2084 = vmatprep.subr.mxu1 %v1918_v49  ;;  %v6326_v48 = vld [vmem:[%s7772_s5 + $0x198] sm:$0xff]  ;;  %v6332_v49 = vld [vmem:[%s7772_s5 + $0x180] sm:$0xff] }
 0x70e   :  { %1972 = vmatpush1.msra.mxu0 %v1915_v50  ;;  %2085 = vmatpush1.msra.mxu1 %v1917_v51  ;;  %v6338_v50 = vld [vmem:[%s7772_s5 + $0x190] sm:$0xff]  ;;  %v6344_v51 = vld [vmem:[%s7772_s5 + $0x168] sm:$0xff] }
 0x70f   :  { %1973 = vmatprep.subr.mxu0 %v1912_v52  ;;  %2086 = vmatprep.subr.mxu1 %v1914_v53  ;;  %v6350_v52 = vld [vmem:[%s7772_s5 + $0x178] sm:$0xff]  ;;  %v6356_v53 = vld [vmem:[%s7772_s5 + $0x160] sm:$0xff] }
 0x710   :  { %1974 = vmatpush1.msra.mxu0 %v1911_v54  ;;  %2087 = vmatpush1.msra.mxu1 %v1913_v55  ;;  %v6362_v54 = vld [vmem:[%s7772_s5 + $0x170] sm:$0xff]  ;;  %v6368_v55 = vld [vmem:[%s7772_s5 + $0x148] sm:$0xff] }
 0x711   :  { %1975 = vmatprep.subr.mxu0 %v1908_v56  ;;  %2088 = vmatprep.subr.mxu1 %v1910_v57  ;;  %v6374_v56 = vld [vmem:[%s7772_s5 + $0x158] sm:$0xff]  ;;  %v6380_v57 = vld [vmem:[%s7772_s5 + $0x140] sm:$0xff] }
 0x712   :  { %1976 = vmatpush1.msra.mxu0 %v1907_v58  ;;  %2089 = vmatpush1.msra.mxu1 %v1909_v59  ;;  %v6386_v58 = vld [vmem:[%s7772_s5 + $0x150] sm:$0xff]  ;;  %v6392_v59 = vld [vmem:[%s7772_s5 + $0x128] sm:$0xff] }
 0x713   :  { %1977 = vmatprep.subr.mxu0 %v1904_v61  ;;  %2090 = vmatprep.subr.mxu1 %v1906_v62  ;;  %v6398_v61 = vld [vmem:[%s7772_s5 + $0x138] sm:$0xff]  ;;  %v6404_v62 = vld [vmem:[%s7772_s5 + $0x120] sm:$0xff] }
 0x714   :  { %1978 = vmatpush1.msra.mxu0 %v1903_v63  ;;  %2091 = vmatpush1.msra.mxu1 %v1905_v0  ;;  %v6410_v63 = vld [vmem:[%s7772_s5 + $0x130] sm:$0xff]  ;;  %v6416_v0 = vld [vmem:[%s7772_s5 + $0x108] sm:$0xff] }
 0x715   :  { %1979 = vmatprep.subr.mxu0 %v1900_v2  ;;  %2092 = vmatprep.subr.mxu1 %v1902_v39  ;;  %v6422_v2 = vld [vmem:[%s7772_s5 + $0x118] sm:$0xff]  ;;  %v6428_v39 = vld [vmem:[%s7772_s5 + $0x100] sm:$0xff] }
 0x716   :  { %1980 = vmatpush1.msra.mxu0 %v1899_v28  ;;  %2093 = vmatpush1.msra.mxu1 %v1901_v44  ;;  %v6434_v28 = vld [vmem:[%s7772_s5 + $0x110] sm:$0xff]  ;;  %v6440_v44 = vld [vmem:[%s7772_s5 + $0xe8] sm:$0xff] }
 0x717   :  { %1981 = vmatprep.subr.mxu0 %v1896_v32  ;;  %2094 = vmatprep.subr.mxu1 %v1898_v33  ;;  %v6446_v32 = vld [vmem:[%s7772_s5 + $0xf8] sm:$0xff]  ;;  %v6452_v33 = vld [vmem:[%s7772_s5 + $0xe0] sm:$0xff] }
 0x718   :  { %1982 = vmatpush1.msra.mxu0 %v1895_v4  ;;  %2095 = vmatpush1.msra.mxu1 %v1897_v38  ;;  %v6458_v4 = vld [vmem:[%s7772_s5 + $0xf0] sm:$0xff]  ;;  %v6464_v38 = vld [vmem:[%s7772_s5 + $0xc8] sm:$0xff] }
 0x719   :  { %1983 = vmatprep.subr.mxu0 %v1892_v42  ;;  %2096 = vmatprep.subr.mxu1 %v1894_v13  ;;  %v6470_v42 = vld [vmem:[%s7772_s5 + $0xd8] sm:$0xff]  ;;  %v6476_v13 = vld [vmem:[%s7772_s5 + $0xc0] sm:$0xff] }
 0x71a   :  { %1984 = vmatpush1.msra.mxu0 %v1891_v30  ;;  %2097 = vmatpush1.msra.mxu1 %v1893_v1  ;;  %v6482_v30 = vld [vmem:[%s7772_s5 + $0xd0] sm:$0xff]  ;;  %v6488_v1 = vld [vmem:[%s7772_s5 + $0xa8] sm:$0xff] }
 0x71b   :  { %1985 = vmatprep.subr.mxu0 %v1888_v8  ;;  %2098 = vmatprep.subr.mxu1 %v1890_v36  ;;  %v6494_v8 = vld [vmem:[%s7772_s5 + $0xb8] sm:$0xff]  ;;  %v6500_v36 = vld [vmem:[%s7772_s5 + $0xa0] sm:$0xff] }
 0x71c   :  { %1986 = vmatpush1.msra.mxu0 %v1887_v6  ;;  %2099 = vmatpush1.msra.mxu1 %v1889_v9  ;;  %v6506_v6 = vld [vmem:[%s7772_s5 + $0xb0] sm:$0xff]  ;;  %v6512_v9 = vld [vmem:[%s7772_s5 + $0x88] sm:$0xff] }
 0x71d   :  { %1987 = vmatprep.subr.mxu0 %v1884_v11  ;;  %2100 = vmatprep.subr.mxu1 %v1886_v14  ;;  %8182 = vst [vmem:[#allocation18_spill] sm:$0xff] %v6506_v6  ;;  %8183 = vst [vmem:[#allocation47_spill] sm:$0xff] %v6512_v9  ;;  %v6518_v11 = vld [vmem:[%s7772_s5 + $0x98] sm:$0xff]  ;;  %v6524_v14 = vld [vmem:[%s7772_s5 + $0x80] sm:$0xff] }
 0x71e   :  { %1988 = vmatpush1.msra.mxu0 %v1883_v16  ;;  %2101 = vmatpush1.msra.mxu1 %v1885_v21  ;;  %8184 = vst [vmem:[#allocation48_spill] sm:$0xff] %v6518_v11  ;;  %8185 = vst [vmem:[#allocation33_spill] sm:$0xff] %v6524_v14  ;;  %v6530_v16 = vld [vmem:[%s7772_s5 + $0x90] sm:$0xff]  ;;  %v6536_v21 = vld [vmem:[%s7772_s5 + $0x68] sm:$0xff] }
 0x71f   :  { %1989 = vmatprep.subr.mxu0 %v1880_v23  ;;  %2102 = vmatprep.subr.mxu1 %v1882_v26  ;;  %8186 = vst [vmem:[#allocation32_spill] sm:$0xff] %v6530_v16  ;;  %8187 = vst [vmem:[#allocation49_spill] sm:$0xff] %v6536_v21  ;;  %v6542_v23 = vld [vmem:[%s7772_s5 + $0x78] sm:$0xff]  ;;  %v6548_v26 = vld [vmem:[%s7772_s5 + $0x60] sm:$0xff] }
 0x720   :  { %1990 = vmatpush1.msra.mxu0 %v1879_v45  ;;  %2103 = vmatpush1.msra.mxu1 %v1881_v5  ;;  %8188 = vst [vmem:[#allocation50_spill] sm:$0xff] %v6542_v23  ;;  %8189 = vst [vmem:[#allocation35_spill] sm:$0xff] %v6548_v26  ;;  %v6554_v45 = vld [vmem:[%s7772_s5 + $0x70] sm:$0xff]  ;;  %v6560_v5 = vld [vmem:[%s7772_s5 + $0x48] sm:$0xff] }
 0x721   :  { %1991 = vmatprep.subr.mxu0 %v1876_v15  ;;  %2104 = vmatprep.subr.mxu1 %v1878_v19  ;;  %8190 = vst [vmem:[#allocation34_spill] sm:$0xff] %v6554_v45  ;;  %8191 = vst [vmem:[#allocation51_spill] sm:$0xff] %v6560_v5  ;;  %v6566_v15 = vld [vmem:[%s7772_s5 + $0x58] sm:$0xff]  ;;  %v6572_v19 = vld [vmem:[%s7772_s5 + $0x40] sm:$0xff] }
 0x722   :  { %1992 = vmatpush1.msra.mxu0 %v1875_v12  ;;  %2025 = vmatprep.mubr.f32.mxu0 %v8170_v60  ;;  %8192 = vst [vmem:[#allocation52_spill] sm:$0xff] %v6566_v15  ;;  %8193 = vst [vmem:[#allocation37_spill] sm:$0xff] %v6572_v19  ;;  %v6578_v12 = vld [vmem:[%s7772_s5 + $0x50] sm:$0xff] }
 0x723   :  { %2105 = vmatpush1.msra.mxu1 %v1877_v34  ;;  %2138 = vmatprep.mubr.f32.mxu1 %v8170_v60  ;;  %8194 = vst [vmem:[#allocation36_spill] sm:$0xff] %v6578_v12  ;;  %v6584_v34 = vld [vmem:[%s7772_s5 + $0x28] sm:$0xff] }
 0x724   :  { %2026 = vmatmul.mubr.f32.vlgmr.msra.gmra.mxu0 %v8175_v18  ;;  %2139 = vmatmul.mubr.f32.vlgmr.msra.gmra.mxu1 %v8175_v18  ;;  %8195 = vst [vmem:[#allocation6_spill] sm:$0xff] %v6584_v34  ;;  %v6590_v18 = vld [vmem:[%s7772_s5 + $0x38] sm:$0xff] }
 0x725   :  { %2031 = vmatprep.mubr.f32.mxu0 %v8170_v60  ;;  %2144 = vmatprep.mubr.f32.mxu1 %v8170_v60  ;;  %8196 = vst [vmem:[#allocation11_spill] sm:$0xff] %v6590_v18 }
 0x726   :  { %2291 = vmatprep.subr.mxu0 %v6249_v35 }
 0x728   :  { %2032 = vmatmul.mubr.f32.gmra.mxu0 %v8176_v17  ;;  %2145 = vmatmul.mubr.f32.gmra.mxu1 %v8176_v17  ;;  %v6596_v17 = vld [vmem:[%s7772_s5 + $0x20] sm:$0xff] }
 0x729   :  { %2037 = vmatprep.mubr.f32.mxu0 %v8170_v60  ;;  %2150 = vmatprep.mubr.f32.mxu1 %v8170_v60  ;;  %8197 = vst [vmem:[#allocation53_spill] sm:$0xff] %v6596_v17 }
 0x72c   :  { %2038 = vmatmul.mubr.f32.gmra.mxu0 %v8177_v22  ;;  %2151 = vmatmul.mubr.f32.gmra.mxu1 %v8177_v22  ;;  %v6602_v22 = vld [vmem:[%s7772_s5 + $0x30] sm:$0xff] }
 0x72d   :  { %2043 = vmatprep.mubr.f32.mxu0 %v8170_v60  ;;  %2156 = vmatprep.mubr.f32.mxu1 %v8170_v60  ;;  %8198 = vst [vmem:[#allocation54_spill] sm:$0xff] %v6602_v22 }
 0x730   :  { %2044 = vmatmul.mubr.f32.gmra.mxu0 %v8178_v43  ;;  %2157 = vmatmul.mubr.f32.gmra.mxu1 %v8178_v43  ;;  %v6608_v43 = vld [vmem:[%s7772_s5 + $0x8] sm:$0xff] }
 0x731   :  { %2049 = vmatprep.mubr.f32.mxu0 %v8170_v60  ;;  %2162 = vmatprep.mubr.f32.mxu1 %v8170_v60  ;;  %8199 = vst [vmem:[#allocation39_spill] sm:$0xff] %v6608_v43 }
 0x734   :  { %2050 = vmatmul.mubr.f32.gmra.mxu0 %v8179_v10  ;;  %2163 = vmatmul.mubr.f32.gmra.mxu1 %v8179_v10  ;;  %v6614_v10 = vld [vmem:[%s7772_s5] sm:$0xff] }
 0x735   :  { %2055 = vmatprep.mubr.f32.mxu0 %v8170_v60  ;;  %2168 = vmatprep.mubr.f32.mxu1 %v8170_v60  ;;  %8200 = vst [vmem:[#allocation38_spill] sm:$0xff] %v6614_v10 }
 0x738   :  { %2056 = vmatmul.mubr.f32.gmra.mxu0 %v5944_v20  ;;  %2169 = vmatmul.mubr.f32.gmra.mxu1 %v5944_v20  ;;  %v6254_v20 = vld [vmem:[%s7772_s5 + $0x1f8] sm:$0xff] }
 0x739   :  { %2061 = vmatprep.mubr.f32.mxu0 %v8170_v60  ;;  %2174 = vmatprep.mubr.f32.mxu1 %v8170_v60  ;;  %8181 = vst [vmem:[#allocation28_spill] sm:$0xff] %v6254_v20 }
 0x73a   :  { %2362 = vmatprep.subr.mxu1 %v6254_v20 }
 0x73b   :  { %2363 = vmatpush1.msra.mxu1 %v6266_v7 }
 0x73c   :  { %2062 = vmatmul.mubr.f32.gmra.mxu0 %v6026_v29  ;;  %2175 = vmatmul.mubr.f32.gmra.mxu1 %v6026_v29  ;;  %v6260_v29 = vld [vmem:[%s7772_s5 + $0x1e0] sm:$0xff] }
 0x73d   :  { %2067 = vmatprep.mubr.f32.mxu0 %v8170_v60  ;;  %2180 = vmatprep.mubr.f32.mxu1 %v8170_v60 }
 0x73e   :  { %2292 = vmatpush1.msra.mxu0 %v6260_v29  ;;  %2364 = vmatprep.subr.mxu1 %v6278_v27 }
 0x73f   :  { %2293 = vmatprep.subr.mxu0 %v6272_v37  ;;  %2365 = vmatpush1.msra.mxu1 %v6290_v24 }
 0x740   :  { %2294 = vmatpush1.msra.mxu0 %v6284_v41  ;;  %2366 = vmatprep.subr.mxu1 %v6302_v25 }
 0x741   :  { %2295 = vmatprep.subr.mxu0 %v6296_v31  ;;  %2367 = vmatpush1.msra.mxu1 %v6314_v46 }
 0x742   :  { %2296 = vmatpush1.msra.mxu0 %v6308_v40  ;;  %2368 = vmatprep.subr.mxu1 %v6326_v48 }
 0x743   :  { %2297 = vmatprep.subr.mxu0 %v6320_v47  ;;  %2369 = vmatpush1.msra.mxu1 %v6338_v50 }
 0x744   :  { %2298 = vmatpush1.msra.mxu0 %v6332_v49  ;;  %2370 = vmatprep.subr.mxu1 %v6350_v52 }
 0x745   :  { %2299 = vmatprep.subr.mxu0 %v6344_v51  ;;  %2371 = vmatpush1.msra.mxu1 %v6362_v54 }
 0x746   :  { %2300 = vmatpush1.msra.mxu0 %v6356_v53  ;;  %2372 = vmatprep.subr.mxu1 %v6374_v56 }
 0x747   :  { %2301 = vmatprep.subr.mxu0 %v6368_v55  ;;  %2373 = vmatpush1.msra.mxu1 %v6386_v58 }
 0x748   :  { %2302 = vmatpush1.msra.mxu0 %v6380_v57  ;;  %2374 = vmatprep.subr.mxu1 %v6398_v61 }
 0x749   :  { %2303 = vmatprep.subr.mxu0 %v6392_v59  ;;  %2375 = vmatpush1.msra.mxu1 %v6410_v63 }
 0x74a   :  { %2304 = vmatpush1.msra.mxu0 %v6404_v62  ;;  %2376 = vmatprep.subr.mxu1 %v6422_v2 }
 0x74b   :  { %2305 = vmatprep.subr.mxu0 %v6416_v0  ;;  %2377 = vmatpush1.msra.mxu1 %v6434_v28 }
 0x74c   :  { %2306 = vmatpush1.msra.mxu0 %v6428_v39  ;;  %2378 = vmatprep.subr.mxu1 %v6446_v32 }
 0x74d   :  { %2307 = vmatprep.subr.mxu0 %v6440_v44  ;;  %2379 = vmatpush1.msra.mxu1 %v6458_v4 }
 0x74e   :  { %2308 = vmatpush1.msra.mxu0 %v6452_v33  ;;  %2380 = vmatprep.subr.mxu1 %v6470_v42 }
 0x74f   :  { %2309 = vmatprep.subr.mxu0 %v6464_v38  ;;  %2381 = vmatpush1.msra.mxu1 %v6482_v30 }
 0x750   :  { %2310 = vmatpush1.msra.mxu0 %v6476_v13  ;;  %2382 = vmatprep.subr.mxu1 %v6494_v8 }
 0x751   :  { %2311 = vmatprep.subr.mxu0 %v6488_v1  ;;  %2383 = vmatpush1.msra.mxu1 %v6506_v6 }
 0x752   :  { %2312 = vmatpush1.msra.mxu0 %v6500_v36  ;;  %2384 = vmatprep.subr.mxu1 %v6518_v11 }
 0x753   :  { %2313 = vmatprep.subr.mxu0 %v6512_v9  ;;  %2385 = vmatpush1.msra.mxu1 %v6530_v16  ;;  %v8207_v16 = vld [vmem:[#allocation43_spill] sm:$0xff] }
 0x754   :  { %2314 = vmatpush1.msra.mxu0 %v6524_v14  ;;  %2386 = vmatprep.subr.mxu1 %v6542_v23 }
 0x755   :  { %2315 = vmatprep.subr.mxu0 %v6536_v21  ;;  %2387 = vmatpush1.msra.mxu1 %v6554_v45  ;;  %v8206_v21 = vld [vmem:[#allocation45_spill] sm:$0xff] }
 0x756   :  { %2316 = vmatpush1.msra.mxu0 %v6548_v26  ;;  %2388 = vmatprep.subr.mxu1 %v6566_v15 }
 0x757   :  { %2317 = vmatprep.subr.mxu0 %v6560_v5  ;;  %2389 = vmatpush1.msra.mxu1 %v6578_v12  ;;  %v8204_v12 = vld [vmem:[#allocation7_spill] sm:$0xff] }
 0x758   :  { %2318 = vmatpush1.msra.mxu0 %v6572_v19  ;;  %2390 = vmatprep.subr.mxu1 %v6590_v18  ;;  %v6619_v18 = vld [vmem:[%s7772_s5 + $0x18] sm:$0xff] }
 0x759   :  { %2319 = vmatprep.subr.mxu0 %v6584_v34  ;;  %2391 = vmatpush1.msra.mxu1 %v6602_v22  ;;  %8201 = vst [vmem:[#allocation12_spill] sm:$0xff] %v6619_v18  ;;  %v8203_v34 = vld [vmem:[#allocation44_spill] sm:$0xff] }
 0x75a   :  { %2320 = vmatpush1.msra.mxu0 %v6596_v17  ;;  %2392 = vmatprep.subr.mxu1 %v6619_v18  ;;  %v6626_v17 = vld [vmem:[%s7772_s5 + $0x10] sm:$0xff]  ;;  %v221_v19 = vadd.f32 %v8204_v12, %v8203_v34 }
 0x75b   :  { %2321 = vmatprep.subr.mxu0 %v6608_v43  ;;  %8202 = vst [vmem:[#allocation46_spill] sm:$0xff] %v6626_v17  ;;  %2393 = vmatpush1.msra.mxu1 %v6626_v17  ;;  %v8205_v43 = vld [vmem:[#allocation57_spill] sm:$0xff] }
 0x75c   :  { %2322 = vmatpush1.msra.mxu0 %v6614_v10  ;;  %2537 = vmatprep.subr.mxu1 %v6254_v20 }
 0x75d   :  { %2466 = vmatprep.subr.mxu0 %v6249_v35 }
 0x7c3   :  { %v1759_v22 = vpop.f32.mrf.mxu0  ;;  %v1830_v26 = vpop.f32.mrf.mxu1 }
 0x7c4   :  { %v1835_v15 = vadd.f32 %v1759_v22, %v8205_v43  ;;  %v1837_v35 = vadd.f32 %v1830_v26, %v8207_v16  ;;  %v8214_v22 = vld [vmem:[#allocation35_spill] sm:$0xff]  ;;  %v8215_v43 = vld [vmem:[#allocation34_spill] sm:$0xff] }
 0x7c5   :  { %v1761_v18 = vpop.f32.mrf.mxu0  ;;  %v1832_v10 = vpop.f32.mrf.mxu1 }
 0x7c6   :  { %v3997_v5 = vmul.f32 -1.442695, %v1835_v15  ;;  %v1836_v45 = vadd.f32 %v1761_v18, %v221_v19  ;;  %v1838_v17 = vadd.f32 %v1832_v10, %v8206_v21  ;;  %v8216_v10 = vld [vmem:[#allocation51_spill] sm:$0xff] }
 0x7c8   :  { %4208 = vpow2.f32 %v3997_v5  ;;  %v3998_v23 = vmul.f32 -1.442695, %v1836_v45  ;;  %v3999_v14 = vmul.f32 -1.442695, %v1838_v17  ;;  %v8213_v17 = vld [vmem:[#allocation50_spill] sm:$0xff] }
 0x7ca   :  { %4210 = vpow2.f32 %v3998_v23 }
 0x7cb   :  { %4212 = vtanh.f32 %v1837_v35  ;;  %v8209_v35 = vld [vmem:[#allocation48_spill] sm:$0xff] }
 0x7cc   :  { %4214 = vpow2.f32 %v3999_v14  ;;  %v8212_v14 = vld [vmem:[#allocation49_spill] sm:$0xff] }
 0x7d5   :  { %v4209_v20 = vpop.eup %4208 }
 0x7d6   :  { %v1842_v11 = vadd.f32 1.0, %v4209_v20 }
 0x7d7   :  { %v4211_v9 = vpop.eup %4210 }
 0x7d8   :  { %4216 = vrcp.f32 %v1842_v11  ;;  %v1848_v12 = vadd.f32 1.0, %v4211_v9  ;;  %v4213_v15 = vpop.eup %4212  ;;  %v8210_v9 = vld [vmem:[#allocation33_spill] sm:$0xff]  ;;  %v8211_v11 = vld [vmem:[#allocation32_spill] sm:$0xff] }
 0x7d9   :  { %v4215_v19 = vpop.eup %4214 }
 0x7da   :  { %4218 = vrcp.f32 %v1848_v12  ;;  %v1855_v23 = vadd.f32 1.0, %v4215_v19  ;;  %v8217_v12 = vld [vmem:[#allocation52_spill] sm:$0xff] }
 0x7db   :  { %v8219_v19 = vld [vmem:[#allocation36_spill] sm:$0xff] }
 0x7dc   :  { %4220 = vrcp.f32 %v1855_v23  ;;  %v8223_v23 = vld [vmem:[#allocation54_spill] sm:$0xff] }
 0x7e5   :  { %v4217_v5 = vpop.eup %4216 }
 0x7e6   :  { %v1859_v34 = vmul.f32 %v4217_v5, %v4213_v15  ;;  %v8218_v15 = vld [vmem:[#allocation37_spill] sm:$0xff]  ;;  %v8220_v5 = vld [vmem:[#allocation6_spill] sm:$0xff] }
 0x7e7   :  { %v4219_v45 = vpop.eup %4218 }
 0x7e8   :  { %v1858_v18 = vmul.f32 %v4219_v45, %v6023_v3  ;;  %v8208_v3 = vld [vmem:[#allocation47_spill] sm:$0xff]  ;;  %v8222_v45 = vld [vmem:[#allocation53_spill] sm:$0xff] }
 0x7e9   :  { %v4221_v16 = vpop.eup %4220 }
 0x7ea   :  { %v1860_v21 = vadd.f32 %v1859_v34, %v1858_v18  ;;  %v8221_v34 = vld [vmem:[#allocation11_spill] sm:$0xff] }
 0x7eb   :  { %v8224_v18 = vld [vmem:[#allocation39_spill] sm:$0xff] }
 0x7ec   :  { %4222 = vtanh.f32 %v1860_v21  ;;  %v8225_v21 = vld [vmem:[#allocation12_spill] sm:$0xff] }
 0x7f9   :  { %v4223_v26 = vpop.eup %4222 }
 0x7fa   :  { %v1862_v20 = vmul.f32 %v4223_v26, %v4221_v16  ;;  %v8226_v16 = vld [vmem:[#allocation38_spill] sm:$0xff] }
 0x7fb   :  { %v8227_v26 = vld [vmem:[#allocation46_spill] sm:$0xff] }
 0x7fc   :  { %2068 = vmatmul.mubr.f32.gmra.mxu0 %v1862_v20  ;;  %2181 = vmatmul.mubr.f32.gmra.mxu1 %v1862_v20  ;;  %v8228_v20 = vld [vmem:[#allocation17_spill] sm:$0xff] }
 0x7fd   :  { %2355 = vmatprep.mubr.f32.mxu0 %v8170_v60  ;;  %2426 = vmatprep.mubr.f32.mxu1 %v8170_v60 }
 0x800   :  { %2356 = vmatmul.mubr.f32.vlgmr.msra.gmra.mxu0 %v8170_v60  ;;  %2427 = vmatmul.mubr.f32.vlgmr.msra.gmra.mxu1 %v8170_v60 }
 0x801   :  { %2467 = vmatpush1.msra.mxu0 %v6260_v29  ;;  %2538 = vmatpush1.msra.mxu1 %v6266_v7 }
 0x802   :  { %2468 = vmatprep.subr.mxu0 %v6272_v37  ;;  %2539 = vmatprep.subr.mxu1 %v6278_v27 }
 0x803   :  { %2469 = vmatpush1.msra.mxu0 %v6284_v41  ;;  %2540 = vmatpush1.msra.mxu1 %v6290_v24 }
 0x804   :  { %2470 = vmatprep.subr.mxu0 %v6296_v31  ;;  %2541 = vmatprep.subr.mxu1 %v6302_v25 }
 0x805   :  { %2471 = vmatpush1.msra.mxu0 %v6308_v40  ;;  %2542 = vmatpush1.msra.mxu1 %v6314_v46 }
 0x806   :  { %2472 = vmatprep.subr.mxu0 %v6320_v47  ;;  %2543 = vmatprep.subr.mxu1 %v6326_v48 }
 0x807   :  { %2473 = vmatpush1.msra.mxu0 %v6332_v49  ;;  %2544 = vmatpush1.msra.mxu1 %v6338_v50 }
 0x808   :  { %2474 = vmatprep.subr.mxu0 %v6344_v51  ;;  %2545 = vmatprep.subr.mxu1 %v6350_v52 }
 0x809   :  { %2475 = vmatpush1.msra.mxu0 %v6356_v53  ;;  %2546 = vmatpush1.msra.mxu1 %v6362_v54 }
 0x80a   :  { %2476 = vmatprep.subr.mxu0 %v6368_v55  ;;  %2547 = vmatprep.subr.mxu1 %v6374_v56 }
 0x80b   :  { %2477 = vmatpush1.msra.mxu0 %v6380_v57  ;;  %2548 = vmatpush1.msra.mxu1 %v6386_v58 }
 0x80c   :  { %2478 = vmatprep.subr.mxu0 %v6392_v59  ;;  %2549 = vmatprep.subr.mxu1 %v6398_v61 }
 0x80d   :  { %2479 = vmatpush1.msra.mxu0 %v6404_v62  ;;  %2550 = vmatpush1.msra.mxu1 %v6410_v63 }
 0x80e   :  { %2480 = vmatprep.subr.mxu0 %v6416_v0  ;;  %2551 = vmatprep.subr.mxu1 %v6422_v2 }
 0x80f   :  { %2481 = vmatpush1.msra.mxu0 %v6428_v39  ;;  %2552 = vmatpush1.msra.mxu1 %v6434_v28 }
 0x810   :  { %2482 = vmatprep.subr.mxu0 %v6440_v44  ;;  %2553 = vmatprep.subr.mxu1 %v6446_v32 }
 0x811   :  { %2483 = vmatpush1.msra.mxu0 %v6452_v33  ;;  %2554 = vmatpush1.msra.mxu1 %v6458_v4 }
 0x812   :  { %2484 = vmatprep.subr.mxu0 %v6464_v38  ;;  %2555 = vmatprep.subr.mxu1 %v6470_v42 }
 0x813   :  { %2485 = vmatpush1.msra.mxu0 %v6476_v13  ;;  %2556 = vmatpush1.msra.mxu1 %v6482_v30 }
 0x814   :  { %2486 = vmatprep.subr.mxu0 %v6488_v1  ;;  %2557 = vmatprep.subr.mxu1 %v6494_v8 }
 0x815   :  { %2487 = vmatpush1.msra.mxu0 %v6500_v36  ;;  %2558 = vmatpush1.msra.mxu1 %v6506_v6 }
 0x816   :  { %2488 = vmatprep.subr.mxu0 %v8208_v3  ;;  %2559 = vmatprep.subr.mxu1 %v8209_v35 }
 0x817   :  { %2489 = vmatpush1.msra.mxu0 %v8210_v9  ;;  %2560 = vmatpush1.msra.mxu1 %v8211_v11 }
 0x818   :  { %2490 = vmatprep.subr.mxu0 %v8212_v14  ;;  %2561 = vmatprep.subr.mxu1 %v8213_v17 }
 0x819   :  { %2491 = vmatpush1.msra.mxu0 %v8214_v22  ;;  %2562 = vmatpush1.msra.mxu1 %v8215_v43 }
 0x81a   :  { %2492 = vmatprep.subr.mxu0 %v8216_v10  ;;  %2563 = vmatprep.subr.mxu1 %v8217_v12 }
 0x81b   :  { %2493 = vmatpush1.msra.mxu0 %v8218_v15  ;;  %2564 = vmatpush1.msra.mxu1 %v8219_v19 }
 0x81c   :  { %2494 = vmatprep.subr.mxu0 %v8220_v5  ;;  %2565 = vmatprep.subr.mxu1 %v8221_v34  ;;  %v8229_v5 = vld [vmem:[#allocation28_spill] sm:$0xff]  ;;  %v2027_v34 = vpop.f32.mrf.mxu0 }
 0x81d   :  { %2495 = vmatpush1.msra.mxu0 %v8222_v45  ;;  %2566 = vmatpush1.msra.mxu1 %v8223_v23  ;;  %v2140_v45 = vpop.f32.mrf.mxu1 }
 0x81e   :  { %2496 = vmatprep.subr.mxu0 %v8224_v18  ;;  %2567 = vmatprep.subr.mxu1 %v8225_v21  ;;  %v2029_v19 = vpop.f32.mrf.mxu0 }
 0x81f   :  { %2497 = vmatpush1.msra.mxu0 %v8226_v16  ;;  %2530 = vmatprep.mubr.f32.mxu0 %v8170_v60  ;;  %v2142_v23 = vpop.f32.mrf.mxu1 }
 0x820   :  { %2568 = vmatpush1.msra.mxu1 %v8227_v26  ;;  %2601 = vmatprep.mubr.f32.mxu1 %v8170_v60  ;;  %v6708_v15 = vpop.f32.mrf.mxu0 }
 0x821   :  { %2641 = vmatprep.subr.mxu0 %v8228_v20  ;;  %2712 = vmatprep.subr.mxu1 %v8229_v5  ;;  %8230 = vst [vmem:[#allocation23_spill] sm:$0xff] %v6708_v15  ;;  %v6710_v18 = vpop.f32.mrf.mxu1 }
 0x822   :  { %8231 = vst [vmem:[#allocation31_spill] sm:$0xff] %v6710_v18  ;;  %v6712_v21 = vpop.f32.mrf.mxu0 }
 0x823   :  { %8232 = vst [vmem:[#allocation13_spill] sm:$0xff] %v6712_v21  ;;  %v6714_v16 = vpop.f32.mrf.mxu1 }
 0x824   :  { %8233 = vst [vmem:[#allocation30_spill] sm:$0xff] %v6714_v16  ;;  %v6716_v12 = vpop.f32.mrf.mxu0 }
 0x825   :  { %8234 = vst [vmem:[#allocation24_spill] sm:$0xff] %v6716_v12  ;;  %v6718_v26 = vpop.f32.mrf.mxu1 }
 0x826   :  { %8235 = vst [vmem:[#allocation19_spill] sm:$0xff] %v6718_v26  ;;  %v6720_v60 = vpop.f32.mrf.mxu0 }
 0x827   :  { %8236 = vst [vmem:[#allocation14_spill] sm:$0xff] %v6720_v60  ;;  %v6722_v20 = vpop.f32.mrf.mxu1 }
 0x828   :  { %8237 = vst [vmem:[#allocation9_spill] sm:$0xff] %v6722_v20  ;;  %v6724_v5 = vpop.f32.mrf.mxu0 }
 0x829   :  { %8238 = vst [vmem:[#allocation25_spill] sm:$0xff] %v6724_v5  ;;  %v6726_v10 = vpop.f32.mrf.mxu1 }
 0x82a   :  { %8239 = vst [vmem:[#allocation20_spill] sm:$0xff] %v6726_v10  ;;  %v6728_v43 = vpop.f32.mrf.mxu0 }
 0x82b   :  { %8240 = vst [vmem:[#allocation15_spill] sm:$0xff] %v6728_v43  ;;  %v6730_v15 = vpop.f32.mrf.mxu1 }
 0x82c   :  { %8241 = vst [vmem:[#allocation10_spill] sm:$0xff] %v6730_v15  ;;  %v6732_v18 = vpop.f32.mrf.mxu0 }
 0x82d   :  { %8242 = vst [vmem:[#allocation26_spill] sm:$0xff] %v6732_v18  ;;  %v6734_v21 = vpop.f32.mrf.mxu1 }
 0x82e   :  { %8243 = vst [vmem:[#allocation21_spill] sm:$0xff] %v6734_v21  ;;  %v6736_v16 = vpop.f32.mrf.mxu0  ;;  %v1939_v21 = vld [vmem:[%s7773_s6] sm:$0xf] }
 0x82f   :  { %8244 = vst [vmem:[#allocation16_spill] sm:$0xff] %v6736_v16  ;;  %v6738_v12 = vpop.f32.mrf.mxu1  ;;  %v8253_v16 = vld [vmem:[#allocation29_spill] sm:$0xff] }
 0x830   :  { %8245 = vst [vmem:[#allocation55_spill] sm:$0xff] %v6738_v12  ;;  %v6740_v26 = vpop.f32.mrf.mxu0  ;;  %v8254_v12 = vsub.s32 0, %v8253_v16 }
 0x831   :  { %8246 = vst [vmem:[#allocation56_spill] sm:$0xff] %v6740_v26  ;;  %v6742_v60 = vpop.f32.mrf.mxu1 }
 0x832   :  { %8247 = vst [vmem:[#allocation41_spill] sm:$0xff] %v6742_v60  ;;  %v6744_v20 = vpop.f32.mrf.mxu0  ;;  %v6759_v15 = vrot.slane %v1939_v21, %v8254_v12 }
 0x833   :  { %8248 = vst [vmem:[#allocation40_spill] sm:$0xff] %v6744_v20  ;;  %v6746_v5 = vpop.f32.mrf.mxu1 }
 0x834   :  { %8249 = vst [vmem:[#allocation58_spill] sm:$0xff] %v6746_v5  ;;  %v6748_v10 = vpop.f32.mrf.mxu0  ;;  %8255 = vst [vmem:[#allocation27_spill] sm:$0xff] %v6759_v15  ;;  %v8258_v5 = vsub.s32 1, %v8253_v16  ;;  %v2028_v22 = vadd.f32 %v2027_v34, %v6759_v15 }
 0x835   :  { %8250 = vst [vmem:[#allocation8_spill] sm:$0xff] %v6748_v10  ;;  %v6750_v43 = vpop.f32.mrf.mxu1 }
 0x836   :  { %8251 = vst [vmem:[#allocation42_spill] sm:$0xff] %v6750_v43  ;;  %v6755_v18 = vpop.f32.mrf.mxu0  ;;  %v6767_v20 = vrot.slane %v1939_v21, %v8258_v5  ;;  %v8262_v5 = vsub.s32 3, %v8253_v16 }
 0x837   :  { %8252 = vst [vmem:[#allocation22_spill] sm:$0xff] %v6755_v18  ;;  %v6761_v26 = vpop.f32.mrf.mxu1 }
 0x838   :  { %8256 = vst [vmem:[#allocation44_spill] sm:$0xff] %v6761_v26  ;;  %v2030_v18 = vadd.f32 %v2029_v19, %v6767_v20  ;;  %v6779_v3 = vrot.slane %v1939_v21, %v8262_v5 }
 0x83a   :  { %8263 = vst [vmem:[#allocation29_spill] sm:$0xff] %v6779_v3  ;;  %v2143_v34 = vadd.f32 %v2142_v23, %v6779_v3 }
 0x8bc   :  { %v6763_v60 = vpop.f32.mrf.mxu0  ;;  %v6769_v10 = vpop.f32.mrf.mxu1 }
 0x8bd   :  { %8257 = vst [vmem:[#allocation7_spill] sm:$0xff] %v6763_v60  ;;  %8259 = vst [vmem:[#allocation57_spill] sm:$0xff] %v6769_v10 }
 0x8be   :  { %v6771_v43 = vpop.f32.mrf.mxu0  ;;  %v6775_v14 = vpop.f32.mrf.mxu1 }
 0x8bf   :  { %8260 = vst [vmem:[#allocation45_spill] sm:$0xff] %v6771_v43  ;;  %8261 = vst [vmem:[#allocation43_spill] sm:$0xff] %v6775_v14  ;;  %v8264_v43 = vsub.s32 2, %v8253_v16 }
 0x8c0   :  { %v2357_v17 = vpop.f32.mrf.mxu0  ;;  %v2428_v60 = vpop.f32.mrf.mxu1 }
 0x8c1   :  { %v2433_v12 = vadd.f32 %v2357_v17, %v2028_v22  ;;  %v6784_v19 = vrot.slane %v1939_v21, %v8264_v43 }
 0x8c2   :  { %v2359_v11 = vpop.f32.mrf.mxu0  ;;  %v2430_v10 = vpop.f32.mrf.mxu1 }
 0x8c3   :  { %v4000_v26 = vmul.f32 -1.442695, %v2433_v12  ;;  %v2434_v9 = vadd.f32 %v2359_v11, %v2030_v18  ;;  %v2436_v14 = vadd.f32 %v2430_v10, %v2143_v34  ;;  %v2141_v17 = vadd.f32 %v2140_v45, %v6784_v19  ;;  %v8267_v34 = vld [vmem:[#allocation48_spill] sm:$0xff] }
 0x8c5   :  { %4224 = vpow2.f32 %v4000_v26  ;;  %v4001_v35 = vmul.f32 -1.442695, %v2434_v9  ;;  %v4002_v22 = vmul.f32 -1.442695, %v2436_v14  ;;  %v2435_v18 = vadd.f32 %v2428_v60, %v2141_v17  ;;  %v8268_v17 = vld [vmem:[#allocation33_spill] sm:$0xff] }
 0x8c7   :  { %4226 = vpow2.f32 %v4001_v35 }
 0x8c8   :  { %4228 = vpow2.f32 %v4002_v22  ;;  %v8269_v22 = vld [vmem:[#allocation32_spill] sm:$0xff] }
 0x8d2   :  { %v4225_v11 = vpop.eup %4224 }
 0x8d3   :  { %v2440_v26 = vadd.f32 1.0, %v4225_v11  ;;  %v8270_v11 = vld [vmem:[#allocation49_spill] sm:$0xff] }
 0x8d4   :  { %v4227_v9 = vpop.eup %4226 }
 0x8d5   :  { %4230 = vrcp.f32 %v2440_v26  ;;  %v2446_v12 = vadd.f32 1.0, %v4227_v9  ;;  %v4229_v35 = vpop.eup %4228  ;;  %v8272_v26 = vld [vmem:[#allocation35_spill] sm:$0xff]  ;;  %v8273_v9 = vld [vmem:[#allocation34_spill] sm:$0xff] }
 0x8d6   :  { %4232 = vtanh.f32 %v2435_v18  ;;  %v2453_v16 = vadd.f32 1.0, %v4229_v35  ;;  %v8271_v18 = vld [vmem:[#allocation50_spill] sm:$0xff]  ;;  %v8275_v35 = vld [vmem:[#allocation52_spill] sm:$0xff] }
 0x8d7   :  { %4234 = vrcp.f32 %v2446_v12  ;;  %v8274_v12 = vld [vmem:[#allocation51_spill] sm:$0xff] }
 0x8d8   :  { %4236 = vrcp.f32 %v2453_v16  ;;  %v8278_v16 = vld [vmem:[#allocation6_spill] sm:$0xff] }
 0x8e2   :  { %v4231_v5 = vpop.eup %4230 }
 0x8e3   :  { %v4233_v23 = vpop.eup %4232 }
 0x8e4   :  { %v4235_v3 = vpop.eup %4234  ;;  %v2457_v21 = vmul.f32 %v4233_v23, %v4231_v5  ;;  %v8276_v5 = vld [vmem:[#allocation37_spill] sm:$0xff]  ;;  %v8277_v23 = vld [vmem:[#allocation36_spill] sm:$0xff] }
 0x8e5   :  { %v2456_v43 = vmul.f32 0.0, %v4235_v3  ;;  %v4237_v60 = vpop.eup %4236  ;;  %v8266_v3 = vld [vmem:[#allocation47_spill] sm:$0xff] }
 0x8e7   :  { %v6787_v10 = vadd.f32 %v2457_v21, %v2456_v43  ;;  %v8279_v43 = vld [vmem:[#allocation11_spill] sm:$0xff]  ;;  %v8280_v21 = vld [vmem:[#allocation53_spill] sm:$0xff] }
 0x8e9   :  { %4238 = vtanh.f32 %v6787_v10 }
 0x8f6   :  { %v4239_v14 = vpop.eup %4238 }
 0x8f7   :  { %v6790_v45 = vmul.f32 %v4239_v14, %v4237_v60  ;;  %v8281_v60 = vld [vmem:[#allocation54_spill] sm:$0xff]  ;;  %v8282_v14 = vld [vmem:[#allocation39_spill] sm:$0xff] }
 0x8f9   :  { %8265 = vst [vmem:[#allocation59_spill] sm:$0xff] %v6790_v45  ;;  %2531 = vmatmul.mubr.f32.vlgmr.msra.gmra.mxu0 %v6790_v45  ;;  %2602 = vmatmul.mubr.f32.vlgmr.msra.gmra.mxu1 %v6790_v45  ;;  %v8283_v45 = vld [vmem:[#allocation12_spill] sm:$0xff] }
 0x8fa   :  { %2642 = vmatpush1.msra.mxu0 %v6260_v29  ;;  %2713 = vmatpush1.msra.mxu1 %v6266_v7 }
 0x8fb   :  { %2643 = vmatprep.subr.mxu0 %v6272_v37  ;;  %2714 = vmatprep.subr.mxu1 %v6278_v27 }
 0x8fc   :  { %2644 = vmatpush1.msra.mxu0 %v6284_v41  ;;  %2715 = vmatpush1.msra.mxu1 %v6290_v24 }
 0x8fd   :  { %2645 = vmatprep.subr.mxu0 %v6296_v31  ;;  %2716 = vmatprep.subr.mxu1 %v6302_v25 }
 0x8fe   :  { %2646 = vmatpush1.msra.mxu0 %v6308_v40  ;;  %2717 = vmatpush1.msra.mxu1 %v6314_v46 }
 0x8ff   :  { %2647 = vmatprep.subr.mxu0 %v6320_v47  ;;  %2718 = vmatprep.subr.mxu1 %v6326_v48 }
 0x900   :  { %2648 = vmatpush1.msra.mxu0 %v6332_v49  ;;  %2719 = vmatpush1.msra.mxu1 %v6338_v50 }
 0x901   :  { %2649 = vmatprep.subr.mxu0 %v6344_v51  ;;  %2720 = vmatprep.subr.mxu1 %v6350_v52 }
 0x902   :  { %2650 = vmatpush1.msra.mxu0 %v6356_v53  ;;  %2721 = vmatpush1.msra.mxu1 %v6362_v54 }
 0x903   :  { %2651 = vmatprep.subr.mxu0 %v6368_v55  ;;  %2722 = vmatprep.subr.mxu1 %v6374_v56 }
 0x904   :  { %2652 = vmatpush1.msra.mxu0 %v6380_v57  ;;  %2723 = vmatpush1.msra.mxu1 %v6386_v58 }
 0x905   :  { %2653 = vmatprep.subr.mxu0 %v6392_v59  ;;  %2724 = vmatprep.subr.mxu1 %v6398_v61 }
 0x906   :  { %2654 = vmatpush1.msra.mxu0 %v6404_v62  ;;  %2725 = vmatpush1.msra.mxu1 %v6410_v63 }
 0x907   :  { %2655 = vmatprep.subr.mxu0 %v6416_v0  ;;  %2726 = vmatprep.subr.mxu1 %v6422_v2 }
 0x908   :  { %2656 = vmatpush1.msra.mxu0 %v6428_v39  ;;  %2727 = vmatpush1.msra.mxu1 %v6434_v28 }
 0x909   :  { %2657 = vmatprep.subr.mxu0 %v6440_v44  ;;  %2728 = vmatprep.subr.mxu1 %v6446_v32 }
 0x90a   :  { %2658 = vmatpush1.msra.mxu0 %v6452_v33  ;;  %2729 = vmatpush1.msra.mxu1 %v6458_v4 }
 0x90b   :  { %2659 = vmatprep.subr.mxu0 %v6464_v38  ;;  %2730 = vmatprep.subr.mxu1 %v6470_v42 }
 0x90c   :  { %2660 = vmatpush1.msra.mxu0 %v6476_v13  ;;  %2731 = vmatpush1.msra.mxu1 %v6482_v30 }
 0x90d   :  { %2661 = vmatprep.subr.mxu0 %v6488_v1  ;;  %2732 = vmatprep.subr.mxu1 %v6494_v8 }
 0x90e   :  { %2662 = vmatpush1.msra.mxu0 %v6500_v36  ;;  %2733 = vmatpush1.msra.mxu1 %v6506_v6 }
 0x90f   :  { %2663 = vmatprep.subr.mxu0 %v8266_v3  ;;  %2734 = vmatprep.subr.mxu1 %v8267_v34  ;;  %v8293_v34 = vld [vmem:[#allocation31_spill] sm:$0xff] }
 0x910   :  { %2664 = vmatpush1.msra.mxu0 %v8268_v17  ;;  %2735 = vmatpush1.msra.mxu1 %v8269_v22  ;;  %v8291_v22 = vld [vmem:[#allocation29_spill] sm:$0xff] }
 0x911   :  { %2665 = vmatprep.subr.mxu0 %v8270_v11  ;;  %2736 = vmatprep.subr.mxu1 %v8271_v18 }
 0x912   :  { %2666 = vmatpush1.msra.mxu0 %v8272_v26  ;;  %2737 = vmatpush1.msra.mxu1 %v8273_v9  ;;  %v8284_v9 = vld [vmem:[#allocation38_spill] sm:$0xff] }
 0x913   :  { %2667 = vmatprep.subr.mxu0 %v8274_v12  ;;  %2738 = vmatprep.subr.mxu1 %v8275_v35  ;;  %v8285_v12 = vmov 0.0   ;;  %v8286_v35 = vld [vmem:[#allocation46_spill] sm:$0xff] }
 0x914   :  { %2668 = vmatpush1.msra.mxu0 %v8276_v5  ;;  %2739 = vmatpush1.msra.mxu1 %v8277_v23  ;;  %v8287_v23 = vld [vmem:[#allocation17_spill] sm:$0xff] }
 0x915   :  { %2669 = vmatprep.subr.mxu0 %v8278_v16  ;;  %2740 = vmatprep.subr.mxu1 %v8279_v43  ;;  %v8288_v16 = vld [vmem:[#allocation28_spill] sm:$0xff] }
 0x916   :  { %2670 = vmatpush1.msra.mxu0 %v8280_v21  ;;  %2741 = vmatpush1.msra.mxu1 %v8281_v60  ;;  %v8289_v21 = vld [vmem:[#allocation23_spill] sm:$0xff] }
 0x917   :  { %2671 = vmatprep.subr.mxu0 %v8282_v14  ;;  %2742 = vmatprep.subr.mxu1 %v8283_v45  ;;  %v2034_v43 = vadd.f32 %v8289_v21, %v6759_v15  ;;  %v8290_v14 = vld [vmem:[#allocation13_spill] sm:$0xff]  ;;  %v2147_v21 = vadd.f32 %v8293_v34, %v6784_v19 }
 0x918   :  { %2672 = vmatpush1.msra.mxu0 %v8284_v9  ;;  %2705 = vmatprep.mubr.f32.mxu0 %v8285_v12  ;;  %v2036_v5 = vadd.f32 %v8290_v14, %v6767_v20 }
 0x919   :  { %2743 = vmatpush1.msra.mxu1 %v8286_v35  ;;  %2776 = vmatprep.mubr.f32.mxu1 %v8285_v12 }
 0x91a   :  { %2816 = vmatprep.subr.mxu0 %v8287_v23  ;;  %2887 = vmatprep.subr.mxu1 %v8288_v16  ;;  %v8292_v23 = vld [vmem:[#allocation30_spill] sm:$0xff] }
 0x91b   :  { %v2149_v17 = vadd.f32 %v8292_v23, %v8291_v22 }
 0x9b9   :  { %v2532_v60 = vpop.f32.mrf.mxu0  ;;  %v2603_v11 = vpop.f32.mrf.mxu1 }
 0x9ba   :  { %v2608_v45 = vadd.f32 %v2532_v60, %v2034_v43  ;;  %v2610_v15 = vadd.f32 %v2603_v11, %v2147_v21  ;;  %v8310_v11 = vld [vmem:[#allocation53_spill] sm:$0xff]  ;;  %v8312_v60 = vld [vmem:[#allocation39_spill] sm:$0xff]  ;;  %v8313_v21 = vld [vmem:[#allocation12_spill] sm:$0xff] }
 0x9bb   :  { %v2534_v26 = vpop.f32.mrf.mxu0  ;;  %v2605_v12 = vpop.f32.mrf.mxu1 }
 0x9bc   :  { %v4003_v9 = vmul.f32 -1.442695, %v2608_v45  ;;  %v2609_v18 = vadd.f32 %v2534_v26, %v2036_v5  ;;  %v2611_v16 = vadd.f32 %v2605_v12, %v2149_v17 }
 0x9be   :  { %4240 = vpow2.f32 %v4003_v9  ;;  %v4004_v35 = vmul.f32 -1.442695, %v2609_v18  ;;  %v4005_v3 = vmul.f32 -1.442695, %v2611_v16  ;;  %v8311_v16 = vld [vmem:[#allocation54_spill] sm:$0xff] }
 0x9c0   :  { %4242 = vpow2.f32 %v4004_v35 }
 0x9c1   :  { %4244 = vtanh.f32 %v2610_v15 }
 0x9c2   :  { %4246 = vpow2.f32 %v4005_v3  ;;  %v8309_v3 = vld [vmem:[#allocation11_spill] sm:$0xff] }
 0x9cb   :  { %v4241_v6 = vpop.eup %4240 }
 0x9cc   :  { %v2615_v14 = vadd.f32 1.0, %v4241_v6 }
 0x9cd   :  { %v4243_v43 = vpop.eup %4242 }
 0x9ce   :  { %4248 = vrcp.f32 %v2615_v14  ;;  %v2621_v45 = vadd.f32 1.0, %v4243_v43  ;;  %v4245_v18 = vpop.eup %4244  ;;  %v8314_v14 = vld [vmem:[#allocation38_spill] sm:$0xff]  ;;  %v8315_v43 = vmov 0.0  }
 0x9cf   :  { %v4247_v26 = vpop.eup %4246 }
 0x9d0   :  { %4250 = vrcp.f32 %v2621_v45  ;;  %v2628_v23 = vadd.f32 1.0, %v4247_v26  ;;  %v8316_v45 = vld [vmem:[#allocation46_spill] sm:$0xff]  ;;  %v8318_v26 = vld [vmem:[#allocation28_spill] sm:$0xff] }
 0x9d2   :  { %4252 = vrcp.f32 %v2628_v23 }
 0x9db   :  { %v4249_v9 = vpop.eup %4248 }
 0x9dc   :  { %v2632_v35 = vmul.f32 %v4249_v9, %v4245_v18  ;;  %v8317_v18 = vld [vmem:[#allocation17_spill] sm:$0xff]  ;;  %v8319_v9 = vld [vmem:[#allocation27_spill] sm:$0xff] }
 0x9dd   :  { %v4251_v5 = vpop.eup %4250 }
 0x9de   :  { %v2631_v17 = vmul.f32 %v4251_v5, %v6787_v10  ;;  %v8308_v10 = vld [vmem:[#allocation6_spill] sm:$0xff] }
 0x9df   :  { %v4253_v6 = vpop.eup %4252 }
 0x9e0   :  { %v6869_v12 = vadd.f32 %v2632_v35, %v2631_v17  ;;  %v8320_v35 = vld [vmem:[#allocation24_spill] sm:$0xff]  ;;  %v8321_v17 = vld [vmem:[#allocation14_spill] sm:$0xff] }
 0x9e1   :  { %v2040_v5 = vadd.f32 %v8320_v35, %v8319_v9 }
 0x9e2   :  { %4254 = vtanh.f32 %v6869_v12 }
 0x9ef   :  { %v4255_v15 = vpop.eup %4254 }
 0x9f0   :  { %v6872_v34 = vmul.f32 %v4255_v15, %v4253_v6  ;;  %v2042_v6 = vadd.f32 %v8321_v17, %v6767_v20 }
 0x9f2   :  { %8294 = vst [vmem:[#allocation23_spill] sm:$0xff] %v6872_v34  ;;  %2706 = vmatmul.mubr.f32.vlgmr.msra.gmra.mxu0 %v6872_v34  ;;  %2777 = vmatmul.mubr.f32.vlgmr.msra.gmra.mxu1 %v6872_v34 }
 0x9f3   :  { %2817 = vmatpush1.msra.mxu0 %v6260_v29  ;;  %2888 = vmatpush1.msra.mxu1 %v6266_v7  ;;  %v8295_v29 = vld [vmem:[#allocation18_spill] sm:$0xff]  ;;  %v8296_v7 = vld [vmem:[#allocation47_spill] sm:$0xff] }
 0x9f4   :  { %2818 = vmatprep.subr.mxu0 %v6272_v37  ;;  %2889 = vmatprep.subr.mxu1 %v6278_v27  ;;  %v8297_v37 = vld [vmem:[#allocation48_spill] sm:$0xff]  ;;  %v8298_v27 = vld [vmem:[#allocation33_spill] sm:$0xff] }
 0x9f5   :  { %2819 = vmatpush1.msra.mxu0 %v6284_v41  ;;  %2890 = vmatpush1.msra.mxu1 %v6290_v24  ;;  %v8299_v41 = vld [vmem:[#allocation32_spill] sm:$0xff]  ;;  %v8300_v24 = vld [vmem:[#allocation49_spill] sm:$0xff] }
 0x9f6   :  { %2820 = vmatprep.subr.mxu0 %v6296_v31  ;;  %2891 = vmatprep.subr.mxu1 %v6302_v25  ;;  %v8301_v31 = vld [vmem:[#allocation50_spill] sm:$0xff]  ;;  %v8302_v25 = vld [vmem:[#allocation35_spill] sm:$0xff] }
 0x9f7   :  { %2821 = vmatpush1.msra.mxu0 %v6308_v40  ;;  %2892 = vmatpush1.msra.mxu1 %v6314_v46  ;;  %v8303_v40 = vld [vmem:[#allocation34_spill] sm:$0xff]  ;;  %v8304_v46 = vld [vmem:[#allocation51_spill] sm:$0xff] }
 0x9f8   :  { %2822 = vmatprep.subr.mxu0 %v6320_v47  ;;  %2893 = vmatprep.subr.mxu1 %v6326_v48  ;;  %v8305_v47 = vld [vmem:[#allocation52_spill] sm:$0xff]  ;;  %v8306_v48 = vld [vmem:[#allocation37_spill] sm:$0xff] }
 0x9f9   :  { %2823 = vmatpush1.msra.mxu0 %v6332_v49  ;;  %2894 = vmatpush1.msra.mxu1 %v6338_v50  ;;  %v8307_v49 = vld [vmem:[#allocation36_spill] sm:$0xff] }
 0x9fa   :  { %2824 = vmatprep.subr.mxu0 %v6344_v51  ;;  %2895 = vmatprep.subr.mxu1 %v6350_v52 }
 0x9fb   :  { %2825 = vmatpush1.msra.mxu0 %v6356_v53  ;;  %2896 = vmatpush1.msra.mxu1 %v6362_v54 }
 0x9fc   :  { %2826 = vmatprep.subr.mxu0 %v6368_v55  ;;  %2897 = vmatprep.subr.mxu1 %v6374_v56 }
 0x9fd   :  { %2827 = vmatpush1.msra.mxu0 %v6380_v57  ;;  %2898 = vmatpush1.msra.mxu1 %v6386_v58 }
 0x9fe   :  { %2828 = vmatprep.subr.mxu0 %v6392_v59  ;;  %2899 = vmatprep.subr.mxu1 %v6398_v61 }
 0x9ff   :  { %2829 = vmatpush1.msra.mxu0 %v6404_v62  ;;  %2900 = vmatpush1.msra.mxu1 %v6410_v63 }
 0xa00   :  { %2830 = vmatprep.subr.mxu0 %v6416_v0  ;;  %2901 = vmatprep.subr.mxu1 %v6422_v2 }
 0xa01   :  { %2831 = vmatpush1.msra.mxu0 %v6428_v39  ;;  %2902 = vmatpush1.msra.mxu1 %v6434_v28 }
 0xa02   :  { %2832 = vmatprep.subr.mxu0 %v6440_v44  ;;  %2903 = vmatprep.subr.mxu1 %v6446_v32 }
 0xa03   :  { %2833 = vmatpush1.msra.mxu0 %v6452_v33  ;;  %2904 = vmatpush1.msra.mxu1 %v6458_v4 }
 0xa04   :  { %2834 = vmatprep.subr.mxu0 %v6464_v38  ;;  %2905 = vmatprep.subr.mxu1 %v6470_v42 }
 0xa05   :  { %2835 = vmatpush1.msra.mxu0 %v6476_v13  ;;  %2906 = vmatpush1.msra.mxu1 %v6482_v30 }
 0xa06   :  { %2836 = vmatprep.subr.mxu0 %v6488_v1  ;;  %2907 = vmatprep.subr.mxu1 %v6494_v8 }
 0xa07   :  { %2837 = vmatpush1.msra.mxu0 %v6500_v36  ;;  %2908 = vmatpush1.msra.mxu1 %v8295_v29 }
 0xa08   :  { %2838 = vmatprep.subr.mxu0 %v8296_v7  ;;  %2909 = vmatprep.subr.mxu1 %v8297_v37 }
 0xa09   :  { %2839 = vmatpush1.msra.mxu0 %v8298_v27  ;;  %2910 = vmatpush1.msra.mxu1 %v8299_v41 }
 0xa0a   :  { %2840 = vmatprep.subr.mxu0 %v8300_v24  ;;  %2911 = vmatprep.subr.mxu1 %v8301_v31 }
 0xa0b   :  { %2841 = vmatpush1.msra.mxu0 %v8302_v25  ;;  %2912 = vmatpush1.msra.mxu1 %v8303_v40 }
 0xa0c   :  { %2842 = vmatprep.subr.mxu0 %v8304_v46  ;;  %2913 = vmatprep.subr.mxu1 %v8305_v47 }
 0xa0d   :  { %2843 = vmatpush1.msra.mxu0 %v8306_v48  ;;  %2914 = vmatpush1.msra.mxu1 %v8307_v49 }
 0xa0e   :  { %2844 = vmatprep.subr.mxu0 %v8308_v10  ;;  %2915 = vmatprep.subr.mxu1 %v8309_v3 }
 0xa0f   :  { %2845 = vmatpush1.msra.mxu0 %v8310_v11  ;;  %2916 = vmatpush1.msra.mxu1 %v8311_v16  ;;  %v8323_v11 = vld [vmem:[#allocation19_spill] sm:$0xff] }
 0xa10   :  { %2846 = vmatprep.subr.mxu0 %v8312_v60  ;;  %2917 = vmatprep.subr.mxu1 %v8313_v21  ;;  %v2153_v35 = vadd.f32 %v8323_v11, %v6784_v19 }
 0xa11   :  { %2847 = vmatpush1.msra.mxu0 %v8314_v14  ;;  %2880 = vmatprep.mubr.f32.mxu0 %v8315_v43 }
 0xa12   :  { %2918 = vmatpush1.msra.mxu1 %v8316_v45  ;;  %2951 = vmatprep.mubr.f32.mxu1 %v8315_v43 }
 0xa13   :  { %2991 = vmatprep.subr.mxu0 %v8317_v18  ;;  %3062 = vmatprep.subr.mxu1 %v8318_v26  ;;  %v8322_v18 = vld [vmem:[#allocation9_spill] sm:$0xff] }
 0xa14   :  { %v2155_v16 = vadd.f32 %v8322_v18, %v8291_v22  ;;  %v6979_v18 = vld [vmem:[%s7772_s5 + $0x1d8] sm:$0xff] }
 0xab2   :  { %v2707_v23 = vpop.f32.mrf.mxu0  ;;  %v2778_v60 = vpop.f32.mrf.mxu1 }
 0xab3   :  { %v2783_v15 = vadd.f32 %v2707_v23, %v2040_v5  ;;  %v2785_v9 = vadd.f32 %v2778_v60, %v2153_v35  ;;  %v6991_v35 = vld [vmem:[%s7772_s5 + $0x1d0] sm:$0xff] }
 0xab4   :  { %v2709_v34 = vpop.f32.mrf.mxu0  ;;  %v2780_v43 = vpop.f32.mrf.mxu1 }
 0xab5   :  { %v4006_v14 = vmul.f32 -1.442695, %v2783_v15  ;;  %v2784_v21 = vadd.f32 %v2709_v34, %v2042_v6  ;;  %v2786_v26 = vadd.f32 %v2780_v43, %v2155_v16 }
 0xab7   :  { %4256 = vpow2.f32 %v4006_v14  ;;  %v4007_v45 = vmul.f32 -1.442695, %v2784_v21  ;;  %v4008_v3 = vmul.f32 -1.442695, %v2786_v26  ;;  %v6985_v26 = vld [vmem:[%s7772_s5 + $0x1c0] sm:$0xff] }
 0xab9   :  { %4258 = vpow2.f32 %v4007_v45 }
 0xaba   :  { %4260 = vtanh.f32 %v2785_v9  ;;  %v6973_v9 = vld [vmem:[%s7772_s5 + $0x1c8] sm:$0xff] }
 0xabb   :  { %4262 = vpow2.f32 %v4008_v3  ;;  %v6961_v3 = vld [vmem:[%s7772_s5 + $0x1e0] sm:$0xff] }
 0xac4   :  { %v4257_v10 = vpop.eup %4256 }
 0xac5   :  { %v2790_v17 = vadd.f32 1.0, %v4257_v10 }
 0xac6   :  { %v4259_v5 = vpop.eup %4258 }
 0xac7   :  { %4264 = vrcp.f32 %v2790_v17  ;;  %v2796_v34 = vadd.f32 1.0, %v4259_v5  ;;  %v4261_v21 = vpop.eup %4260  ;;  %v6997_v17 = vld [vmem:[%s7772_s5 + $0x1a8] sm:$0xff]  ;;  %v7003_v5 = vld [vmem:[%s7772_s5 + $0x1b8] sm:$0xff] }
 0xac8   :  { %v4263_v14 = vpop.eup %4262 }
 0xac9   :  { %4266 = vrcp.f32 %v2796_v34  ;;  %v2803_v15 = vadd.f32 1.0, %v4263_v14  ;;  %v7009_v34 = vld [vmem:[%s7772_s5 + $0x1a0] sm:$0xff]  ;;  %v7021_v14 = vld [vmem:[%s7772_s5 + $0x188] sm:$0xff] }
 0xacb   :  { %4268 = vrcp.f32 %v2803_v15 }
 0xad4   :  { %v4265_v45 = vpop.eup %4264 }
 0xad5   :  { %v2807_v23 = vmul.f32 %v4265_v45, %v4261_v21  ;;  %v7015_v21 = vld [vmem:[%s7772_s5 + $0x1b0] sm:$0xff]  ;;  %v7027_v45 = vld [vmem:[%s7772_s5 + $0x198] sm:$0xff] }
 0xad6   :  { %v4267_v6 = vpop.eup %4266 }
 0xad7   :  { %v2806_v16 = vmul.f32 %v4267_v6, %v6869_v12  ;;  %v6967_v12 = vld [vmem:[%s7772_s5 + $0x1f0] sm:$0xff] }
 0xad8   :  { %v4269_v10 = vpop.eup %4268 }
 0xad9   :  { %v6951_v43 = vadd.f32 %v2807_v23, %v2806_v16  ;;  %v7033_v23 = vld [vmem:[%s7772_s5 + $0x180] sm:$0xff] }
 0xadb   :  { %4270 = vtanh.f32 %v6951_v43 }
 0xae8   :  { %v4271_v11 = vpop.eup %4270 }
 0xae9   :  { %v6954_v60 = vmul.f32 %v4271_v11, %v4269_v10 }
 0xaeb   :  { %8324 = vst [vmem:[#allocation13_spill] sm:$0xff] %v6954_v60  ;;  %2881 = vmatmul.mubr.f32.vlgmr.msra.gmra.mxu0 %v6954_v60  ;;  %2952 = vmatmul.mubr.f32.vlgmr.msra.gmra.mxu1 %v6954_v60  ;;  %v7383_v60 = vld [vmem:[%s7772_s5 + $0x38] sm:$0xff] }
 0xaec   :  { %2992 = vmatpush1.msra.mxu0 %v6961_v3  ;;  %3063 = vmatpush1.msra.mxu1 %v6967_v12  ;;  %8356 = vst [vmem:[#allocation28_spill] sm:$0xff] %v7383_v60 }
 0xaed   :  { %2993 = vmatprep.subr.mxu0 %v6973_v9  ;;  %3064 = vmatprep.subr.mxu1 %v6979_v18 }
 0xaee   :  { %2994 = vmatpush1.msra.mxu0 %v6985_v26  ;;  %3065 = vmatpush1.msra.mxu1 %v6991_v35 }
 0xaef   :  { %2995 = vmatprep.subr.mxu0 %v6997_v17  ;;  %3066 = vmatprep.subr.mxu1 %v7003_v5 }
 0xaf0   :  { %2996 = vmatpush1.msra.mxu0 %v7009_v34  ;;  %3067 = vmatpush1.msra.mxu1 %v7015_v21 }
 0xaf1   :  { %2997 = vmatprep.subr.mxu0 %v7021_v14  ;;  %3068 = vmatprep.subr.mxu1 %v7027_v45 }
 0xaf2   :  { %2998 = vmatpush1.msra.mxu0 %v7033_v23  ;;  %3069 = vmatpush1.msra.mxu1 %v6338_v50  ;;  %v8325_v50 = vld [vmem:[#allocation6_spill] sm:$0xff] }
 0xaf3   :  { %2999 = vmatprep.subr.mxu0 %v6344_v51  ;;  %3070 = vmatprep.subr.mxu1 %v6350_v52  ;;  %v8326_v51 = vld [vmem:[#allocation11_spill] sm:$0xff]  ;;  %v8327_v52 = vld [vmem:[#allocation53_spill] sm:$0xff] }
 0xaf4   :  { %3000 = vmatpush1.msra.mxu0 %v6356_v53  ;;  %3071 = vmatpush1.msra.mxu1 %v6362_v54  ;;  %v8328_v53 = vld [vmem:[#allocation54_spill] sm:$0xff]  ;;  %v8329_v54 = vld [vmem:[#allocation39_spill] sm:$0xff] }
 0xaf5   :  { %3001 = vmatprep.subr.mxu0 %v6368_v55  ;;  %3072 = vmatprep.subr.mxu1 %v6374_v56  ;;  %v8330_v55 = vld [vmem:[#allocation12_spill] sm:$0xff]  ;;  %v8331_v56 = vld [vmem:[#allocation38_spill] sm:$0xff] }
 0xaf6   :  { %3002 = vmatpush1.msra.mxu0 %v6380_v57  ;;  %3073 = vmatpush1.msra.mxu1 %v6386_v58  ;;  %v8332_v57 = vmov 0.0   ;;  %v8333_v58 = vld [vmem:[#allocation46_spill] sm:$0xff] }
 0xaf7   :  { %3003 = vmatprep.subr.mxu0 %v6392_v59  ;;  %3074 = vmatprep.subr.mxu1 %v6398_v61  ;;  %v7090_v59 = vld [vmem:[%s7772_s5 + $0x1e8] sm:$0xff]  ;;  %v7096_v61 = vld [vmem:[%s7772_s5 + $0x1f8] sm:$0xff] }
 0xaf8   :  { %3004 = vmatpush1.msra.mxu0 %v6404_v62  ;;  %3075 = vmatpush1.msra.mxu1 %v6410_v63  ;;  %8334 = vst [vmem:[#allocation29_spill] sm:$0xff] %v7090_v59  ;;  %8335 = vst [vmem:[#allocation30_spill] sm:$0xff] %v7096_v61  ;;  %v8336_v62 = vld [vmem:[#allocation27_spill] sm:$0xff]  ;;  %v8337_v63 = vld [vmem:[#allocation25_spill] sm:$0xff] }
 0xaf9   :  { %3005 = vmatprep.subr.mxu0 %v6416_v0  ;;  %3076 = vmatprep.subr.mxu1 %v6422_v2  ;;  %v2046_v0 = vadd.f32 %v8337_v63, %v8336_v62  ;;  %v7185_v63 = vld [vmem:[%s7772_s5 + $0x128] sm:$0xff] }
 0xafa   :  { %3006 = vmatpush1.msra.mxu0 %v6428_v39  ;;  %3077 = vmatpush1.msra.mxu1 %v6434_v28  ;;  %v8338_v39 = vld [vmem:[#allocation15_spill] sm:$0xff] }
 0xafb   :  { %3007 = vmatprep.subr.mxu0 %v6440_v44  ;;  %3078 = vmatprep.subr.mxu1 %v6446_v32  ;;  %v2048_v28 = vadd.f32 %v8338_v39, %v6767_v20  ;;  %v7203_v39 = vld [vmem:[%s7772_s5 + $0x130] sm:$0xff] }
 0xafc   :  { %3008 = vmatpush1.msra.mxu0 %v6452_v33  ;;  %3079 = vmatpush1.msra.mxu1 %v6458_v4 }
 0xafd   :  { %3009 = vmatprep.subr.mxu0 %v6464_v38  ;;  %3080 = vmatprep.subr.mxu1 %v6470_v42 }
 0xafe   :  { %3010 = vmatpush1.msra.mxu0 %v6476_v13  ;;  %3081 = vmatpush1.msra.mxu1 %v6482_v30  ;;  %v8339_v30 = vld [vmem:[#allocation10_spill] sm:$0xff] }
 0xaff   :  { %3011 = vmatprep.subr.mxu0 %v6488_v1  ;;  %3082 = vmatprep.subr.mxu1 %v6494_v8  ;;  %v2161_v1 = vadd.f32 %v8339_v30, %v8291_v22  ;;  %v7257_v30 = vld [vmem:[%s7772_s5 + $0xc8] sm:$0xff] }
 0xb00   :  { %3012 = vmatpush1.msra.mxu0 %v6500_v36  ;;  %3083 = vmatpush1.msra.mxu1 %v8295_v29  ;;  %v8340_v36 = vld [vmem:[#allocation20_spill] sm:$0xff] }
 0xb01   :  { %3013 = vmatprep.subr.mxu0 %v8296_v7  ;;  %3084 = vmatprep.subr.mxu1 %v8297_v37  ;;  %v2159_v29 = vadd.f32 %v8340_v36, %v6784_v19  ;;  %v7275_v36 = vld [vmem:[%s7772_s5 + $0xd0] sm:$0xff] }
 0xb02   :  { %3014 = vmatpush1.msra.mxu0 %v8298_v27  ;;  %3085 = vmatpush1.msra.mxu1 %v8299_v41 }
 0xb03   :  { %3015 = vmatprep.subr.mxu0 %v8300_v24  ;;  %3086 = vmatprep.subr.mxu1 %v8301_v31 }
 0xb04   :  { %3016 = vmatpush1.msra.mxu0 %v8302_v25  ;;  %3087 = vmatpush1.msra.mxu1 %v8303_v40 }
 0xb05   :  { %3017 = vmatprep.subr.mxu0 %v8304_v46  ;;  %3088 = vmatprep.subr.mxu1 %v8305_v47 }
 0xb06   :  { %3018 = vmatpush1.msra.mxu0 %v8306_v48  ;;  %3089 = vmatpush1.msra.mxu1 %v8307_v49 }
 0xb07   :  { %3019 = vmatprep.subr.mxu0 %v8325_v50  ;;  %3090 = vmatprep.subr.mxu1 %v8326_v51  ;;  %v7137_v50 = vld [vmem:[%s7772_s5 + $0x168] sm:$0xff]  ;;  %v7143_v51 = vld [vmem:[%s7772_s5 + $0x178] sm:$0xff] }
 0xb08   :  { %3020 = vmatpush1.msra.mxu0 %v8327_v52  ;;  %3091 = vmatpush1.msra.mxu1 %v8328_v53  ;;  %v7149_v52 = vld [vmem:[%s7772_s5 + $0x160] sm:$0xff]  ;;  %v7155_v53 = vld [vmem:[%s7772_s5 + $0x170] sm:$0xff] }
 0xb09   :  { %3021 = vmatprep.subr.mxu0 %v8329_v54  ;;  %3092 = vmatprep.subr.mxu1 %v8330_v55  ;;  %v7161_v54 = vld [vmem:[%s7772_s5 + $0x148] sm:$0xff]  ;;  %v7167_v55 = vld [vmem:[%s7772_s5 + $0x158] sm:$0xff] }
 0xb0a   :  { %3022 = vmatpush1.msra.mxu0 %v8331_v56  ;;  %3055 = vmatprep.mubr.f32.mxu0 %v8332_v57  ;;  %v7173_v56 = vld [vmem:[%s7772_s5 + $0x140] sm:$0xff] }
 0xb0b   :  { %3093 = vmatpush1.msra.mxu1 %v8333_v58  ;;  %3126 = vmatprep.mubr.f32.mxu1 %v8332_v57  ;;  %v7179_v58 = vld [vmem:[%s7772_s5 + $0x150] sm:$0xff] }
 0xb0c   :  { %3166 = vmatprep.subr.mxu0 %v7090_v59  ;;  %3237 = vmatprep.subr.mxu1 %v7096_v61 }
 0xbab   :  { %v2882_v2 = vpop.f32.mrf.mxu0  ;;  %v2953_v38 = vpop.f32.mrf.mxu1 }
 0xbac   :  { %v2958_v44 = vadd.f32 %v2882_v2, %v2046_v0  ;;  %v2960_v7 = vadd.f32 %v2953_v38, %v2159_v29  ;;  %v7191_v0 = vld [vmem:[%s7772_s5 + $0x138] sm:$0xff]  ;;  %v7197_v2 = vld [vmem:[%s7772_s5 + $0x120] sm:$0xff]  ;;  %v7281_v29 = vld [vmem:[%s7772_s5 + $0xa8] sm:$0xff] }
 0xbad   :  { %v2884_v32 = vpop.f32.mrf.mxu0  ;;  %v2955_v13 = vpop.f32.mrf.mxu1  ;;  %v7239_v38 = vld [vmem:[%s7772_s5 + $0xf8] sm:$0xff] }
 0xbae   :  { %v4009_v33 = vmul.f32 -1.442695, %v2958_v44  ;;  %v2959_v4 = vadd.f32 %v2884_v32, %v2048_v28  ;;  %v2961_v8 = vadd.f32 %v2955_v13, %v2161_v1  ;;  %v7209_v28 = vld [vmem:[%s7772_s5 + $0x108] sm:$0xff]  ;;  %v7215_v44 = vld [vmem:[%s7772_s5 + $0x118] sm:$0xff]  ;;  %v7221_v32 = vld [vmem:[%s7772_s5 + $0x100] sm:$0xff] }
 0xbaf   :  { %v7251_v13 = vld [vmem:[%s7772_s5 + $0xf0] sm:$0xff]  ;;  %v7263_v1 = vld [vmem:[%s7772_s5 + $0xd8] sm:$0xff] }
 0xbb0   :  { %4272 = vpow2.f32 %v4009_v33  ;;  %v4010_v42 = vmul.f32 -1.442695, %v2959_v4  ;;  %v4011_v37 = vmul.f32 -1.442695, %v2961_v8  ;;  %v7227_v33 = vld [vmem:[%s7772_s5 + $0x110] sm:$0xff]  ;;  %v7233_v4 = vld [vmem:[%s7772_s5 + $0xe8] sm:$0xff] }
 0xbb1   :  { %v7269_v8 = vld [vmem:[%s7772_s5 + $0xc0] sm:$0xff] }
 0xbb2   :  { %4274 = vpow2.f32 %v4010_v42  ;;  %v7245_v42 = vld [vmem:[%s7772_s5 + $0xe0] sm:$0xff] }
 0xbb3   :  { %4276 = vtanh.f32 %v2960_v7  ;;  %v7287_v7 = vld [vmem:[%s7772_s5 + $0xb8] sm:$0xff] }
 0xbb4   :  { %4278 = vpow2.f32 %v4011_v37  ;;  %v7293_v37 = vld [vmem:[%s7772_s5 + $0xa0] sm:$0xff] }
 0xbbd   :  { %v4273_v27 = vpop.eup %4272 }
 0xbbe   :  { %v2965_v41 = vadd.f32 1.0, %v4273_v27  ;;  %v7299_v27 = vld [vmem:[%s7772_s5 + $0xb0] sm:$0xff] }
 0xbbf   :  { %v4275_v24 = vpop.eup %4274  ;;  %8342 = vst [vmem:[#allocation18_spill] sm:$0xff] %v7299_v27 }
 0xbc0   :  { %4280 = vrcp.f32 %v2965_v41  ;;  %v2971_v31 = vadd.f32 1.0, %v4275_v24  ;;  %v4277_v25 = vpop.eup %4276  ;;  %v7305_v41 = vld [vmem:[%s7772_s5 + $0x88] sm:$0xff]  ;;  %v7311_v24 = vld [vmem:[%s7772_s5 + $0x98] sm:$0xff] }
 0xbc1   :  { %v4279_v40 = vpop.eup %4278  ;;  %8343 = vst [vmem:[#allocation47_spill] sm:$0xff] %v7305_v41  ;;  %8344 = vst [vmem:[#allocation48_spill] sm:$0xff] %v7311_v24 }
 0xbc2   :  { %4282 = vrcp.f32 %v2971_v31  ;;  %v2978_v49 = vadd.f32 1.0, %v4279_v40  ;;  %v7317_v31 = vld [vmem:[%s7772_s5 + $0x80] sm:$0xff]  ;;  %v7329_v40 = vld [vmem:[%s7772_s5 + $0x68] sm:$0xff] }
 0xbc3   :  { %8345 = vst [vmem:[#allocation33_spill] sm:$0xff] %v7317_v31  ;;  %8347 = vst [vmem:[#allocation49_spill] sm:$0xff] %v7329_v40 }
 0xbc4   :  { %4284 = vrcp.f32 %v2978_v49  ;;  %v7353_v49 = vld [vmem:[%s7772_s5 + $0x48] sm:$0xff] }
 0xbc5   :  { %8351 = vst [vmem:[#allocation51_spill] sm:$0xff] %v7353_v49 }
 0xbcd   :  { %v4281_v46 = vpop.eup %4280 }
 0xbce   :  { %v2982_v47 = vmul.f32 %v4281_v46, %v4277_v25  ;;  %v7323_v25 = vld [vmem:[%s7772_s5 + $0x90] sm:$0xff]  ;;  %v7335_v46 = vld [vmem:[%s7772_s5 + $0x78] sm:$0xff] }
 0xbcf   :  { %v4283_v48 = vpop.eup %4282  ;;  %8346 = vst [vmem:[#allocation32_spill] sm:$0xff] %v7323_v25  ;;  %8348 = vst [vmem:[#allocation50_spill] sm:$0xff] %v7335_v46 }
 0xbd0   :  { %v2981_v6 = vmul.f32 %v4283_v48, %v6951_v43  ;;  %v7131_v43 = vld [vmem:[%s7772_s5 + $0x190] sm:$0xff] }
 0xbd1   :  { %v4285_v16 = vpop.eup %4284  ;;  %v7347_v48 = vld [vmem:[%s7772_s5 + $0x70] sm:$0xff] }
 0xbd2   :  { %v7108_v15 = vadd.f32 %v2982_v47, %v2981_v6  ;;  %v7341_v47 = vld [vmem:[%s7772_s5 + $0x60] sm:$0xff]  ;;  %8350 = vst [vmem:[#allocation34_spill] sm:$0xff] %v7347_v48  ;;  %v7359_v6 = vld [vmem:[%s7772_s5 + $0x58] sm:$0xff] }
 0xbd3   :  { %8349 = vst [vmem:[#allocation35_spill] sm:$0xff] %v7341_v47  ;;  %8352 = vst [vmem:[#allocation52_spill] sm:$0xff] %v7359_v6 }
 0xbd4   :  { %4286 = vtanh.f32 %v7108_v15 }
 0xbe1   :  { %v4287_v10 = vpop.eup %4286 }
 0xbe2   :  { %v7111_v11 = vmul.f32 %v4287_v10, %v4285_v16  ;;  %v7365_v16 = vld [vmem:[%s7772_s5 + $0x40] sm:$0xff]  ;;  %v7371_v10 = vld [vmem:[%s7772_s5 + $0x50] sm:$0xff] }
 0xbe3   :  { %8353 = vst [vmem:[#allocation37_spill] sm:$0xff] %v7365_v16  ;;  %8354 = vst [vmem:[#allocation36_spill] sm:$0xff] %v7371_v10 }
 0xbe4   :  { %8341 = vst [vmem:[#allocation31_spill] sm:$0xff] %v7111_v11  ;;  %3056 = vmatmul.mubr.f32.vlgmr.msra.gmra.mxu0 %v7111_v11  ;;  %3127 = vmatmul.mubr.f32.vlgmr.msra.gmra.mxu1 %v7111_v11  ;;  %v7377_v11 = vld [vmem:[%s7772_s5 + $0x28] sm:$0xff] }
 0xbe5   :  { %3167 = vmatpush1.msra.mxu0 %v6961_v3  ;;  %3238 = vmatpush1.msra.mxu1 %v6967_v12  ;;  %8355 = vst [vmem:[#allocation17_spill] sm:$0xff] %v7377_v11 }
 0xbe6   :  { %3168 = vmatprep.subr.mxu0 %v6973_v9  ;;  %3239 = vmatprep.subr.mxu1 %v6979_v18 }
 0xbe7   :  { %3169 = vmatpush1.msra.mxu0 %v6985_v26  ;;  %3240 = vmatpush1.msra.mxu1 %v6991_v35 }
 0xbe8   :  { %3170 = vmatprep.subr.mxu0 %v6997_v17  ;;  %3241 = vmatprep.subr.mxu1 %v7003_v5 }
 0xbe9   :  { %3171 = vmatpush1.msra.mxu0 %v7009_v34  ;;  %3242 = vmatpush1.msra.mxu1 %v7015_v21 }
 0xbea   :  { %3172 = vmatprep.subr.mxu0 %v7021_v14  ;;  %3243 = vmatprep.subr.mxu1 %v7027_v45 }
 0xbeb   :  { %3173 = vmatpush1.msra.mxu0 %v7033_v23  ;;  %3244 = vmatpush1.msra.mxu1 %v7131_v43 }
 0xbec   :  { %3174 = vmatprep.subr.mxu0 %v7137_v50  ;;  %3245 = vmatprep.subr.mxu1 %v7143_v51 }
 0xbed   :  { %3175 = vmatpush1.msra.mxu0 %v7149_v52  ;;  %3246 = vmatpush1.msra.mxu1 %v7155_v53 }
 0xbee   :  { %3176 = vmatprep.subr.mxu0 %v7161_v54  ;;  %3247 = vmatprep.subr.mxu1 %v7167_v55 }
 0xbef   :  { %3177 = vmatpush1.msra.mxu0 %v7173_v56  ;;  %3248 = vmatpush1.msra.mxu1 %v7179_v58 }
 0xbf0   :  { %3178 = vmatprep.subr.mxu0 %v7185_v63  ;;  %3249 = vmatprep.subr.mxu1 %v7191_v0 }
 0xbf1   :  { %3179 = vmatpush1.msra.mxu0 %v7197_v2  ;;  %3250 = vmatpush1.msra.mxu1 %v7203_v39 }
 0xbf2   :  { %3180 = vmatprep.subr.mxu0 %v7209_v28  ;;  %3251 = vmatprep.subr.mxu1 %v7215_v44 }
 0xbf3   :  { %3181 = vmatpush1.msra.mxu0 %v7221_v32  ;;  %3252 = vmatpush1.msra.mxu1 %v7227_v33 }
 0xbf4   :  { %3182 = vmatprep.subr.mxu0 %v7233_v4  ;;  %3253 = vmatprep.subr.mxu1 %v7239_v38 }
 0xbf5   :  { %3183 = vmatpush1.msra.mxu0 %v7245_v42  ;;  %3254 = vmatpush1.msra.mxu1 %v7251_v13 }
 0xbf6   :  { %3184 = vmatprep.subr.mxu0 %v7257_v30  ;;  %3255 = vmatprep.subr.mxu1 %v7263_v1 }
 0xbf7   :  { %3185 = vmatpush1.msra.mxu0 %v7269_v8  ;;  %3256 = vmatpush1.msra.mxu1 %v7275_v36 }
 0xbf8   :  { %3186 = vmatprep.subr.mxu0 %v7281_v29  ;;  %3257 = vmatprep.subr.mxu1 %v7287_v7 }
 0xbf9   :  { %3187 = vmatpush1.msra.mxu0 %v7293_v37  ;;  %3258 = vmatpush1.msra.mxu1 %v7299_v27 }
 0xbfa   :  { %3188 = vmatprep.subr.mxu0 %v7305_v41  ;;  %3259 = vmatprep.subr.mxu1 %v7311_v24  ;;  %v8366_v24 = vld [vmem:[#allocation21_spill] sm:$0xff] }
 0xbfb   :  { %3189 = vmatpush1.msra.mxu0 %v7317_v31  ;;  %3260 = vmatpush1.msra.mxu1 %v7323_v25 }
 0xbfc   :  { %3190 = vmatprep.subr.mxu0 %v7329_v40  ;;  %3261 = vmatprep.subr.mxu1 %v7335_v46 }
 0xbfd   :  { %3191 = vmatpush1.msra.mxu0 %v7341_v47  ;;  %3262 = vmatpush1.msra.mxu1 %v7347_v48 }
 0xbfe   :  { %3192 = vmatprep.subr.mxu0 %v7353_v49  ;;  %3263 = vmatprep.subr.mxu1 %v7359_v6 }
 0xbff   :  { %3193 = vmatpush1.msra.mxu0 %v7365_v16  ;;  %3264 = vmatpush1.msra.mxu1 %v7371_v10  ;;  %v7389_v16 = vld [vmem:[%s7772_s5 + $0x20] sm:$0xff]  ;;  %v7395_v10 = vld [vmem:[%s7772_s5 + $0x30] sm:$0xff] }
 0xc00   :  { %3194 = vmatprep.subr.mxu0 %v7377_v11  ;;  %3265 = vmatprep.subr.mxu1 %v7383_v60  ;;  %8357 = vst [vmem:[#allocation24_spill] sm:$0xff] %v7389_v16  ;;  %8358 = vst [vmem:[#allocation14_spill] sm:$0xff] %v7395_v10  ;;  %v7401_v11 = vld [vmem:[%s7772_s5 + $0x8] sm:$0xff]  ;;  %v7407_v60 = vld [vmem:[%s7772_s5 + $0x18] sm:$0xff] }
 0xc01   :  { %3195 = vmatpush1.msra.mxu0 %v7389_v16  ;;  %3266 = vmatpush1.msra.mxu1 %v7395_v10  ;;  %8359 = vst [vmem:[#allocation9_spill] sm:$0xff] %v7401_v11  ;;  %8360 = vst [vmem:[#allocation19_spill] sm:$0xff] %v7407_v60  ;;  %v7413_v16 = vld [vmem:[%s7772_s5] sm:$0xff] }
 0xc02   :  { %3196 = vmatprep.subr.mxu0 %v7401_v11  ;;  %3267 = vmatprep.subr.mxu1 %v7407_v60  ;;  %8361 = vst [vmem:[#allocation6_spill] sm:$0xff] %v7413_v16  ;;  %v7420_v11 = vld [vmem:[%s7772_s5 + $0x10] sm:$0xff]  ;;  %v8363_v60 = vld [vmem:[#allocation26_spill] sm:$0xff] }
 0xc03   :  { %3197 = vmatpush1.msra.mxu0 %v7413_v16  ;;  %3230 = vmatprep.mubr.f32.mxu0 %v8332_v57  ;;  %8362 = vst [vmem:[#allocation11_spill] sm:$0xff] %v7420_v11  ;;  %v2052_v10 = vadd.f32 %v8363_v60, %v8336_v62  ;;  %v8364_v16 = vld [vmem:[#allocation16_spill] sm:$0xff]  ;;  %v2165_v60 = vadd.f32 %v8366_v24, %v6784_v19 }
 0xc04   :  { %3268 = vmatpush1.msra.mxu1 %v7420_v11  ;;  %3301 = vmatprep.mubr.f32.mxu1 %v8332_v57  ;;  %v2054_v49 = vadd.f32 %v8364_v16, %v6767_v20  ;;  %v8370_v24 = vld [vmem:[#allocation48_spill] sm:$0xff] }
 0xc05   :  { %3341 = vmatprep.subr.mxu0 %v7090_v59  ;;  %3412 = vmatprep.subr.mxu1 %v7096_v61  ;;  %v8365_v59 = vld [vmem:[#allocation55_spill] sm:$0xff] }
 0xc06   :  { %v2167_v31 = vadd.f32 %v8365_v59, %v8291_v22 }
 0xca4   :  { %v3057_v6 = vpop.f32.mrf.mxu0  ;;  %v3128_v25 = vpop.f32.mrf.mxu1 }
 0xca5   :  { %v3133_v48 = vadd.f32 %v3057_v6, %v2052_v10  ;;  %v3135_v62 = vadd.f32 %v3128_v25, %v2165_v60  ;;  %v8371_v25 = vld [vmem:[#allocation33_spill] sm:$0xff]  ;;  %v8372_v10 = vld [vmem:[#allocation32_spill] sm:$0xff] }
 0xca6   :  { %v3059_v47 = vpop.f32.mrf.mxu0  ;;  %v3130_v57 = vpop.f32.mrf.mxu1  ;;  %v8373_v60 = vld [vmem:[#allocation49_spill] sm:$0xff] }
 0xca7   :  { %v4012_v46 = vmul.f32 -1.442695, %v3133_v48  ;;  %v3134_v40 = vadd.f32 %v3059_v47, %v2054_v49  ;;  %v3136_v61 = vadd.f32 %v3130_v57, %v2167_v31 }
 0xca9   :  { %4288 = vpow2.f32 %v4012_v46  ;;  %v4013_v11 = vmul.f32 -1.442695, %v3134_v40  ;;  %v4014_v41 = vmul.f32 -1.442695, %v3136_v61 }
 0xcab   :  { %4290 = vpow2.f32 %v4013_v11 }
 0xcac   :  { %4292 = vtanh.f32 %v3135_v62 }
 0xcad   :  { %4294 = vpow2.f32 %v4014_v41  ;;  %v8369_v41 = vld [vmem:[#allocation47_spill] sm:$0xff] }
 0xcb6   :  { %v4289_v27 = vpop.eup %4288 }
 0xcb7   :  { %v3140_v16 = vadd.f32 1.0, %v4289_v27 }
 0xcb8   :  { %v4291_v6 = vpop.eup %4290 }
 0xcb9   :  { %4296 = vrcp.f32 %v3140_v16  ;;  %v3146_v46 = vadd.f32 1.0, %v4291_v6  ;;  %v4293_v40 = vpop.eup %4292  ;;  %v8374_v16 = vld [vmem:[#allocation50_spill] sm:$0xff]  ;;  %v8375_v6 = vld [vmem:[#allocation35_spill] sm:$0xff] }
 0xcba   :  { %v4295_v11 = vpop.eup %4294 }
 0xcbb   :  { %4298 = vrcp.f32 %v3146_v46  ;;  %v3153_v59 = vadd.f32 1.0, %v4295_v11  ;;  %v8376_v46 = vld [vmem:[#allocation34_spill] sm:$0xff]  ;;  %v8378_v11 = vld [vmem:[#allocation52_spill] sm:$0xff] }
 0xcbd   :  { %4300 = vrcp.f32 %v3153_v59  ;;  %v8382_v59 = vld [vmem:[#allocation28_spill] sm:$0xff] }
 0xcc6   :  { %v4297_v47 = vpop.eup %4296 }
 0xcc7   :  { %v3157_v48 = vmul.f32 %v4297_v47, %v4293_v40  ;;  %v8377_v40 = vld [vmem:[#allocation51_spill] sm:$0xff]  ;;  %v8379_v47 = vld [vmem:[#allocation37_spill] sm:$0xff] }
 0xcc8   :  { %v4299_v49 = vpop.eup %4298 }
 0xcc9   :  { %v3156_v57 = vmul.f32 %v4299_v49, %v7108_v15  ;;  %v8368_v15 = vld [vmem:[#allocation18_spill] sm:$0xff]  ;;  %v8381_v49 = vld [vmem:[#allocation17_spill] sm:$0xff] }
 0xcca   :  { %v4301_v61 = vpop.eup %4300 }
 0xccb   :  { %v7435_v31 = vadd.f32 %v3157_v48, %v3156_v57  ;;  %v8380_v48 = vld [vmem:[#allocation36_spill] sm:$0xff] }
 0xccc   :  { %v8383_v57 = vld [vmem:[#allocation24_spill] sm:$0xff] }
 0xccd   :  { %4302 = vtanh.f32 %v7435_v31 }
 0xcda   :  { %v4303_v62 = vpop.eup %4302 }
 0xcdb   :  { %v7438_v27 = vmul.f32 %v4303_v62, %v4301_v61  ;;  %v8384_v61 = vld [vmem:[#allocation14_spill] sm:$0xff]  ;;  %v8385_v62 = vld [vmem:[#allocation9_spill] sm:$0xff] }
 0xcdd   :  { %8367 = vst [vmem:[#allocation53_spill] sm:$0xff] %v7438_v27  ;;  %3231 = vmatmul.mubr.f32.vlgmr.msra.gmra.mxu0 %v7438_v27  ;;  %3302 = vmatmul.mubr.f32.vlgmr.msra.gmra.mxu1 %v7438_v27  ;;  %v8386_v27 = vld [vmem:[#allocation19_spill] sm:$0xff] }
 0xcde   :  { %3342 = vmatpush1.msra.mxu0 %v6961_v3  ;;  %3413 = vmatpush1.msra.mxu1 %v6967_v12 }
 0xcdf   :  { %3343 = vmatprep.subr.mxu0 %v6973_v9  ;;  %3414 = vmatprep.subr.mxu1 %v6979_v18 }
 0xce0   :  { %3344 = vmatpush1.msra.mxu0 %v6985_v26  ;;  %3415 = vmatpush1.msra.mxu1 %v6991_v35 }
 0xce1   :  { %3345 = vmatprep.subr.mxu0 %v6997_v17  ;;  %3416 = vmatprep.subr.mxu1 %v7003_v5 }
 0xce2   :  { %3346 = vmatpush1.msra.mxu0 %v7009_v34  ;;  %3417 = vmatpush1.msra.mxu1 %v7015_v21 }
 0xce3   :  { %3347 = vmatprep.subr.mxu0 %v7021_v14  ;;  %3418 = vmatprep.subr.mxu1 %v7027_v45 }
 0xce4   :  { %3348 = vmatpush1.msra.mxu0 %v7033_v23  ;;  %3419 = vmatpush1.msra.mxu1 %v7131_v43 }
 0xce5   :  { %3349 = vmatprep.subr.mxu0 %v7137_v50  ;;  %3420 = vmatprep.subr.mxu1 %v7143_v51 }
 0xce6   :  { %3350 = vmatpush1.msra.mxu0 %v7149_v52  ;;  %3421 = vmatpush1.msra.mxu1 %v7155_v53 }
 0xce7   :  { %3351 = vmatprep.subr.mxu0 %v7161_v54  ;;  %3422 = vmatprep.subr.mxu1 %v7167_v55 }
 0xce8   :  { %3352 = vmatpush1.msra.mxu0 %v7173_v56  ;;  %3423 = vmatpush1.msra.mxu1 %v7179_v58 }
 0xce9   :  { %3353 = vmatprep.subr.mxu0 %v7185_v63  ;;  %3424 = vmatprep.subr.mxu1 %v7191_v0 }
 0xcea   :  { %3354 = vmatpush1.msra.mxu0 %v7197_v2  ;;  %3425 = vmatpush1.msra.mxu1 %v7203_v39 }
 0xceb   :  { %3355 = vmatprep.subr.mxu0 %v7209_v28  ;;  %3426 = vmatprep.subr.mxu1 %v7215_v44 }
 0xcec   :  { %3356 = vmatpush1.msra.mxu0 %v7221_v32  ;;  %3427 = vmatpush1.msra.mxu1 %v7227_v33 }
 0xced   :  { %3357 = vmatprep.subr.mxu0 %v7233_v4  ;;  %3428 = vmatprep.subr.mxu1 %v7239_v38 }
 0xcee   :  { %3358 = vmatpush1.msra.mxu0 %v7245_v42  ;;  %3429 = vmatpush1.msra.mxu1 %v7251_v13 }
 0xcef   :  { %3359 = vmatprep.subr.mxu0 %v7257_v30  ;;  %3430 = vmatprep.subr.mxu1 %v7263_v1 }
 0xcf0   :  { %3360 = vmatpush1.msra.mxu0 %v7269_v8  ;;  %3431 = vmatpush1.msra.mxu1 %v7275_v36 }
 0xcf1   :  { %3361 = vmatprep.subr.mxu0 %v7281_v29  ;;  %3432 = vmatprep.subr.mxu1 %v7287_v7 }
 0xcf2   :  { %3362 = vmatpush1.msra.mxu0 %v7293_v37  ;;  %3433 = vmatpush1.msra.mxu1 %v8368_v15 }
 0xcf3   :  { %3363 = vmatprep.subr.mxu0 %v8369_v41  ;;  %3434 = vmatprep.subr.mxu1 %v8370_v24  ;;  %v8396_v24 = vld [vmem:[#allocation41_spill] sm:$0xff] }
 0xcf4   :  { %3364 = vmatpush1.msra.mxu0 %v8371_v25  ;;  %3435 = vmatpush1.msra.mxu1 %v8372_v10 }
 0xcf5   :  { %3365 = vmatprep.subr.mxu0 %v8373_v60  ;;  %3436 = vmatprep.subr.mxu1 %v8374_v16 }
 0xcf6   :  { %3366 = vmatpush1.msra.mxu0 %v8375_v6  ;;  %3437 = vmatpush1.msra.mxu1 %v8376_v46  ;;  %v8387_v46 = vld [vmem:[#allocation6_spill] sm:$0xff] }
 0xcf7   :  { %3367 = vmatprep.subr.mxu0 %v8377_v40  ;;  %3438 = vmatprep.subr.mxu1 %v8378_v11  ;;  %v8388_v40 = vmov 0.0   ;;  %v8389_v11 = vld [vmem:[#allocation11_spill] sm:$0xff] }
 0xcf8   :  { %3368 = vmatpush1.msra.mxu0 %v8379_v47  ;;  %3439 = vmatpush1.msra.mxu1 %v8380_v48  ;;  %v8390_v48 = vld [vmem:[#allocation29_spill] sm:$0xff] }
 0xcf9   :  { %3369 = vmatprep.subr.mxu0 %v8381_v49  ;;  %3440 = vmatprep.subr.mxu1 %v8382_v59  ;;  %v8391_v49 = vld [vmem:[#allocation30_spill] sm:$0xff]  ;;  %v8392_v59 = vld [vmem:[#allocation27_spill] sm:$0xff] }
 0xcfa   :  { %3370 = vmatpush1.msra.mxu0 %v8383_v57  ;;  %3441 = vmatpush1.msra.mxu1 %v8384_v61  ;;  %v8393_v57 = vld [vmem:[#allocation56_spill] sm:$0xff] }
 0xcfb   :  { %3371 = vmatprep.subr.mxu0 %v8385_v62  ;;  %3442 = vmatprep.subr.mxu1 %v8386_v27  ;;  %v2058_v47 = vadd.f32 %v8393_v57, %v8392_v59  ;;  %v8394_v62 = vld [vmem:[#allocation40_spill] sm:$0xff]  ;;  %v2171_v57 = vadd.f32 %v8396_v24, %v6784_v19 }
 0xcfc   :  { %3372 = vmatpush1.msra.mxu0 %v8387_v46  ;;  %3405 = vmatprep.mubr.f32.mxu0 %v8388_v40  ;;  %v2060_v6 = vadd.f32 %v8394_v62, %v6767_v20 }
 0xcfd   :  { %3443 = vmatpush1.msra.mxu1 %v8389_v11  ;;  %3476 = vmatprep.mubr.f32.mxu1 %v8388_v40 }
 0xcfe   :  { %3516 = vmatprep.subr.mxu0 %v8390_v48  ;;  %3587 = vmatprep.subr.mxu1 %v8391_v49  ;;  %v8395_v48 = vld [vmem:[#allocation58_spill] sm:$0xff] }
 0xcff   :  { %v2173_v25 = vadd.f32 %v8395_v48, %v8291_v22 }
 0xd9d   :  { %v3232_v61 = vpop.f32.mrf.mxu0  ;;  %v3303_v10 = vpop.f32.mrf.mxu1 }
 0xd9e   :  { %v3308_v27 = vadd.f32 %v3232_v61, %v2058_v47  ;;  %v3310_v59 = vadd.f32 %v3303_v10, %v2171_v57 }
 0xd9f   :  { %v3234_v16 = vpop.f32.mrf.mxu0  ;;  %v3305_v40 = vpop.f32.mrf.mxu1 }
 0xda0   :  { %v4015_v46 = vmul.f32 -1.442695, %v3308_v27  ;;  %v3309_v60 = vadd.f32 %v3234_v16, %v2060_v6  ;;  %v3311_v49 = vadd.f32 %v3305_v40, %v2173_v25 }
 0xda2   :  { %4304 = vpow2.f32 %v4015_v46  ;;  %v4016_v11 = vmul.f32 -1.442695, %v3309_v60  ;;  %v4017_v41 = vmul.f32 -1.442695, %v3311_v49 }
 0xda4   :  { %4306 = vpow2.f32 %v4016_v11 }
 0xda5   :  { %4308 = vtanh.f32 %v3310_v59 }
 0xda6   :  { %4310 = vpow2.f32 %v4017_v41  ;;  %v8424_v41 = vld [vmem:[#allocation42_spill] sm:$0xff] }
 0xda7   :  { %v2177_v59 = vadd.f32 %v8424_v41, %v6784_v19 }
 0xdaf   :  { %v4305_v15 = vpop.eup %4304 }
 0xdb0   :  { %v3315_v62 = vadd.f32 1.0, %v4305_v15 }
 0xdb1   :  { %v4307_v47 = vpop.eup %4306 }
 0xdb2   :  { %4312 = vrcp.f32 %v3315_v62  ;;  %v3321_v27 = vadd.f32 1.0, %v4307_v47  ;;  %v4309_v60 = vpop.eup %4308 }
 0xdb3   :  { %v4311_v16 = vpop.eup %4310 }
 0xdb4   :  { %4314 = vrcp.f32 %v3321_v27  ;;  %v3328_v61 = vadd.f32 1.0, %v4311_v16 }
 0xdb6   :  { %4316 = vrcp.f32 %v3328_v61  ;;  %v8425_v61 = vld [vmem:[#allocation23_spill] sm:$0xff] }
 0xdb7   :  { %vm3698_vm6 = vcmp.gt.f32.partialorder %v8425_v61, 20.0 }
 0xdbf   :  { %v4313_v6 = vpop.eup %4312 }
 0xdc0   :  { %v3332_v46 = vmul.f32 %v4313_v6, %v4309_v60 }
 0xdc1   :  { %v4315_v11 = vpop.eup %4314 }
 0xdc2   :  { %v3331_v25 = vmul.f32 %v4315_v11, %v7435_v31 }
 0xdc3   :  { %v4317_v15 = vpop.eup %4316 }
 0xdc4   :  { %v7517_v40 = vadd.f32 %v3332_v46, %v3331_v25  ;;  %v3706_v25 = vmin.f32 %v8425_v61, 20.0 }
 0xdc6   :  { %4318 = vtanh.f32 %v7517_v40 }
 0xdd3   :  { %v4319_v24 = vpop.eup %4318 }
 0xdd4   :  { %v7520_v10 = vmul.f32 %v4319_v24, %v4317_v15 }
 0xdd6   :  { %3406 = vmatmul.mubr.f32.vlgmr.msra.gmra.mxu0 %v7520_v10  ;;  %3477 = vmatmul.mubr.f32.vlgmr.msra.gmra.mxu1 %v7520_v10  ;;  %vm3702_vm14 = vcmp.gt.f32.partialorder %v7520_v10, 20.0 }
 0xdd7   :  { %3517 = vmatpush1.msra.mxu0 %v6961_v3  ;;  %3588 = vmatpush1.msra.mxu1 %v6967_v12  ;;  %v8397_v3 = vld [vmem:[#allocation18_spill] sm:$0xff]  ;;  %v8398_v12 = vld [vmem:[#allocation47_spill] sm:$0xff] }
 0xdd8   :  { %3518 = vmatprep.subr.mxu0 %v6973_v9  ;;  %3589 = vmatprep.subr.mxu1 %v6979_v18  ;;  %v8399_v9 = vld [vmem:[#allocation48_spill] sm:$0xff]  ;;  %v8400_v18 = vld [vmem:[#allocation33_spill] sm:$0xff] }
 0xdd9   :  { %3519 = vmatpush1.msra.mxu0 %v6985_v26  ;;  %3590 = vmatpush1.msra.mxu1 %v6991_v35  ;;  %v8401_v26 = vld [vmem:[#allocation32_spill] sm:$0xff]  ;;  %v8402_v35 = vld [vmem:[#allocation49_spill] sm:$0xff] }
 0xdda   :  { %3520 = vmatprep.subr.mxu0 %v6997_v17  ;;  %3591 = vmatprep.subr.mxu1 %v7003_v5  ;;  %v8403_v17 = vld [vmem:[#allocation50_spill] sm:$0xff]  ;;  %v8404_v5 = vld [vmem:[#allocation35_spill] sm:$0xff] }
 0xddb   :  { %3521 = vmatpush1.msra.mxu0 %v7009_v34  ;;  %3592 = vmatpush1.msra.mxu1 %v7015_v21  ;;  %v8405_v34 = vld [vmem:[#allocation34_spill] sm:$0xff]  ;;  %v8406_v21 = vld [vmem:[#allocation51_spill] sm:$0xff] }
 0xddc   :  { %3522 = vmatprep.subr.mxu0 %v7021_v14  ;;  %3593 = vmatprep.subr.mxu1 %v7027_v45  ;;  %v8407_v14 = vld [vmem:[#allocation52_spill] sm:$0xff]  ;;  %v8408_v45 = vld [vmem:[#allocation37_spill] sm:$0xff] }
 0xddd   :  { %3523 = vmatpush1.msra.mxu0 %v7033_v23  ;;  %3594 = vmatpush1.msra.mxu1 %v7131_v43  ;;  %v8409_v23 = vld [vmem:[#allocation36_spill] sm:$0xff]  ;;  %v8410_v43 = vld [vmem:[#allocation17_spill] sm:$0xff] }
 0xdde   :  { %3524 = vmatprep.subr.mxu0 %v7137_v50  ;;  %3595 = vmatprep.subr.mxu1 %v7143_v51  ;;  %v8411_v50 = vld [vmem:[#allocation28_spill] sm:$0xff] }
 0xddf   :  { %3525 = vmatpush1.msra.mxu0 %v7149_v52  ;;  %3596 = vmatpush1.msra.mxu1 %v7155_v53  ;;  %v8412_v51 = vld [vmem:[#allocation24_spill] sm:$0xff]  ;;  %v8413_v52 = vld [vmem:[#allocation14_spill] sm:$0xff]  ;;  %v8414_v53 = vld [vmem:[#allocation9_spill] sm:$0xff] }
 0xde0   :  { %3526 = vmatprep.subr.mxu0 %v7161_v54  ;;  %3597 = vmatprep.subr.mxu1 %v7167_v55  ;;  %v8415_v54 = vld [vmem:[#allocation19_spill] sm:$0xff]  ;;  %v8416_v55 = vld [vmem:[#allocation6_spill] sm:$0xff] }
 0xde1   :  { %3527 = vmatpush1.msra.mxu0 %v7173_v56  ;;  %3598 = vmatpush1.msra.mxu1 %v7179_v58  ;;  %v8417_v56 = vmov 0.0   ;;  %v8418_v58 = vld [vmem:[#allocation11_spill] sm:$0xff] }
 0xde2   :  { %3528 = vmatprep.subr.mxu0 %v7185_v63  ;;  %3599 = vmatprep.subr.mxu1 %v7191_v0  ;;  %v7591_v63 = vld [vmem:[%s7774_s7 + $0x78] sm:$0xff]  ;;  %v8419_v0 = vld [vmem:[#allocation27_spill] sm:$0xff] }
 0xde3   :  { %3529 = vmatpush1.msra.mxu0 %v7197_v2  ;;  %3600 = vmatpush1.msra.mxu1 %v7203_v39  ;;  %v8420_v2 = vld [vmem:[#allocation8_spill] sm:$0xff] }
 0xde4   :  { %3530 = vmatprep.subr.mxu0 %v7209_v28  ;;  %3601 = vmatprep.subr.mxu1 %v7215_v44  ;;  %v2064_v39 = vadd.f32 %v8420_v2, %v8419_v0  ;;  %v8421_v44 = vld [vmem:[#allocation22_spill] sm:$0xff] }
 0xde5   :  { %3531 = vmatpush1.msra.mxu0 %v7221_v32  ;;  %3602 = vmatpush1.msra.mxu1 %v7227_v33  ;;  %v2066_v32 = vadd.f32 %v8421_v44, %v6767_v20  ;;  %v3823_v44 = vld [vmem:[%s7774_s7 + $0x70] sm:$0xff] }
 0xde6   :  { %3532 = vmatprep.subr.mxu0 %v7233_v4  ;;  %3603 = vmatprep.subr.mxu1 %v7239_v38 }
 0xde7   :  { %3533 = vmatpush1.msra.mxu0 %v7245_v42  ;;  %3604 = vmatpush1.msra.mxu1 %v7251_v13 }
 0xde8   :  { %3534 = vmatprep.subr.mxu0 %v7257_v30  ;;  %3605 = vmatprep.subr.mxu1 %v7263_v1  ;;  %v8422_v1 = vld [vmem:[#allocation59_spill] sm:$0xff] }
 0xde9   :  { %3535 = vmatpush1.msra.mxu0 %v7269_v8  ;;  %3606 = vmatpush1.msra.mxu1 %v7275_v36  ;;  %v3705_v8 = vmin.f32 %v8422_v1, 20.0  ;;  %vm3697_vm3 = vcmp.gt.f32.partialorder %v8422_v1, 20.0 }
 0xdea   :  { %3536 = vmatprep.subr.mxu0 %v7281_v29  ;;  %3607 = vmatprep.subr.mxu1 %v7287_v7  ;;  %v8423_v29 = vld [vmem:[#allocation44_spill] sm:$0xff] }
 0xdeb   :  { %3537 = vmatpush1.msra.mxu0 %v7293_v37  ;;  %3608 = vmatpush1.msra.mxu1 %v8397_v3  ;;  %v2179_v7 = vadd.f32 %v8423_v29, %v8291_v22  ;;  %v3713_v37 = vmul.f32 1.442695, %v3705_v8  ;;  %v8426_v3 = vld [vmem:[#allocation13_spill] sm:$0xff]  ;;  %v3819_v29 = vld [vmem:[%s7774_s7 + $0x50] sm:$0xff] }
 0xdec   :  { %3538 = vmatprep.subr.mxu0 %v8398_v12  ;;  %3609 = vmatprep.subr.mxu1 %v8399_v9  ;;  %v3707_v12 = vmin.f32 %v8426_v3, 20.0  ;;  %vm3699_vm7 = vcmp.gt.f32.partialorder %v8426_v3, 20.0 }
 0xded   :  { %3539 = vmatpush1.msra.mxu0 %v8400_v18  ;;  %3610 = vmatpush1.msra.mxu1 %v8401_v26  ;;  %v3715_v26 = vmul.f32 1.442695, %v3706_v25 }
 0xdee   :  { %3540 = vmatprep.subr.mxu0 %v8402_v35  ;;  %3611 = vmatprep.subr.mxu1 %v8403_v17  ;;  %v3717_v17 = vmul.f32 1.442695, %v3707_v12 }
 0xdef   :  { %3541 = vmatpush1.msra.mxu0 %v8404_v5  ;;  %3612 = vmatpush1.msra.mxu1 %v8405_v34  ;;  %v8427_v5 = vld [vmem:[#allocation31_spill] sm:$0xff] }
 0xdf0   :  { %3542 = vmatprep.subr.mxu0 %v8406_v21  ;;  %3613 = vmatprep.subr.mxu1 %v8407_v14  ;;  %v3708_v34 = vmin.f32 %v8427_v5, 20.0  ;;  %v8428_v21 = vld [vmem:[#allocation53_spill] sm:$0xff]  ;;  %vm3700_vm10 = vcmp.gt.f32.partialorder %v8427_v5, 20.0 }
 0xdf1   :  { %3543 = vmatpush1.msra.mxu0 %v8408_v45  ;;  %3614 = vmatpush1.msra.mxu1 %v8409_v23  ;;  %v3709_v14 = vmin.f32 %v8428_v21, 20.0  ;;  %vm3701_vm11 = vcmp.gt.f32.partialorder %v8428_v21, 20.0 }
 0xdf2   :  { %3544 = vmatprep.subr.mxu0 %v8410_v43  ;;  %3615 = vmatprep.subr.mxu1 %v8411_v50  ;;  %v3719_v23 = vmul.f32 1.442695, %v3708_v34  ;;  %v3710_v43 = vmin.f32 %v7520_v10, 20.0 }
 0xdf3   :  { %3545 = vmatpush1.msra.mxu0 %v8412_v51  ;;  %3616 = vmatpush1.msra.mxu1 %v8413_v52  ;;  %v3721_v50 = vmul.f32 1.442695, %v3709_v14 }
 0xdf4   :  { %3546 = vmatprep.subr.mxu0 %v8414_v53  ;;  %3617 = vmatprep.subr.mxu1 %v8415_v54  ;;  %v3723_v52 = vmul.f32 1.442695, %v3710_v43  ;;  %v3810_v43 = vld [vmem:[%s7774_s7 + $0x8] sm:$0xff] }
 0xdf5   :  { %3547 = vmatpush1.msra.mxu0 %v8416_v55  ;;  %3580 = vmatprep.mubr.f32.mxu0 %v8417_v56 }
 0xdf6   :  { %3618 = vmatpush1.msra.mxu1 %v8418_v58  ;;  %3651 = vmatprep.mubr.f32.mxu1 %v8417_v56 }
 0xdf7   :  { %4049 = vmatprep.subr.mxu0 %v7591_v63 }
 0xe96   :  { %v3407_v28 = vpop.f32.mrf.mxu0  ;;  %v3478_v13 = vpop.f32.mrf.mxu1 }
 0xe97   :  { %v3483_v33 = vadd.f32 %v3407_v28, %v2064_v39  ;;  %v3485_v48 = vadd.f32 %v3478_v13, %v2177_v59  ;;  %v3817_v59 = vld [vmem:[%s7774_s7 + $0x40] sm:$0xff] }
 0xe98   :  { %v3409_v4 = vpop.f32.mrf.mxu0  ;;  %v3480_v36 = vpop.f32.mrf.mxu1 }
 0xe99   :  { %v4018_v38 = vmul.f32 -1.442695, %v3483_v33  ;;  %v3484_v42 = vadd.f32 %v3409_v4, %v2066_v32  ;;  %v3486_v31 = vadd.f32 %v3480_v36, %v2179_v7 }
 0xe9b   :  { %4320 = vpow2.f32 %v4018_v38  ;;  %v4019_v30 = vmul.f32 -1.442695, %v3484_v42  ;;  %v4020_v49 = vmul.f32 -1.442695, %v3486_v31  ;;  %v3822_v38 = vld [vmem:[%s7774_s7 + $0x68] sm:$0xff] }
 0xe9c   :  { %v3818_v31 = vld [vmem:[%s7774_s7 + $0x48] sm:$0xff] }
 0xe9d   :  { %4322 = vpow2.f32 %v4019_v30  ;;  %v3821_v30 = vld [vmem:[%s7774_s7 + $0x60] sm:$0xff] }
 0xe9e   :  { %4324 = vpow2.f32 %v3713_v37 }
 0xe9f   :  { %4326 = vtanh.f32 %v3485_v48 }
 0xea0   :  { %4328 = vpow2.f32 %v4020_v49  ;;  %v3816_v49 = vld [vmem:[%s7774_s7 + $0x38] sm:$0xff] }
 0xea8   :  { %v4321_v57 = vpop.eup %4320 }
 0xea9   :  { %v3490_v62 = vadd.f32 1.0, %v4321_v57  ;;  %v3815_v57 = vld [vmem:[%s7774_s7 + $0x30] sm:$0xff] }
 0xeaa   :  { %v4323_v47 = vpop.eup %4322 }
 0xeab   :  { %4330 = vrcp.f32 %v3490_v62  ;;  %v3496_v27 = vadd.f32 1.0, %v4323_v47  ;;  %v4325_v60 = vpop.eup %4324 }
 0xeac   :  { %v3729_v16 = vadd.f32 1.0, %v4325_v60  ;;  %v4327_v6 = vpop.eup %4326  ;;  %v3732_v45 = vmul.f32 -0.5, %v4325_v60  ;;  %v3735_v53 = vand.u32 2147483647, %v4325_v60 }
 0xead   :  { %4332 = vrcp.f32 %v3496_v27  ;;  %v4329_v46 = vpop.eup %4328  ;;  %v3814_v27 = vld [vmem:[%s7774_s7 + $0x28] sm:$0xff] }
 0xeae   :  { %4334 = vlog2.f32 %v3729_v16  ;;  %v3503_v9 = vadd.f32 1.0, %v4329_v46  ;;  %vm3736_vm2 = vcmp.lt.f32.partialorder %v3735_v53, 0.0004427343  ;;  %v3813_v46 = vld [vmem:[%s7774_s7 + $0x20] sm:$0xff] }
 0xeb0   :  { %4336 = vrcp.f32 %v3503_v9 }
 0xeb8   :  { %v4331_v11 = vpop.eup %4330 }
 0xeb9   :  { %v3507_v15 = vmul.f32 %v4331_v11, %v4327_v6 }
 0xeba   :  { %v4333_v24 = vpop.eup %4332 }
 0xebb   :  { %v3506_v18 = vmul.f32 %v4333_v24, %v7517_v40  ;;  %v4335_v51 = vpop.eup %4334  ;;  %v3733_v40 = vadd.f32 1.0, %v3732_v45 }
 0xebc   :  { %v3731_v54 = vmul.f32 0.6931472, %v4335_v51 }
 0xebd   :  { %v7606_v35 = vadd.f32 %v3507_v15, %v3506_v18  ;;  %v3734_v55 = vmul.f32 %v4325_v60, %v3733_v40  ;;  %v4337_v56 = vpop.eup %4336  ;;  %v3812_v15 = vld [vmem:[%s7774_s7 + $0x18] sm:$0xff] }
 0xebf   :  { %4338 = vtanh.f32 %v7606_v35  ;;  %v3737_v2 = vsel %vm3736_vm2, %v3734_v55, %v3731_v54 }
 0xec0   :  { %4340 = vpow2.f32 %v3715_v26  ;;  %v3801_v4 = vsel %vm3697_vm3, %v8422_v1, %v3737_v2 }
 0xec1   :  { %4342 = vpow2.f32 %v3717_v17  ;;  %v3811_v17 = vld [vmem:[%s7774_s7 + $0x10] sm:$0xff] }
 0xec2   :  { %4344 = vpow2.f32 %v3719_v23 }
 0xec3   :  { %4346 = vpow2.f32 %v3721_v50  ;;  %v4024_v50 = vld [vmem:[%s7775_s8] ss:$0 sm:$0xff] }
 0xec4   :  { %4348 = vpow2.f32 %v3723_v52 }
 0xecc   :  { %v4339_v58 = vpop.eup %4338 }
 0xecd   :  { %v7612_v39 = vmul.f32 %v4339_v58, %v4337_v56  ;;  %v7614_v28 = vpop.eup %4340  ;;  %v3809_v56 = vld [vmem:[%s7774_s7] sm:$0xff] }
 0xece   :  { %v7620_v32 = vpop.eup %4342  ;;  %v3738_v13 = vadd.f32 1.0, %v7614_v28  ;;  %v3741_v62 = vmul.f32 -0.5, %v7614_v28  ;;  %v3744_v24 = vand.u32 2147483647, %v7614_v28 }
 0xecf   :  { %3581 = vmatmul.mubr.f32.vlgmr.msra.gmra.mxu0 %v7612_v39  ;;  %v3711_v33 = vmin.f32 %v7612_v39, 20.0  ;;  %3652 = vmatmul.mubr.f32.vlgmr.msra.gmra.mxu1 %v7612_v39  ;;  %v3747_v8 = vadd.f32 1.0, %v7620_v32  ;;  %v7635_v1 = vpop.eup %4344  ;;  %v3750_v60 = vmul.f32 -0.5, %v7620_v32  ;;  %v3753_v18 = vand.u32 2147483647, %v7620_v32 }
 0xed0   :  { %4050 = vmatpush3.msra.mxu0 %v7591_v63  ;;  %4081 = vmatprep.mubr.f32.mxu0 %v3801_v4  ;;  %v3820_v63 = vld [vmem:[%s7774_s7 + $0x58] sm:$0xff]  ;;  %v7640_v36 = vpop.eup %4346  ;;  %v3756_v7 = vadd.f32 1.0, %v7635_v1  ;;  %v3742_v25 = vadd.f32 1.0, %v3741_v62  ;;  %v3759_v26 = vmul.f32 -0.5, %v7635_v1  ;;  %vm7687_vm4 = vcmp.lt.f32.partialorder %v3744_v24, 0.0004427343 }
 0xed1   :  { %v3725_v42 = vmul.f32 1.442695, %v3711_v33  ;;  %4051 = vmatprep.subr.mxu0 %v3823_v44  ;;  %v7646_v37 = vpop.eup %4348  ;;  %v3765_v41 = vadd.f32 1.0, %v7640_v36  ;;  %v3751_v12 = vadd.f32 1.0, %v3750_v60  ;;  %v3768_v14 = vmul.f32 -0.5, %v7640_v36 }
 0xed2   :  { %4052 = vmatpush3.msra.mxu0 %v3823_v44  ;;  %v3774_v48 = vadd.f32 1.0, %v7646_v37  ;;  %v3743_v45 = vmul.f32 %v7614_v28, %v3742_v25  ;;  %vm7694_vm5 = vcmp.lt.f32.partialorder %v3753_v18, 0.0004427343  ;;  %v3760_v54 = vadd.f32 1.0, %v3759_v26  ;;  %v8437_v18 = vld [vmem:[#allocation43_spill] sm:$0xff] }
 0xed3   :  { %4350 = vpow2.f32 %v3725_v42  ;;  %4053 = vmatprep.subr.mxu0 %v3822_v38  ;;  %v3752_v51 = vmul.f32 %v7620_v32, %v3751_v12  ;;  %v3777_v55 = vmul.f32 -0.5, %v7646_v37  ;;  %v3762_v2 = vand.u32 2147483647, %v7635_v1 }
 0xed4   :  { %4054 = vmatpush3.msra.mxu0 %v3822_v38  ;;  %4352 = vlog2.f32 %v3738_v13  ;;  %v3769_v28 = vadd.f32 1.0, %v3768_v14  ;;  %v3771_v33 = vand.u32 2147483647, %v7640_v36  ;;  %vm3703_vm15 = vcmp.gt.f32.partialorder %v7612_v39, 20.0 }
 0xed5   :  { %4055 = vmatprep.subr.mxu0 %v3821_v30  ;;  %4354 = vlog2.f32 %v3747_v8  ;;  %v3778_v8 = vadd.f32 1.0, %v3777_v55  ;;  %vm7712_vm8 = vcmp.lt.f32.partialorder %v3762_v2, 0.0004427343 }
 0xed6   :  { %4056 = vmatpush3.msra.mxu0 %v3821_v30  ;;  %4356 = vlog2.f32 %v3756_v7  ;;  %v3761_v30 = vmul.f32 %v7635_v1, %v3760_v54  ;;  %v3780_v7 = vand.u32 2147483647, %v7646_v37  ;;  %vm3772_vm9 = vcmp.lt.f32.partialorder %v3771_v33, 0.0004427343 }
 0xed7   :  { %4057 = vmatprep.subr.mxu0 %v3820_v63  ;;  %4358 = vlog2.f32 %v3765_v41 }
 0xed8   :  { %4058 = vmatpush3.msra.mxu0 %v3820_v63  ;;  %4360 = vlog2.f32 %v3774_v48  ;;  %v3779_v48 = vmul.f32 %v7646_v37, %v3778_v8  ;;  %vm3781_vm12 = vcmp.lt.f32.partialorder %v3780_v7, 0.0004427343  ;;  %v8435_v37 = vld [vmem:[#allocation7_spill] sm:$0xff] }
 0xed9   :  { %4059 = vmatprep.subr.mxu0 %v3819_v29 }
 0xeda   :  { %4060 = vmatpush3.msra.mxu0 %v3819_v29  ;;  %v3770_v29 = vmul.f32 %v7640_v36, %v3769_v28 }
 0xedb   :  { %4061 = vmatprep.subr.mxu0 %v3818_v31 }
 0xedc   :  { %4062 = vmatpush3.msra.mxu0 %v3818_v31 }
 0xedd   :  { %4063 = vmatprep.subr.mxu0 %v3817_v59 }
 0xede   :  { %4064 = vmatpush3.msra.mxu0 %v3817_v59 }
 0xedf   :  { %4065 = vmatprep.subr.mxu0 %v3816_v49 }
 0xee0   :  { %v7663_v47 = vpop.eup %4350  ;;  %4066 = vmatpush3.msra.mxu0 %v3816_v49 }
 0xee1   :  { %4067 = vmatprep.subr.mxu0 %v3815_v57  ;;  %v3783_v16 = vadd.f32 1.0, %v7663_v47  ;;  %v4353_v6 = vpop.eup %4352  ;;  %v3786_v44 = vmul.f32 -0.5, %v7663_v47 }
 0xee2   :  { %4068 = vmatpush3.msra.mxu0 %v3815_v57  ;;  %v4355_v11 = vpop.eup %4354  ;;  %v3740_v9 = vmul.f32 0.6931472, %v4353_v6 }
 0xee3   :  { %4069 = vmatprep.subr.mxu0 %v3814_v27  ;;  %4362 = vlog2.f32 %v3783_v16  ;;  %v3749_v34 = vmul.f32 0.6931472, %v4355_v11  ;;  %v4357_v23 = vpop.eup %4356  ;;  %v3787_v31 = vadd.f32 1.0, %v3786_v44 }
 0xee4   :  { %4070 = vmatpush3.msra.mxu0 %v3814_v27  ;;  %v4359_v40 = vpop.eup %4358  ;;  %v3746_v52 = vsel %vm7687_vm4, %v3743_v45, %v3740_v9  ;;  %v3758_v32 = vmul.f32 0.6931472, %v4357_v23 }
 0xee5   :  { %4071 = vmatprep.subr.mxu0 %v3813_v46  ;;  %v3755_v58 = vsel %vm7694_vm5, %v3752_v51, %v3749_v34  ;;  %v4361_v4 = vpop.eup %4360  ;;  %v3767_v38 = vmul.f32 0.6931472, %v4359_v40  ;;  %v3802_v42 = vsel %vm3698_vm6, %v8425_v61, %v3746_v52  ;;  %v3788_v57 = vmul.f32 %v7663_v47, %v3787_v31 }
 0xee6   :  { %4072 = vmatpush3.msra.mxu0 %v3813_v46  ;;  %v3803_v13 = vsel %vm3699_vm7, %v8426_v3, %v3755_v58  ;;  %v3764_v41 = vsel %vm7712_vm8, %v3761_v30, %v3758_v32  ;;  %v3776_v61 = vmul.f32 0.6931472, %v4361_v4  ;;  %v3789_v3 = vand.u32 2147483647, %v7663_v47 }
 0xee7   :  { %4073 = vmatprep.subr.mxu0 %v3812_v15  ;;  %v3773_v59 = vsel %vm3772_vm9, %v3770_v29, %v3767_v38  ;;  %v3804_v36 = vsel %vm3700_vm10, %v8427_v5, %v3764_v41  ;;  %v2070_v47 = vadd.f32 %v8435_v37, %v8419_v0 }
 0xee8   :  { %4074 = vmatpush3.msra.mxu0 %v3812_v15  ;;  %v3805_v62 = vsel %vm3701_vm11, %v8428_v21, %v3773_v59  ;;  %v3782_v27 = vsel %vm3781_vm12, %v3779_v48, %v3776_v61  ;;  %vm3790_vm13 = vcmp.lt.f32.partialorder %v3789_v3, 0.0004427343  ;;  %v8436_v21 = vld [vmem:[#allocation45_spill] sm:$0xff] }
 0xee9   :  { %4075 = vmatprep.subr.mxu0 %v3811_v17  ;;  %v3806_v16 = vsel %vm3702_vm14, %v7520_v10, %v3782_v27  ;;  %v2072_v46 = vadd.f32 %v8436_v21, %v6767_v20 }
 0xeea   :  { %4076 = vmatpush3.msra.mxu0 %v3811_v17  ;;  %v8438_v17 = vld [vmem:[#allocation57_spill] sm:$0xff] }
 0xeeb   :  { %4077 = vmatprep.subr.mxu0 %v3810_v43  ;;  %v2183_v0 = vadd.f32 %v8438_v17, %v6784_v19 }
 0xeec   :  { %4078 = vmatpush3.msra.mxu0 %v3810_v43 }
 0xeed   :  { %4079 = vmatprep.subr.mxu0 %v3809_v56 }
 0xeee   :  { %4080 = vmatpush3.msra.mxu0 %v3809_v56 }
 0xeef   :  { %4082 = vmatmul.mubr.f32.vlgmr.msra.gmra.mxu0 %v3802_v42 }
 0xef0   :  { %v4363_v1 = vpop.eup %4362  ;;  %4084 = vmatprep.mubr.f32.mxu0 %v3803_v13 }
 0xef1   :  { %v3785_v49 = vmul.f32 0.6931472, %v4363_v1 }
 0xef3   :  { %4085 = vmatmul.mubr.f32.gmra.mxu0 %v3804_v36  ;;  %v3791_v60 = vsel %vm3790_vm13, %v3788_v57, %v3785_v49 }
 0xef4   :  { %4087 = vmatprep.mubr.f32.mxu0 %v3805_v62  ;;  %v3807_v5 = vsel %vm3703_vm15, %v7612_v39, %v3791_v60  ;;  %v2185_v39 = vadd.f32 %v8437_v18, %v8291_v22 }
 0xef7   :  { %4088 = vmatmul.mubr.f32.gmra.mxu0 %v3806_v16 }
 0xef8   :  { %4090 = vmatprep.mubr.f32.mxu0 %v3807_v5 }
 0xf8f   :  { %v3582_v6 = vpop.f32.mrf.mxu0  ;;  %v3653_v12 = vpop.f32.mrf.mxu1 }
 0xf90   :  { %v3658_v11 = vadd.f32 %v3582_v6, %v2070_v47  ;;  %v3660_v34 = vadd.f32 %v3653_v12, %v2183_v0 }
 0xf91   :  { %v3584_v25 = vpop.f32.mrf.mxu0  ;;  %v3655_v9 = vpop.f32.mrf.mxu1 }
 0xf92   :  { %v4021_v15 = vmul.f32 -1.442695, %v3658_v11  ;;  %v3659_v24 = vadd.f32 %v3584_v25, %v2072_v46  ;;  %v3661_v26 = vadd.f32 %v3655_v9, %v2185_v39 }
 0xf94   :  { %4364 = vpow2.f32 %v4021_v15  ;;  %v4022_v10 = vmul.f32 -1.442695, %v3659_v24  ;;  %v4023_v14 = vmul.f32 -1.442695, %v3661_v26 }
 0xf96   :  { %4366 = vpow2.f32 %v4022_v10 }
 0xf97   :  { %4368 = vtanh.f32 %v3660_v34 }
 0xf98   :  { %4370 = vpow2.f32 %v4023_v14 }
 0xfa1   :  { %v4365_v45 = vpop.eup %4364 }
 0xfa2   :  { %v3665_v20 = vadd.f32 1.0, %v4365_v45 }
 0xfa3   :  { %v4367_v23 = vpop.eup %4366 }
 0xfa4   :  { %4372 = vrcp.f32 %v3665_v20  ;;  %v3671_v43 = vadd.f32 1.0, %v4367_v23  ;;  %v4369_v51 = vpop.eup %4368 }
 0xfa5   :  { %v4371_v40 = vpop.eup %4370 }
 0xfa6   :  { %4374 = vrcp.f32 %v3671_v43  ;;  %v3678_v58 = vadd.f32 1.0, %v4371_v40 }
 0xfa8   :  { %4376 = vrcp.f32 %v3678_v58 }
 0xfaf   :  { %v4083_v22 = vpop.f32.mrf.mxu0 }
 0xfb0   :  { %v3904_v52 = vadd.f32 %v4083_v22, %v4024_v50 }
 0xfb1   :  { %v4373_v53 = vpop.eup %4372  ;;  %v3898_v19 = vpop.f32.mrf.mxu0 }
 0xfb2   :  { %v3682_v54 = vmul.f32 %v4373_v53, %v4369_v51  ;;  %3938 = vst [vmem:[%s7776_s9 + $0x8] sm:$0xff] %v3904_v52  ;;  %v3899_v55 = vadd.f32 %v4024_v50, %v3898_v19 }
 0xfb3   :  { %v4375_v56 = vpop.eup %4374  ;;  %v4086_v2 = vpop.f32.mrf.mxu0 }
 0xfb4   :  { %v3681_v28 = vmul.f32 %v4375_v56, %v7606_v35  ;;  %3937 = vst [vmem:[%s7776_s9] sm:$0xff] %v3899_v55  ;;  %v3914_v44 = vadd.f32 %v4086_v2, %v4024_v50 }
 0xfb5   :  { %v3908_v32 = vpop.f32.mrf.mxu0  ;;  %v4377_v30 = vpop.eup %4376 }
 0xfb6   :  { %3940 = vst [vmem:[%s7776_s9 + $0x18] sm:$0xff] %v3914_v44  ;;  %v3909_v33 = vadd.f32 %v4024_v50, %v3908_v32  ;;  %v3683_v4 = vadd.f32 %v3682_v54, %v3681_v28 }
 0xfb7   :  { %v4089_v38 = vpop.f32.mrf.mxu0 }
 0xfb8   :  { %3939 = vst [vmem:[%s7776_s9 + $0x10] sm:$0xff] %v3909_v33  ;;  %v3924_v42 = vadd.f32 %v4089_v38, %v4024_v50  ;;  %4378 = vtanh.f32 %v3683_v4 }
 0xfb9   :  { %v3918_v35 = vpop.f32.mrf.mxu0 }
 0xfba   :  { %3942 = vst [vmem:[%s7776_s9 + $0x28] sm:$0xff] %v3924_v42  ;;  %v3919_v13 = vadd.f32 %v4024_v50, %v3918_v35 }
 0xfbc   :  { %3941 = vst [vmem:[%s7776_s9 + $0x20] sm:$0xff] %v3919_v13 }
 0xfc5   :  { %v4379_v8 = vpop.eup %4378 }
 0xfc6   :  { %v3685_v63 = vmul.f32 %v4379_v8, %v4377_v30 }
 0xfc8   :  { %v3712_v29 = vmin.f32 %v3685_v63, 20.0  ;;  %vm3704_vm1 = vcmp.gt.f32.partialorder %v3685_v63, 20.0 }
 0xfca   :  { %v3727_v7 = vmul.f32 1.442695, %v3712_v29 }
 0xfcc   :  { %4380 = vpow2.f32 %v3727_v7 }
 0xfd9   :  { %v4381_v31 = vpop.eup %4380 }
 0xfda   :  { %v3792_v41 = vadd.f32 1.0, %v4381_v31  ;;  %v3795_v61 = vmul.f32 -0.5, %v4381_v31  ;;  %v3798_v1 = vand.u32 2147483647, %v4381_v31 }
 0xfdc   :  { %4382 = vlog2.f32 %v3792_v41  ;;  %v3796_v3 = vadd.f32 1.0, %v3795_v61  ;;  %vm3799_vm0 = vcmp.lt.f32.partialorder %v3798_v1, 0.0004427343 }
 0xfde   :  { %v3797_v49 = vmul.f32 %v4381_v31, %v3796_v3 }
 0xfe9   :  { %v4383_v59 = vpop.eup %4382 }
 0xfea   :  { %v3794_v48 = vmul.f32 0.6931472, %v4383_v59 }
 0xfec   :  { %v3800_v36 = vsel %vm3799_vm0, %v3797_v49, %v3794_v48 }
 0xfed   :  { %v3808_v57 = vsel %vm3704_vm1, %v3685_v63, %v3800_v36 }
 0xfee   :  { %4091 = vmatmul.mubr.f32.gmra.mxu0 %v3808_v57 }
0x10ae   :  { %v4092_v62 = vpop.f32.mrf.mxu0 }
0x10af   :  { %v3934_v27 = vadd.f32 %v4092_v62, %v4024_v50 }
0x10b0   :  { %v3928_v60 = vpop.f32.mrf.mxu0 }
0x10b1   :  { %3944 = vst [vmem:[%s7776_s9 + $0x38] sm:$0xff] %v3934_v27  ;;  %v3929_v16 = vadd.f32 %v4024_v50, %v3928_v60 }
0x10b3   :  { %3943 = vst [vmem:[%s7776_s9 + $0x30] sm:$0xff] %v3929_v16 }

</bundles_post_ra>
